<compile_context>
chip_gen: v7x
topology: tpu7x:2x2x1
jax: 0.10.0
libtpu: 0.0.40
codegen_flags: <defaults>
</compile_context>

<pallas_src>
import functools

import jax
import jax.numpy as jnp
from jax.experimental import pallas as pl
from jax.experimental.pallas import tpu as pltpu

# ---------------- model config (small, synthetic) ----------------
VOCAB = 256      # vocabulary size
D = 128          # hidden size
H = 4            # attention heads
DH = D // H      # head dim
F = 4 * D        # MLP intermediate
LAYERS = 2
MAX_SEQ = 64
LN_EPS = 1e-5


# ---------------- Pallas kernels ----------------

def _layernorm_f32(x, g, b):
    # row-wise layernorm, statistics kept in f32
    mu = jnp.mean(x, axis=-1, keepdims=True)
    var = jnp.mean(jnp.square(x - mu), axis=-1, keepdims=True)
    return (x - mu) * jax.lax.rsqrt(var + LN_EPS) * g + b


def layer_kernel(x_ref, ln1_g, ln1_b, wqkv, bqkv, wo, bo,
                 ln2_g, ln2_b, w1, b1, w2, b2, o_ref, *, heads, scale):
    """One full transformer layer for a single batch element.

    x block: [1, S, D] f32.  Weights are bf16 (MXU operands), biases / LN f32.
    """
    x = x_ref[0]                                   # [S, D] f32 residual stream
    seq, d = x.shape
    dh = d // heads

    # ---- LN1 + fused QKV projection (bf16 MXU operands, f32 accumulate) ----
    h = _layernorm_f32(x, ln1_g[...], ln1_b[...])
    qkv = jnp.dot(h.astype(jnp.bfloat16), wqkv[...],
                  preferred_element_type=jnp.float32) + bqkv[...]   # [S, 3D] f32
    q = qkv[:, :d]
    k = qkv[:, d:2 * d]
    v = qkv[:, 2 * d:]

    # causal mask shared across heads (f32 path, diagonal always unmasked)
    qi = jax.lax.broadcasted_iota(jnp.int32, (seq, seq), 0)
    ki = jax.lax.broadcasted_iota(jnp.int32, (seq, seq), 1)
    causal = ki <= qi

    # ---- per-head causal attention, static unroll over heads ----
    head_outs = []
    for hh in range(heads):
        lo, hi = hh * dh, (hh + 1) * dh
        qh = q[:, lo:hi].astype(jnp.bfloat16)
        kh = k[:, lo:hi].astype(jnp.bfloat16)
        vh = v[:, lo:hi].astype(jnp.bfloat16)
        s = jnp.dot(qh, kh.T, preferred_element_type=jnp.float32) * scale
        s = jnp.where(causal, s, -1e30)
        m = jnp.max(s, axis=-1, keepdims=True)
        p = jnp.exp(s - m)
        # softmax denominator via EUP approx reciprocal (frees VALU slots)
        p = p * pl.reciprocal(jnp.sum(p, axis=-1, keepdims=True), approx=True)
        head_outs.append(jnp.dot(p.astype(jnp.bfloat16), vh,
                                 preferred_element_type=jnp.float32))
    attn = jnp.concatenate(head_outs, axis=-1)     # [S, D] lane-dense

    # ---- output projection + residual add ----
    x = x + (jnp.dot(attn.astype(jnp.bfloat16), wo[...],
                     preferred_element_type=jnp.float32) + bo[...])

    # ---- LN2 + GELU MLP + residual add ----
    h = _layernorm_f32(x, ln2_g[...], ln2_b[...])
    t = jnp.dot(h.astype(jnp.bfloat16), w1[...],
                preferred_element_type=jnp.float32) + b1[...]
    t = jax.nn.gelu(t)                             # f32 on VPU/EUP
    mlp = jnp.dot(t.astype(jnp.bfloat16), w2[...],
                  preferred_element_type=jnp.float32) + b2[...]
    o_ref[0] = x + mlp


def final_kernel(x_ref, g_ref, b_ref, wh_ref, bh_ref, o_ref):
    # fused final layernorm + LM head matmul.  x block [tile_m, D].
    h = _layernorm_f32(x_ref[...], g_ref[...], b_ref[...])
    o_ref[...] = jnp.dot(h.astype(jnp.bfloat16), wh_ref[...],
                         preferred_element_type=jnp.float32) + bh_ref[...]


# ---------------- Pallas wrappers ----------------

def transformer_layer(x, lp):
    """x: [B, S, D] f32 -> [B, S, D] f32; one pallas_call per layer."""
    B, S, d = x.shape
    f = lp["w1"].shape[1]

    kern = functools.partial(layer_kernel, heads=H, scale=1.0 / (DH ** 0.5))
    xspec = pl.BlockSpec((1, S, d), lambda b: (b, 0, 0))

    def const(shape):
        # weights / params stay VMEM-resident across grid steps (constant block).
        return pl.BlockSpec(shape, lambda b: (0, 0))

    flops = int(
        B * S * 2 * d * (3 * d + d + 2 * f)              # qkv + out-proj + 2 MLP mms
        + B * H * 2 * S * S * DH * 2                     # qk^T + pv
    )
    transcendentals = int(B * (H * S * S + S * f + 2 * S))
    bytes_accessed = int(
        2 * B * S * d * 4                                 # x in + out (f32)
        + (d * 3 * d + d * d + d * f + f * d) * 2         # bf16 weights
        + (3 * d + d + f + d + 4 * d) * 4                 # biases + LN params
    )

    return pl.pallas_call(
        kern,
        grid=(B,),
        in_specs=[
            xspec,
            const((1, d)), const((1, d)),                 # ln1 g/b
            const((d, 3 * d)), const((1, 3 * d)),         # wqkv / bqkv
            const((d, d)), const((1, d)),                 # wo / bo
            const((1, d)), const((1, d)),                 # ln2 g/b
            const((d, f)), const((1, f)),                 # w1 / b1
            const((f, d)), const((1, d)),                 # w2 / b2
        ],
        out_specs=xspec,
        out_shape=jax.ShapeDtypeStruct((B, S, d), jnp.float32),
        compiler_params=pltpu.CompilerParams(dimension_semantics=("parallel",)),
        cost_estimate=pl.CostEstimate(flops=flops,
                                      transcendentals=transcendentals,
                                      bytes_accessed=bytes_accessed),
    )(x, lp["ln1_g"], lp["ln1_b"], lp["wqkv"], lp["bqkv"], lp["wo"], lp["bo"],
      lp["ln2_g"], lp["ln2_b"], lp["w1"], lp["b1"], lp["w2"], lp["b2"])


def final_lm_head(x, g, b, wh, bh):
    """x: [M, D] f32 -> logits [M, VOCAB] f32, fused LN + matmul, row-tiled grid."""
    M, d = x.shape
    vocab = wh.shape[1]
    tile_m = M if M <= 512 else 512
    grid_m = pl.cdiv(M, tile_m)

    flops = int(M * 2 * d * vocab)
    bytes_accessed = int(M * d * 4 + M * vocab * 4 + d * vocab * 2 + (vocab + 2 * d) * 4)

    return pl.pallas_call(
        final_kernel,
        grid=(grid_m,),
        in_specs=[
            pl.BlockSpec((tile_m, d), lambda i: (i, 0)),
            pl.BlockSpec((1, d), lambda i: (0, 0)),
            pl.BlockSpec((1, d), lambda i: (0, 0)),
            pl.BlockSpec((d, vocab), lambda i: (0, 0)),
            pl.BlockSpec((1, vocab), lambda i: (0, 0)),
        ],
        out_specs=pl.BlockSpec((tile_m, vocab), lambda i: (i, 0)),
        out_shape=jax.ShapeDtypeStruct((M, vocab), jnp.float32),
        compiler_params=pltpu.CompilerParams(dimension_semantics=("parallel",)),
        cost_estimate=pl.CostEstimate(flops=flops, transcendentals=int(2 * M),
                                      bytes_accessed=bytes_accessed),
    )(x, g, b, wh, bh)


# ---------------- parameters (deterministic synthetic init) ----------------

def init_params(key):
    keys = jax.random.split(key, 4 + LAYERS * 4)
    it = iter(keys)

    def nrm(shape, std=0.02, dtype=jnp.float32):
        return (jax.random.normal(next(it), shape, jnp.float32) * std).astype(dtype)

    params = {
        "embed": nrm((VOCAB, D)),
        # TODO(synk): StarCoder2 uses rotary position embeddings; using learned
        # absolute positions here instead.
        "pos_embed": nrm((MAX_SEQ, D)),
        "layers": [],
        "lnf_g": jnp.ones((1, D), jnp.float32),
        "lnf_b": jnp.zeros((1, D), jnp.float32),
    }
    for _ in range(LAYERS):
        params["layers"].append({
            "ln1_g": jnp.ones((1, D), jnp.float32),
            "ln1_b": jnp.zeros((1, D), jnp.float32),
            "wqkv": nrm((D, 3 * D), dtype=jnp.bfloat16),      # MXU operand -> bf16
            "bqkv": jnp.zeros((1, 3 * D), jnp.float32),
            "wo": nrm((D, D), dtype=jnp.bfloat16),
            "bo": jnp.zeros((1, D), jnp.float32),
            "ln2_g": jnp.ones((1, D), jnp.float32),
            "ln2_b": jnp.zeros((1, D), jnp.float32),
            "w1": nrm((D, F), dtype=jnp.bfloat16),
            "b1": jnp.zeros((1, F), jnp.float32),
            "w2": nrm((F, D), dtype=jnp.bfloat16),
            "b2": jnp.zeros((1, D), jnp.float32),
        })
    params["lm_head"] = nrm((D, VOCAB), dtype=jnp.bfloat16)
    params["lm_b"] = jnp.zeros((1, VOCAB), jnp.float32)
    return params


# ---------------- forward pass (CustomLLM.forward: input_ids -> logits) ----------------

@jax.jit
def forward(params, input_ids):
    B, S = input_ids.shape
    # embedding lookup + position embedding (gather / glue stays in plain JAX)
    x = jnp.take(params["embed"], input_ids, axis=0)          # [B, S, D] f32
    x = x + params["pos_embed"][:S][None, :, :]

    # one fused Pallas kernel per transformer layer (activations stay in VMEM
    # for the whole block; no JAX-level head transposes between calls)
    for lp in params["layers"]:
        x = transformer_layer(x, lp)

    # fused final LN + LM head
    logits = final_lm_head(x.reshape(B * S, D),
                           params["lnf_g"], params["lnf_b"],
                           params["lm_head"], params["lm_b"])
    return logits.reshape(B, S, VOCAB)


if __name__ == "__main__":
    key = jax.random.PRNGKey(0)
    pkey, ikey = jax.random.split(key)
    params = init_params(pkey)

    B, S = 2, 8
    input_ids = jax.random.randint(ikey, (B, S), 0, VOCAB, dtype=jnp.int32)

    logits = forward(params, input_ids)
    jax.block_until_ready(logits)
    assert logits.shape == (B, S, VOCAB)
    assert bool(jnp.all(jnp.isfinite(logits)))
    print("KERNEL_OK")
</pallas_src>

<mosaic_0001>
module attributes {stable_mosaic.version = 11 : i64} {
  func.func @final_kernel(%arg0: i32, %arg1: memref<16x128xf32, #tpu.memory_space<vmem>>, %arg2: memref<1x128xf32, #tpu.memory_space<vmem>>, %arg3: memref<1x128xf32, #tpu.memory_space<vmem>>, %arg4: memref<128x256xbf16, #tpu.memory_space<vmem>>, %arg5: memref<1x256xf32, #tpu.memory_space<vmem>>, %arg6: memref<16x256xf32, #tpu.memory_space<vmem>>) attributes {dimension_semantics = [#tpu.dimension_semantics<parallel>], iteration_bounds = array<i64: 1>, scalar_prefetch = 0 : i64, scratch_operands = 0 : i64, tpu.core_type = #tpu.core_type<tc>, window_params = [{transform_indices = @transform_0, window_bounds = array<i64: 16, 128>}, {pipeline_mode = #tpu.pipeline_mode<synchronous>, transform_indices = @transform_1, window_bounds = array<i64: 1, 128>}, {pipeline_mode = #tpu.pipeline_mode<synchronous>, transform_indices = @transform_2, window_bounds = array<i64: 1, 128>}, {pipeline_mode = #tpu.pipeline_mode<synchronous>, transform_indices = @transform_3, window_bounds = array<i64: 128, 256>}, {pipeline_mode = #tpu.pipeline_mode<synchronous>, transform_indices = @transform_4, window_bounds = array<i64: 1, 256>}, {transform_indices = @transform_5, window_bounds = array<i64: 16, 256>}]} {
    %c0 = arith.constant 0 : index
    %c0_0 = arith.constant 0 : index
    %0 = vector.load %arg1[%c0, %c0_0] : memref<16x128xf32, #tpu.memory_space<vmem>>, vector<16x128xf32>
    %c0_1 = arith.constant 0 : index
    %c0_2 = arith.constant 0 : index
    %1 = vector.load %arg2[%c0_1, %c0_2] : memref<1x128xf32, #tpu.memory_space<vmem>>, vector<1x128xf32>
    %c0_3 = arith.constant 0 : index
    %c0_4 = arith.constant 0 : index
    %2 = vector.load %arg3[%c0_3, %c0_4] : memref<1x128xf32, #tpu.memory_space<vmem>>, vector<1x128xf32>
    %cst = arith.constant dense<0.000000e+00> : vector<16xf32>
    %3 = vector.multi_reduction <add>, %0, %cst [1] : vector<16x128xf32> to vector<16xf32>
    %4 = vector.shape_cast %3 : vector<16xf32> to vector<16x1xf32>
    %cst_5 = arith.constant 1.280000e+02 : f32
    %5 = vector.broadcast %cst_5 : f32 to vector<16x1xf32>
    %6 = arith.divf %4, %5 : vector<16x1xf32>
    %7 = vector.broadcast %6 : vector<16x1xf32> to vector<16x128xf32>
    %8 = arith.subf %0, %7 : vector<16x128xf32>
    %9 = arith.mulf %8, %8 : vector<16x128xf32>
    %cst_6 = arith.constant dense<0.000000e+00> : vector<16xf32>
    %10 = vector.multi_reduction <add>, %9, %cst_6 [1] : vector<16x128xf32> to vector<16xf32>
    %11 = vector.shape_cast %10 : vector<16xf32> to vector<16x1xf32>
    %cst_7 = arith.constant 1.280000e+02 : f32
    %12 = vector.broadcast %cst_7 : f32 to vector<16x1xf32>
    %13 = arith.divf %11, %12 : vector<16x1xf32>
    %14 = vector.broadcast %6 : vector<16x1xf32> to vector<16x128xf32>
    %15 = arith.subf %0, %14 : vector<16x128xf32>
    %cst_8 = arith.constant 9.99999974E-6 : f32
    %16 = vector.broadcast %cst_8 : f32 to vector<16x1xf32>
    %17 = arith.addf %13, %16 : vector<16x1xf32>
    %18 = math.rsqrt %17 : vector<16x1xf32>
    %19 = vector.broadcast %18 : vector<16x1xf32> to vector<16x128xf32>
    %20 = arith.mulf %15, %19 : vector<16x128xf32>
    %21 = vector.broadcast %1 : vector<1x128xf32> to vector<16x128xf32>
    %22 = arith.mulf %20, %21 : vector<16x128xf32>
    %23 = vector.broadcast %2 : vector<1x128xf32> to vector<16x128xf32>
    %24 = arith.addf %22, %23 : vector<16x128xf32>
    %25 = arith.truncf %24 : vector<16x128xf32> to vector<16x128xbf16>
    %c0_9 = arith.constant 0 : index
    %c0_10 = arith.constant 0 : index
    %26 = vector.load %arg4[%c0_9, %c0_10] : memref<128x256xbf16, #tpu.memory_space<vmem>>, vector<128x256xbf16>
    %cst_11 = arith.constant dense<0.000000e+00> : vector<16x256xf32>
    %27 = tpu.matmul %25, %26, %cst_11 {dimension_numbers = #tpu.dot_dimension_numbers<[1], [0], [0], [1], [0, 0, 1, 1], [], []>} : vector<16x128xbf16>, vector<128x256xbf16>, vector<16x256xf32> -> vector<16x256xf32>
    %c0_12 = arith.constant 0 : index
    %c0_13 = arith.constant 0 : index
    %28 = vector.load %arg5[%c0_12, %c0_13] : memref<1x256xf32, #tpu.memory_space<vmem>>, vector<1x256xf32>
    %29 = vector.broadcast %28 : vector<1x256xf32> to vector<16x256xf32>
    %30 = arith.addf %27, %29 : vector<16x256xf32>
    %c0_14 = arith.constant 0 : index
    %c0_15 = arith.constant 0 : index
    %31 = vector.load %arg6[%c0_14, %c0_15] : memref<16x256xf32, #tpu.memory_space<vmem>>, vector<16x256xf32>
    tpu.vector_store %arg6[%c0_14, %c0_15], %30 {strides = array<i32>} : memref<16x256xf32, #tpu.memory_space<vmem>>, vector<16x256xf32>,
    return
  }
  func.func @transform_0(%arg0: i32) -> (i32, i32) {
    %c0_i32 = arith.constant 0 : i32
    %c0_i32_0 = arith.constant 0 : i32
    return %arg0, %c0_i32 : i32, i32
  }
  func.func @transform_1(%arg0: i32) -> (i32, i32) {
    %c0_i32 = arith.constant 0 : i32
    %c0_i32_0 = arith.constant 0 : i32
    %c0_i32_1 = arith.constant 0 : i32
    return %c0_i32, %c0_i32_0 : i32, i32
  }
  func.func @transform_2(%arg0: i32) -> (i32, i32) {
    %c0_i32 = arith.constant 0 : i32
    %c0_i32_0 = arith.constant 0 : i32
    %c0_i32_1 = arith.constant 0 : i32
    return %c0_i32, %c0_i32_0 : i32, i32
  }
  func.func @transform_3(%arg0: i32) -> (i32, i32) {
    %c0_i32 = arith.constant 0 : i32
    %c0_i32_0 = arith.constant 0 : i32
    %c0_i32_1 = arith.constant 0 : i32
    return %c0_i32, %c0_i32_0 : i32, i32
  }
  func.func @transform_4(%arg0: i32) -> (i32, i32) {
    %c0_i32 = arith.constant 0 : i32
    %c0_i32_0 = arith.constant 0 : i32
    %c0_i32_1 = arith.constant 0 : i32
    return %c0_i32, %c0_i32_0 : i32, i32
  }
  func.func @transform_5(%arg0: i32) -> (i32, i32) {
    %c0_i32 = arith.constant 0 : i32
    %c0_i32_0 = arith.constant 0 : i32
    return %arg0, %c0_i32 : i32, i32
  }
}

module attributes {stable_mosaic.version = 11 : i64} {
  func.func @layer_kernel(%arg0: i32, %arg1: memref<1x8x128xf32, #tpu.memory_space<vmem>>, %arg2: memref<1x128xf32, #tpu.memory_space<vmem>>, %arg3: memref<1x128xf32, #tpu.memory_space<vmem>>, %arg4: memref<128x384xbf16, #tpu.memory_space<vmem>>, %arg5: memref<1x384xf32, #tpu.memory_space<vmem>>, %arg6: memref<128x128xbf16, #tpu.memory_space<vmem>>, %arg7: memref<1x128xf32, #tpu.memory_space<vmem>>, %arg8: memref<1x128xf32, #tpu.memory_space<vmem>>, %arg9: memref<1x128xf32, #tpu.memory_space<vmem>>, %arg10: memref<128x512xbf16, #tpu.memory_space<vmem>>, %arg11: memref<1x512xf32, #tpu.memory_space<vmem>>, %arg12: memref<512x128xbf16, #tpu.memory_space<vmem>>, %arg13: memref<1x128xf32, #tpu.memory_space<vmem>>, %arg14: memref<1x8x128xf32, #tpu.memory_space<vmem>>) attributes {dimension_semantics = [#tpu.dimension_semantics<parallel>], iteration_bounds = array<i64: 2>, scalar_prefetch = 0 : i64, scratch_operands = 0 : i64, tpu.core_type = #tpu.core_type<tc>, window_params = [{transform_indices = @transform_0, window_bounds = array<i64: 1, 8, 128>}, {pipeline_mode = #tpu.pipeline_mode<synchronous>, transform_indices = @transform_1, window_bounds = array<i64: 1, 128>}, {pipeline_mode = #tpu.pipeline_mode<synchronous>, transform_indices = @transform_2, window_bounds = array<i64: 1, 128>}, {pipeline_mode = #tpu.pipeline_mode<synchronous>, transform_indices = @transform_3, window_bounds = array<i64: 128, 384>}, {pipeline_mode = #tpu.pipeline_mode<synchronous>, transform_indices = @transform_4, window_bounds = array<i64: 1, 384>}, {pipeline_mode = #tpu.pipeline_mode<synchronous>, transform_indices = @transform_5, window_bounds = array<i64: 128, 128>}, {pipeline_mode = #tpu.pipeline_mode<synchronous>, transform_indices = @transform_6, window_bounds = array<i64: 1, 128>}, {pipeline_mode = #tpu.pipeline_mode<synchronous>, transform_indices = @transform_7, window_bounds = array<i64: 1, 128>}, {pipeline_mode = #tpu.pipeline_mode<synchronous>, transform_indices = @transform_8, window_bounds = array<i64: 1, 128>}, {pipeline_mode = #tpu.pipeline_mode<synchronous>, transform_indices = @transform_9, window_bounds = array<i64: 128, 512>}, {pipeline_mode = #tpu.pipeline_mode<synchronous>, transform_indices = @transform_10, window_bounds = array<i64: 1, 512>}, {pipeline_mode = #tpu.pipeline_mode<synchronous>, transform_indices = @transform_11, window_bounds = array<i64: 512, 128>}, {pipeline_mode = #tpu.pipeline_mode<synchronous>, transform_indices = @transform_12, window_bounds = array<i64: 1, 128>}, {transform_indices = @transform_13, window_bounds = array<i64: 1, 8, 128>}]} {
    %c0 = arith.constant 0 : index
    %c0_0 = arith.constant 0 : index
    %c0_1 = arith.constant 0 : index
    %0 = vector.load %arg1[%c0, %c0_0, %c0_1] : memref<1x8x128xf32, #tpu.memory_space<vmem>>, vector<1x8x128xf32>
    %1 = vector.shape_cast %0 : vector<1x8x128xf32> to vector<8x128xf32>
    %c0_2 = arith.constant 0 : index
    %c0_3 = arith.constant 0 : index
    %2 = vector.load %arg2[%c0_2, %c0_3] : memref<1x128xf32, #tpu.memory_space<vmem>>, vector<1x128xf32>
    %c0_4 = arith.constant 0 : index
    %c0_5 = arith.constant 0 : index
    %3 = vector.load %arg3[%c0_4, %c0_5] : memref<1x128xf32, #tpu.memory_space<vmem>>, vector<1x128xf32>
    %cst = arith.constant dense<0.000000e+00> : vector<8xf32>
    %4 = vector.multi_reduction <add>, %1, %cst [1] : vector<8x128xf32> to vector<8xf32>
    %5 = vector.shape_cast %4 : vector<8xf32> to vector<8x1xf32>
    %cst_6 = arith.constant 1.280000e+02 : f32
    %6 = vector.broadcast %cst_6 : f32 to vector<8x1xf32>
    %7 = arith.divf %5, %6 : vector<8x1xf32>
    %8 = vector.broadcast %7 : vector<8x1xf32> to vector<8x128xf32>
    %9 = arith.subf %1, %8 : vector<8x128xf32>
    %10 = arith.mulf %9, %9 : vector<8x128xf32>
    %cst_7 = arith.constant dense<0.000000e+00> : vector<8xf32>
    %11 = vector.multi_reduction <add>, %10, %cst_7 [1] : vector<8x128xf32> to vector<8xf32>
    %12 = vector.shape_cast %11 : vector<8xf32> to vector<8x1xf32>
    %cst_8 = arith.constant 1.280000e+02 : f32
    %13 = vector.broadcast %cst_8 : f32 to vector<8x1xf32>
    %14 = arith.divf %12, %13 : vector<8x1xf32>
    %15 = vector.broadcast %7 : vector<8x1xf32> to vector<8x128xf32>
    %16 = arith.subf %1, %15 : vector<8x128xf32>
    %cst_9 = arith.constant 9.99999974E-6 : f32
    %17 = vector.broadcast %cst_9 : f32 to vector<8x1xf32>
    %18 = arith.addf %14, %17 : vector<8x1xf32>
    %19 = math.rsqrt %18 : vector<8x1xf32>
    %20 = vector.broadcast %19 : vector<8x1xf32> to vector<8x128xf32>
    %21 = arith.mulf %16, %20 : vector<8x128xf32>
    %22 = vector.broadcast %2 : vector<1x128xf32> to vector<8x128xf32>
    %23 = arith.mulf %21, %22 : vector<8x128xf32>
    %24 = vector.broadcast %3 : vector<1x128xf32> to vector<8x128xf32>
    %25 = arith.addf %23, %24 : vector<8x128xf32>
    %26 = arith.truncf %25 : vector<8x128xf32> to vector<8x128xbf16>
    %c0_10 = arith.constant 0 : index
    %c0_11 = arith.constant 0 : index
    %27 = vector.load %arg4[%c0_10, %c0_11] : memref<128x384xbf16, #tpu.memory_space<vmem>>, vector<128x384xbf16>
    %cst_12 = arith.constant dense<0.000000e+00> : vector<8x384xf32>
    %28 = tpu.matmul %26, %27, %cst_12 {dimension_numbers = #tpu.dot_dimension_numbers<[1], [0], [0], [1], [0, 0, 1, 1], [], []>} : vector<8x128xbf16>, vector<128x384xbf16>, vector<8x384xf32> -> vector<8x384xf32>
    %c0_13 = arith.constant 0 : index
    %c0_14 = arith.constant 0 : index
    %29 = vector.load %arg5[%c0_13, %c0_14] : memref<1x384xf32, #tpu.memory_space<vmem>>, vector<1x384xf32>
    %30 = vector.broadcast %29 : vector<1x384xf32> to vector<8x384xf32>
    %31 = arith.addf %28, %30 : vector<8x384xf32>
    %32 = vector.extract_strided_slice %31 {offsets = [0, 0], sizes = [8, 128], strides = [1, 1]} : vector<8x384xf32> to vector<8x128xf32>
    %33 = vector.extract_strided_slice %31 {offsets = [0, 128], sizes = [8, 128], strides = [1, 1]} : vector<8x384xf32> to vector<8x128xf32>
    %34 = vector.extract_strided_slice %31 {offsets = [0, 256], sizes = [8, 128], strides = [1, 1]} : vector<8x384xf32> to vector<8x128xf32>
    %35 = tpu.iota {dimensions = array<i32: 0>} : vector<8x8xi32>
    %36 = tpu.iota {dimensions = array<i32: 1>} : vector<8x8xi32>
    %37 = arith.cmpi sle, %36, %35 : vector<8x8xi32>
    %38 = vector.extract_strided_slice %32 {offsets = [0, 0], sizes = [8, 32], strides = [1, 1]} : vector<8x128xf32> to vector<8x32xf32>
    %39 = arith.truncf %38 : vector<8x32xf32> to vector<8x32xbf16>
    %40 = vector.extract_strided_slice %33 {offsets = [0, 0], sizes = [8, 32], strides = [1, 1]} : vector<8x128xf32> to vector<8x32xf32>
    %41 = arith.truncf %40 : vector<8x32xf32> to vector<8x32xbf16>
    %42 = vector.extract_strided_slice %34 {offsets = [0, 0], sizes = [8, 32], strides = [1, 1]} : vector<8x128xf32> to vector<8x32xf32>
    %43 = arith.truncf %42 : vector<8x32xf32> to vector<8x32xbf16>
    %44 = tpu.transpose %41, [1, 0] : vector<8x32xbf16> -> vector<32x8xbf16>
    %cst_15 = arith.constant dense<0.000000e+00> : vector<8x8xf32>
    %45 = tpu.matmul %39, %44, %cst_15 {dimension_numbers = #tpu.dot_dimension_numbers<[1], [0], [0], [1], [0, 0, 1, 1], [], []>} : vector<8x32xbf16>, vector<32x8xbf16>, vector<8x8xf32> -> vector<8x8xf32>
    %cst_16 = arith.constant 0.176776692 : f32
    %46 = vector.broadcast %cst_16 : f32 to vector<8x8xf32>
    %47 = arith.mulf %45, %46 : vector<8x8xf32>
    %cst_17 = arith.constant -1.000000e+30 : f32
    %48 = vector.broadcast %cst_17 : f32 to vector<8x8xf32>
    %49 = arith.select %37, %47, %48 : vector<8x8xi1>, vector<8x8xf32>
    %cst_18 = arith.constant dense<0xFF800000> : vector<8xf32>
    %50 = vector.multi_reduction <maximumf>, %49, %cst_18 [1] : vector<8x8xf32> to vector<8xf32>
    %51 = vector.shape_cast %50 : vector<8xf32> to vector<8x1xf32>
    %52 = vector.broadcast %51 : vector<8x1xf32> to vector<8x8xf32>
    %53 = arith.subf %49, %52 : vector<8x8xf32>
    %54 = math.exp %53 : vector<8x8xf32>
    %cst_19 = arith.constant dense<0.000000e+00> : vector<8xf32>
    %55 = vector.multi_reduction <add>, %54, %cst_19 [1] : vector<8x8xf32> to vector<8xf32>
    %56 = vector.shape_cast %55 : vector<8xf32> to vector<8x1xf32>
    %57 = tpu.reciprocal %56 {approx = true} : vector<8x1xf32> -> vector<8x1xf32>
    %58 = vector.broadcast %57 : vector<8x1xf32> to vector<8x8xf32>
    %59 = arith.mulf %54, %58 : vector<8x8xf32>
    %60 = arith.truncf %59 : vector<8x8xf32> to vector<8x8xbf16>
    %cst_20 = arith.constant dense<0.000000e+00> : vector<8x32xf32>
    %61 = tpu.matmul %60, %43, %cst_20 {dimension_numbers = #tpu.dot_dimension_numbers<[1], [0], [0], [1], [0, 0, 1, 1], [], []>} : vector<8x8xbf16>, vector<8x32xbf16>, vector<8x32xf32> -> vector<8x32xf32>
    %62 = vector.extract_strided_slice %32 {offsets = [0, 32], sizes = [8, 32], strides = [1, 1]} : vector<8x128xf32> to vector<8x32xf32>
    %63 = arith.truncf %62 : vector<8x32xf32> to vector<8x32xbf16>
    %64 = vector.extract_strided_slice %33 {offsets = [0, 32], sizes = [8, 32], strides = [1, 1]} : vector<8x128xf32> to vector<8x32xf32>
    %65 = arith.truncf %64 : vector<8x32xf32> to vector<8x32xbf16>
    %66 = vector.extract_strided_slice %34 {offsets = [0, 32], sizes = [8, 32], strides = [1, 1]} : vector<8x128xf32> to vector<8x32xf32>
    %67 = arith.truncf %66 : vector<8x32xf32> to vector<8x32xbf16>
    %68 = tpu.transpose %65, [1, 0] : vector<8x32xbf16> -> vector<32x8xbf16>
    %cst_21 = arith.constant dense<0.000000e+00> : vector<8x8xf32>
    %69 = tpu.matmul %63, %68, %cst_21 {dimension_numbers = #tpu.dot_dimension_numbers<[1], [0], [0], [1], [0, 0, 1, 1], [], []>} : vector<8x32xbf16>, vector<32x8xbf16>, vector<8x8xf32> -> vector<8x8xf32>
    %cst_22 = arith.constant 0.176776692 : f32
    %70 = vector.broadcast %cst_22 : f32 to vector<8x8xf32>
    %71 = arith.mulf %69, %70 : vector<8x8xf32>
    %cst_23 = arith.constant -1.000000e+30 : f32
    %72 = vector.broadcast %cst_23 : f32 to vector<8x8xf32>
    %73 = arith.select %37, %71, %72 : vector<8x8xi1>, vector<8x8xf32>
    %cst_24 = arith.constant dense<0xFF800000> : vector<8xf32>
    %74 = vector.multi_reduction <maximumf>, %73, %cst_24 [1] : vector<8x8xf32> to vector<8xf32>
    %75 = vector.shape_cast %74 : vector<8xf32> to vector<8x1xf32>
    %76 = vector.broadcast %75 : vector<8x1xf32> to vector<8x8xf32>
    %77 = arith.subf %73, %76 : vector<8x8xf32>
    %78 = math.exp %77 : vector<8x8xf32>
    %cst_25 = arith.constant dense<0.000000e+00> : vector<8xf32>
    %79 = vector.multi_reduction <add>, %78, %cst_25 [1] : vector<8x8xf32> to vector<8xf32>
    %80 = vector.shape_cast %79 : vector<8xf32> to vector<8x1xf32>
    %81 = tpu.reciprocal %80 {approx = true} : vector<8x1xf32> -> vector<8x1xf32>
    %82 = vector.broadcast %81 : vector<8x1xf32> to vector<8x8xf32>
    %83 = arith.mulf %78, %82 : vector<8x8xf32>
    %84 = arith.truncf %83 : vector<8x8xf32> to vector<8x8xbf16>
    %cst_26 = arith.constant dense<0.000000e+00> : vector<8x32xf32>
    %85 = tpu.matmul %84, %67, %cst_26 {dimension_numbers = #tpu.dot_dimension_numbers<[1], [0], [0], [1], [0, 0, 1, 1], [], []>} : vector<8x8xbf16>, vector<8x32xbf16>, vector<8x32xf32> -> vector<8x32xf32>
    %86 = vector.extract_strided_slice %32 {offsets = [0, 64], sizes = [8, 32], strides = [1, 1]} : vector<8x128xf32> to vector<8x32xf32>
    %87 = arith.truncf %86 : vector<8x32xf32> to vector<8x32xbf16>
    %88 = vector.extract_strided_slice %33 {offsets = [0, 64], sizes = [8, 32], strides = [1, 1]} : vector<8x128xf32> to vector<8x32xf32>
    %89 = arith.truncf %88 : vector<8x32xf32> to vector<8x32xbf16>
    %90 = vector.extract_strided_slice %34 {offsets = [0, 64], sizes = [8, 32], strides = [1, 1]} : vector<8x128xf32> to vector<8x32xf32>
    %91 = arith.truncf %90 : vector<8x32xf32> to vector<8x32xbf16>
    %92 = tpu.transpose %89, [1, 0] : vector<8x32xbf16> -> vector<32x8xbf16>
    %cst_27 = arith.constant dense<0.000000e+00> : vector<8x8xf32>
    %93 = tpu.matmul %87, %92, %cst_27 {dimension_numbers = #tpu.dot_dimension_numbers<[1], [0], [0], [1], [0, 0, 1, 1], [], []>} : vector<8x32xbf16>, vector<32x8xbf16>, vector<8x8xf32> -> vector<8x8xf32>
    %cst_28 = arith.constant 0.176776692 : f32
    %94 = vector.broadcast %cst_28 : f32 to vector<8x8xf32>
    %95 = arith.mulf %93, %94 : vector<8x8xf32>
    %cst_29 = arith.constant -1.000000e+30 : f32
    %96 = vector.broadcast %cst_29 : f32 to vector<8x8xf32>
    %97 = arith.select %37, %95, %96 : vector<8x8xi1>, vector<8x8xf32>
    %cst_30 = arith.constant dense<0xFF800000> : vector<8xf32>
    %98 = vector.multi_reduction <maximumf>, %97, %cst_30 [1] : vector<8x8xf32> to vector<8xf32>
    %99 = vector.shape_cast %98 : vector<8xf32> to vector<8x1xf32>
    %100 = vector.broadcast %99 : vector<8x1xf32> to vector<8x8xf32>
    %101 = arith.subf %97, %100 : vector<8x8xf32>
    %102 = math.exp %101 : vector<8x8xf32>
    %cst_31 = arith.constant dense<0.000000e+00> : vector<8xf32>
    %103 = vector.multi_reduction <add>, %102, %cst_31 [1] : vector<8x8xf32> to vector<8xf32>
    %104 = vector.shape_cast %103 : vector<8xf32> to vector<8x1xf32>
    %105 = tpu.reciprocal %104 {approx = true} : vector<8x1xf32> -> vector<8x1xf32>
    %106 = vector.broadcast %105 : vector<8x1xf32> to vector<8x8xf32>
    %107 = arith.mulf %102, %106 : vector<8x8xf32>
    %108 = arith.truncf %107 : vector<8x8xf32> to vector<8x8xbf16>
    %cst_32 = arith.constant dense<0.000000e+00> : vector<8x32xf32>
    %109 = tpu.matmul %108, %91, %cst_32 {dimension_numbers = #tpu.dot_dimension_numbers<[1], [0], [0], [1], [0, 0, 1, 1], [], []>} : vector<8x8xbf16>, vector<8x32xbf16>, vector<8x32xf32> -> vector<8x32xf32>
    %110 = vector.extract_strided_slice %32 {offsets = [0, 96], sizes = [8, 32], strides = [1, 1]} : vector<8x128xf32> to vector<8x32xf32>
    %111 = arith.truncf %110 : vector<8x32xf32> to vector<8x32xbf16>
    %112 = vector.extract_strided_slice %33 {offsets = [0, 96], sizes = [8, 32], strides = [1, 1]} : vector<8x128xf32> to vector<8x32xf32>
    %113 = arith.truncf %112 : vector<8x32xf32> to vector<8x32xbf16>
    %114 = vector.extract_strided_slice %34 {offsets = [0, 96], sizes = [8, 32], strides = [1, 1]} : vector<8x128xf32> to vector<8x32xf32>
    %115 = arith.truncf %114 : vector<8x32xf32> to vector<8x32xbf16>
    %116 = tpu.transpose %113, [1, 0] : vector<8x32xbf16> -> vector<32x8xbf16>
    %cst_33 = arith.constant dense<0.000000e+00> : vector<8x8xf32>
    %117 = tpu.matmul %111, %116, %cst_33 {dimension_numbers = #tpu.dot_dimension_numbers<[1], [0], [0], [1], [0, 0, 1, 1], [], []>} : vector<8x32xbf16>, vector<32x8xbf16>, vector<8x8xf32> -> vector<8x8xf32>
    %cst_34 = arith.constant 0.176776692 : f32
    %118 = vector.broadcast %cst_34 : f32 to vector<8x8xf32>
    %119 = arith.mulf %117, %118 : vector<8x8xf32>
    %cst_35 = arith.constant -1.000000e+30 : f32
    %120 = vector.broadcast %cst_35 : f32 to vector<8x8xf32>
    %121 = arith.select %37, %119, %120 : vector<8x8xi1>, vector<8x8xf32>
    %cst_36 = arith.constant dense<0xFF800000> : vector<8xf32>
    %122 = vector.multi_reduction <maximumf>, %121, %cst_36 [1] : vector<8x8xf32> to vector<8xf32>
    %123 = vector.shape_cast %122 : vector<8xf32> to vector<8x1xf32>
    %124 = vector.broadcast %123 : vector<8x1xf32> to vector<8x8xf32>
    %125 = arith.subf %121, %124 : vector<8x8xf32>
    %126 = math.exp %125 : vector<8x8xf32>
    %cst_37 = arith.constant dense<0.000000e+00> : vector<8xf32>
    %127 = vector.multi_reduction <add>, %126, %cst_37 [1] : vector<8x8xf32> to vector<8xf32>
    %128 = vector.shape_cast %127 : vector<8xf32> to vector<8x1xf32>
    %129 = tpu.reciprocal %128 {approx = true} : vector<8x1xf32> -> vector<8x1xf32>
    %130 = vector.broadcast %129 : vector<8x1xf32> to vector<8x8xf32>
    %131 = arith.mulf %126, %130 : vector<8x8xf32>
    %132 = arith.truncf %131 : vector<8x8xf32> to vector<8x8xbf16>
    %cst_38 = arith.constant dense<0.000000e+00> : vector<8x32xf32>
    %133 = tpu.matmul %132, %115, %cst_38 {dimension_numbers = #tpu.dot_dimension_numbers<[1], [0], [0], [1], [0, 0, 1, 1], [], []>} : vector<8x8xbf16>, vector<8x32xbf16>, vector<8x32xf32> -> vector<8x32xf32>
    %134 = tpu.concatenate %61, %85, %109, %133 in 1 : vector<8x32xf32>, vector<8x32xf32>, vector<8x32xf32>, vector<8x32xf32> -> vector<8x128xf32>
    %135 = arith.truncf %134 : vector<8x128xf32> to vector<8x128xbf16>
    %c0_39 = arith.constant 0 : index
    %c0_40 = arith.constant 0 : index
    %136 = vector.load %arg6[%c0_39, %c0_40] : memref<128x128xbf16, #tpu.memory_space<vmem>>, vector<128x128xbf16>
    %cst_41 = arith.constant dense<0.000000e+00> : vector<8x128xf32>
    %137 = tpu.matmul %135, %136, %cst_41 {dimension_numbers = #tpu.dot_dimension_numbers<[1], [0], [0], [1], [0, 0, 1, 1], [], []>} : vector<8x128xbf16>, vector<128x128xbf16>, vector<8x128xf32> -> vector<8x128xf32>
    %c0_42 = arith.constant 0 : index
    %c0_43 = arith.constant 0 : index
    %138 = vector.load %arg7[%c0_42, %c0_43] : memref<1x128xf32, #tpu.memory_space<vmem>>, vector<1x128xf32>
    %139 = vector.broadcast %138 : vector<1x128xf32> to vector<8x128xf32>
    %140 = arith.addf %137, %139 : vector<8x128xf32>
    %141 = arith.addf %1, %140 : vector<8x128xf32>
    %c0_44 = arith.constant 0 : index
    %c0_45 = arith.constant 0 : index
    %142 = vector.load %arg8[%c0_44, %c0_45] : memref<1x128xf32, #tpu.memory_space<vmem>>, vector<1x128xf32>
    %c0_46 = arith.constant 0 : index
    %c0_47 = arith.constant 0 : index
    %143 = vector.load %arg9[%c0_46, %c0_47] : memref<1x128xf32, #tpu.memory_space<vmem>>, vector<1x128xf32>
    %cst_48 = arith.constant dense<0.000000e+00> : vector<8xf32>
    %144 = vector.multi_reduction <add>, %141, %cst_48 [1] : vector<8x128xf32> to vector<8xf32>
    %145 = vector.shape_cast %144 : vector<8xf32> to vector<8x1xf32>
    %cst_49 = arith.constant 1.280000e+02 : f32
    %146 = vector.broadcast %cst_49 : f32 to vector<8x1xf32>
    %147 = arith.divf %145, %146 : vector<8x1xf32>
    %148 = vector.broadcast %147 : vector<8x1xf32> to vector<8x128xf32>
    %149 = arith.subf %141, %148 : vector<8x128xf32>
    %150 = arith.mulf %149, %149 : vector<8x128xf32>
    %cst_50 = arith.constant dense<0.000000e+00> : vector<8xf32>
    %151 = vector.multi_reduction <add>, %150, %cst_50 [1] : vector<8x128xf32> to vector<8xf32>
    %152 = vector.shape_cast %151 : vector<8xf32> to vector<8x1xf32>
    %cst_51 = arith.constant 1.280000e+02 : f32
    %153 = vector.broadcast %cst_51 : f32 to vector<8x1xf32>
    %154 = arith.divf %152, %153 : vector<8x1xf32>
    %155 = vector.broadcast %147 : vector<8x1xf32> to vector<8x128xf32>
    %156 = arith.subf %141, %155 : vector<8x128xf32>
    %cst_52 = arith.constant 9.99999974E-6 : f32
    %157 = vector.broadcast %cst_52 : f32 to vector<8x1xf32>
    %158 = arith.addf %154, %157 : vector<8x1xf32>
    %159 = math.rsqrt %158 : vector<8x1xf32>
    %160 = vector.broadcast %159 : vector<8x1xf32> to vector<8x128xf32>
    %161 = arith.mulf %156, %160 : vector<8x128xf32>
    %162 = vector.broadcast %142 : vector<1x128xf32> to vector<8x128xf32>
    %163 = arith.mulf %161, %162 : vector<8x128xf32>
    %164 = vector.broadcast %143 : vector<1x128xf32> to vector<8x128xf32>
    %165 = arith.addf %163, %164 : vector<8x128xf32>
    %166 = arith.truncf %165 : vector<8x128xf32> to vector<8x128xbf16>
    %c0_53 = arith.constant 0 : index
    %c0_54 = arith.constant 0 : index
    %167 = vector.load %arg10[%c0_53, %c0_54] : memref<128x512xbf16, #tpu.memory_space<vmem>>, vector<128x512xbf16>
    %cst_55 = arith.constant dense<0.000000e+00> : vector<8x512xf32>
    %168 = tpu.matmul %166, %167, %cst_55 {dimension_numbers = #tpu.dot_dimension_numbers<[1], [0], [0], [1], [0, 0, 1, 1], [], []>} : vector<8x128xbf16>, vector<128x512xbf16>, vector<8x512xf32> -> vector<8x512xf32>
    %c0_56 = arith.constant 0 : index
    %c0_57 = arith.constant 0 : index
    %169 = vector.load %arg11[%c0_56, %c0_57] : memref<1x512xf32, #tpu.memory_space<vmem>>, vector<1x512xf32>
    %170 = vector.broadcast %169 : vector<1x512xf32> to vector<8x512xf32>
    %171 = arith.addf %168, %170 : vector<8x512xf32>
    %172 = arith.mulf %171, %171 : vector<8x512xf32>
    %173 = arith.mulf %171, %172 : vector<8x512xf32>
    %cst_58 = arith.constant 4.471500e-02 : f32
    %174 = vector.broadcast %cst_58 : f32 to vector<8x512xf32>
    %175 = arith.mulf %174, %173 : vector<8x512xf32>
    %176 = arith.addf %171, %175 : vector<8x512xf32>
    %cst_59 = arith.constant 0.797884583 : f32
    %177 = vector.broadcast %cst_59 : f32 to vector<8x512xf32>
    %178 = arith.mulf %177, %176 : vector<8x512xf32>
    %179 = math.tanh %178 : vector<8x512xf32>
    %cst_60 = arith.constant 1.000000e+00 : f32
    %180 = vector.broadcast %cst_60 : f32 to vector<8x512xf32>
    %181 = arith.addf %180, %179 : vector<8x512xf32>
    %cst_61 = arith.constant 5.000000e-01 : f32
    %182 = vector.broadcast %cst_61 : f32 to vector<8x512xf32>
    %183 = arith.mulf %182, %181 : vector<8x512xf32>
    %184 = arith.mulf %171, %183 : vector<8x512xf32>
    %185 = arith.truncf %184 : vector<8x512xf32> to vector<8x512xbf16>
    %c0_62 = arith.constant 0 : index
    %c0_63 = arith.constant 0 : index
    %186 = vector.load %arg12[%c0_62, %c0_63] : memref<512x128xbf16, #tpu.memory_space<vmem>>, vector<512x128xbf16>
    %cst_64 = arith.constant dense<0.000000e+00> : vector<8x128xf32>
    %187 = tpu.matmul %185, %186, %cst_64 {dimension_numbers = #tpu.dot_dimension_numbers<[1], [0], [0], [1], [0, 0, 1, 1], [], []>} : vector<8x512xbf16>, vector<512x128xbf16>, vector<8x128xf32> -> vector<8x128xf32>
    %c0_65 = arith.constant 0 : index
    %c0_66 = arith.constant 0 : index
    %188 = vector.load %arg13[%c0_65, %c0_66] : memref<1x128xf32, #tpu.memory_space<vmem>>, vector<1x128xf32>
    %189 = vector.broadcast %188 : vector<1x128xf32> to vector<8x128xf32>
    %190 = arith.addf %187, %189 : vector<8x128xf32>
    %191 = arith.addf %141, %190 : vector<8x128xf32>
    %c0_67 = arith.constant 0 : index
    %c0_68 = arith.constant 0 : index
    %c0_69 = arith.constant 0 : index
    %192 = vector.load %arg14[%c0_67, %c0_68, %c0_69] : memref<1x8x128xf32, #tpu.memory_space<vmem>>, vector<1x8x128xf32>
    %193 = vector.shape_cast %192 : vector<1x8x128xf32> to vector<8x128xf32>
    %194 = vector.shape_cast %191 : vector<8x128xf32> to vector<1x8x128xf32>
    tpu.vector_store %arg14[%c0_67, %c0_68, %c0_69], %194 {strides = array<i32>} : memref<1x8x128xf32, #tpu.memory_space<vmem>>, vector<1x8x128xf32>,
    return
  }
  func.func @transform_0(%arg0: i32) -> (i32, i32, i32) {
    %c0_i32 = arith.constant 0 : i32
    %c0_i32_0 = arith.constant 0 : i32
    %c0_i32_1 = arith.constant 0 : i32
    return %arg0, %c0_i32, %c0_i32_0 : i32, i32, i32
  }
  func.func @transform_1(%arg0: i32) -> (i32, i32) {
    %c0_i32 = arith.constant 0 : i32
    %c0_i32_0 = arith.constant 0 : i32
    %c0_i32_1 = arith.constant 0 : i32
    return %c0_i32, %c0_i32_0 : i32, i32
  }
  func.func @transform_2(%arg0: i32) -> (i32, i32) {
    %c0_i32 = arith.constant 0 : i32
    %c0_i32_0 = arith.constant 0 : i32
    %c0_i32_1 = arith.constant 0 : i32
    return %c0_i32, %c0_i32_0 : i32, i32
  }
  func.func @transform_3(%arg0: i32) -> (i32, i32) {
    %c0_i32 = arith.constant 0 : i32
    %c0_i32_0 = arith.constant 0 : i32
    %c0_i32_1 = arith.constant 0 : i32
    return %c0_i32, %c0_i32_0 : i32, i32
  }
  func.func @transform_4(%arg0: i32) -> (i32, i32) {
    %c0_i32 = arith.constant 0 : i32
    %c0_i32_0 = arith.constant 0 : i32
    %c0_i32_1 = arith.constant 0 : i32
    return %c0_i32, %c0_i32_0 : i32, i32
  }
  func.func @transform_5(%arg0: i32) -> (i32, i32) {
    %c0_i32 = arith.constant 0 : i32
    %c0_i32_0 = arith.constant 0 : i32
    %c0_i32_1 = arith.constant 0 : i32
    return %c0_i32, %c0_i32_0 : i32, i32
  }
  func.func @transform_6(%arg0: i32) -> (i32, i32) {
    %c0_i32 = arith.constant 0 : i32
    %c0_i32_0 = arith.constant 0 : i32
    %c0_i32_1 = arith.constant 0 : i32
    return %c0_i32, %c0_i32_0 : i32, i32
  }
  func.func @transform_7(%arg0: i32) -> (i32, i32) {
    %c0_i32 = arith.constant 0 : i32
    %c0_i32_0 = arith.constant 0 : i32
    %c0_i32_1 = arith.constant 0 : i32
    return %c0_i32, %c0_i32_0 : i32, i32
  }
  func.func @transform_8(%arg0: i32) -> (i32, i32) {
    %c0_i32 = arith.constant 0 : i32
    %c0_i32_0 = arith.constant 0 : i32
    %c0_i32_1 = arith.constant 0 : i32
    return %c0_i32, %c0_i32_0 : i32, i32
  }
  func.func @transform_9(%arg0: i32) -> (i32, i32) {
    %c0_i32 = arith.constant 0 : i32
    %c0_i32_0 = arith.constant 0 : i32
    %c0_i32_1 = arith.constant 0 : i32
    return %c0_i32, %c0_i32_0 : i32, i32
  }
  func.func @transform_10(%arg0: i32) -> (i32, i32) {
    %c0_i32 = arith.constant 0 : i32
    %c0_i32_0 = arith.constant 0 : i32
    %c0_i32_1 = arith.constant 0 : i32
    return %c0_i32, %c0_i32_0 : i32, i32
  }
  func.func @transform_11(%arg0: i32) -> (i32, i32) {
    %c0_i32 = arith.constant 0 : i32
    %c0_i32_0 = arith.constant 0 : i32
    %c0_i32_1 = arith.constant 0 : i32
    return %c0_i32, %c0_i32_0 : i32, i32
  }
  func.func @transform_12(%arg0: i32) -> (i32, i32) {
    %c0_i32 = arith.constant 0 : i32
    %c0_i32_0 = arith.constant 0 : i32
    %c0_i32_1 = arith.constant 0 : i32
    return %c0_i32, %c0_i32_0 : i32, i32
  }
  func.func @transform_13(%arg0: i32) -> (i32, i32, i32) {
    %c0_i32 = arith.constant 0 : i32
    %c0_i32_0 = arith.constant 0 : i32
    %c0_i32_1 = arith.constant 0 : i32
    return %arg0, %c0_i32, %c0_i32_0 : i32, i32, i32
  }
}

module attributes {stable_mosaic.version = 11 : i64} {
  func.func @layer_kernel(%arg0: i32, %arg1: memref<1x8x128xf32, #tpu.memory_space<vmem>>, %arg2: memref<1x128xf32, #tpu.memory_space<vmem>>, %arg3: memref<1x128xf32, #tpu.memory_space<vmem>>, %arg4: memref<128x384xbf16, #tpu.memory_space<vmem>>, %arg5: memref<1x384xf32, #tpu.memory_space<vmem>>, %arg6: memref<128x128xbf16, #tpu.memory_space<vmem>>, %arg7: memref<1x128xf32, #tpu.memory_space<vmem>>, %arg8: memref<1x128xf32, #tpu.memory_space<vmem>>, %arg9: memref<1x128xf32, #tpu.memory_space<vmem>>, %arg10: memref<128x512xbf16, #tpu.memory_space<vmem>>, %arg11: memref<1x512xf32, #tpu.memory_space<vmem>>, %arg12: memref<512x128xbf16, #tpu.memory_space<vmem>>, %arg13: memref<1x128xf32, #tpu.memory_space<vmem>>, %arg14: memref<1x8x128xf32, #tpu.memory_space<vmem>>) attributes {dimension_semantics = [#tpu.dimension_semantics<parallel>], iteration_bounds = array<i64: 2>, scalar_prefetch = 0 : i64, scratch_operands = 0 : i64, tpu.core_type = #tpu.core_type<tc>, window_params = [{transform_indices = @transform_0, window_bounds = array<i64: 1, 8, 128>}, {pipeline_mode = #tpu.pipeline_mode<synchronous>, transform_indices = @transform_1, window_bounds = array<i64: 1, 128>}, {pipeline_mode = #tpu.pipeline_mode<synchronous>, transform_indices = @transform_2, window_bounds = array<i64: 1, 128>}, {pipeline_mode = #tpu.pipeline_mode<synchronous>, transform_indices = @transform_3, window_bounds = array<i64: 128, 384>}, {pipeline_mode = #tpu.pipeline_mode<synchronous>, transform_indices = @transform_4, window_bounds = array<i64: 1, 384>}, {pipeline_mode = #tpu.pipeline_mode<synchronous>, transform_indices = @transform_5, window_bounds = array<i64: 128, 128>}, {pipeline_mode = #tpu.pipeline_mode<synchronous>, transform_indices = @transform_6, window_bounds = array<i64: 1, 128>}, {pipeline_mode = #tpu.pipeline_mode<synchronous>, transform_indices = @transform_7, window_bounds = array<i64: 1, 128>}, {pipeline_mode = #tpu.pipeline_mode<synchronous>, transform_indices = @transform_8, window_bounds = array<i64: 1, 128>}, {pipeline_mode = #tpu.pipeline_mode<synchronous>, transform_indices = @transform_9, window_bounds = array<i64: 128, 512>}, {pipeline_mode = #tpu.pipeline_mode<synchronous>, transform_indices = @transform_10, window_bounds = array<i64: 1, 512>}, {pipeline_mode = #tpu.pipeline_mode<synchronous>, transform_indices = @transform_11, window_bounds = array<i64: 512, 128>}, {pipeline_mode = #tpu.pipeline_mode<synchronous>, transform_indices = @transform_12, window_bounds = array<i64: 1, 128>}, {transform_indices = @transform_13, window_bounds = array<i64: 1, 8, 128>}]} {
    %c0 = arith.constant 0 : index
    %c0_0 = arith.constant 0 : index
    %c0_1 = arith.constant 0 : index
    %0 = vector.load %arg1[%c0, %c0_0, %c0_1] : memref<1x8x128xf32, #tpu.memory_space<vmem>>, vector<1x8x128xf32>
    %1 = vector.shape_cast %0 : vector<1x8x128xf32> to vector<8x128xf32>
    %c0_2 = arith.constant 0 : index
    %c0_3 = arith.constant 0 : index
    %2 = vector.load %arg2[%c0_2, %c0_3] : memref<1x128xf32, #tpu.memory_space<vmem>>, vector<1x128xf32>
    %c0_4 = arith.constant 0 : index
    %c0_5 = arith.constant 0 : index
    %3 = vector.load %arg3[%c0_4, %c0_5] : memref<1x128xf32, #tpu.memory_space<vmem>>, vector<1x128xf32>
    %cst = arith.constant dense<0.000000e+00> : vector<8xf32>
    %4 = vector.multi_reduction <add>, %1, %cst [1] : vector<8x128xf32> to vector<8xf32>
    %5 = vector.shape_cast %4 : vector<8xf32> to vector<8x1xf32>
    %cst_6 = arith.constant 1.280000e+02 : f32
    %6 = vector.broadcast %cst_6 : f32 to vector<8x1xf32>
    %7 = arith.divf %5, %6 : vector<8x1xf32>
    %8 = vector.broadcast %7 : vector<8x1xf32> to vector<8x128xf32>
    %9 = arith.subf %1, %8 : vector<8x128xf32>
    %10 = arith.mulf %9, %9 : vector<8x128xf32>
    %cst_7 = arith.constant dense<0.000000e+00> : vector<8xf32>
    %11 = vector.multi_reduction <add>, %10, %cst_7 [1] : vector<8x128xf32> to vector<8xf32>
    %12 = vector.shape_cast %11 : vector<8xf32> to vector<8x1xf32>
    %cst_8 = arith.constant 1.280000e+02 : f32
    %13 = vector.broadcast %cst_8 : f32 to vector<8x1xf32>
    %14 = arith.divf %12, %13 : vector<8x1xf32>
    %15 = vector.broadcast %7 : vector<8x1xf32> to vector<8x128xf32>
    %16 = arith.subf %1, %15 : vector<8x128xf32>
    %cst_9 = arith.constant 9.99999974E-6 : f32
    %17 = vector.broadcast %cst_9 : f32 to vector<8x1xf32>
    %18 = arith.addf %14, %17 : vector<8x1xf32>
    %19 = math.rsqrt %18 : vector<8x1xf32>
    %20 = vector.broadcast %19 : vector<8x1xf32> to vector<8x128xf32>
    %21 = arith.mulf %16, %20 : vector<8x128xf32>
    %22 = vector.broadcast %2 : vector<1x128xf32> to vector<8x128xf32>
    %23 = arith.mulf %21, %22 : vector<8x128xf32>
    %24 = vector.broadcast %3 : vector<1x128xf32> to vector<8x128xf32>
    %25 = arith.addf %23, %24 : vector<8x128xf32>
    %26 = arith.truncf %25 : vector<8x128xf32> to vector<8x128xbf16>
    %c0_10 = arith.constant 0 : index
    %c0_11 = arith.constant 0 : index
    %27 = vector.load %arg4[%c0_10, %c0_11] : memref<128x384xbf16, #tpu.memory_space<vmem>>, vector<128x384xbf16>
    %cst_12 = arith.constant dense<0.000000e+00> : vector<8x384xf32>
    %28 = tpu.matmul %26, %27, %cst_12 {dimension_numbers = #tpu.dot_dimension_numbers<[1], [0], [0], [1], [0, 0, 1, 1], [], []>} : vector<8x128xbf16>, vector<128x384xbf16>, vector<8x384xf32> -> vector<8x384xf32>
    %c0_13 = arith.constant 0 : index
    %c0_14 = arith.constant 0 : index
    %29 = vector.load %arg5[%c0_13, %c0_14] : memref<1x384xf32, #tpu.memory_space<vmem>>, vector<1x384xf32>
    %30 = vector.broadcast %29 : vector<1x384xf32> to vector<8x384xf32>
    %31 = arith.addf %28, %30 : vector<8x384xf32>
    %32 = vector.extract_strided_slice %31 {offsets = [0, 0], sizes = [8, 128], strides = [1, 1]} : vector<8x384xf32> to vector<8x128xf32>
    %33 = vector.extract_strided_slice %31 {offsets = [0, 128], sizes = [8, 128], strides = [1, 1]} : vector<8x384xf32> to vector<8x128xf32>
    %34 = vector.extract_strided_slice %31 {offsets = [0, 256], sizes = [8, 128], strides = [1, 1]} : vector<8x384xf32> to vector<8x128xf32>
    %35 = tpu.iota {dimensions = array<i32: 0>} : vector<8x8xi32>
    %36 = tpu.iota {dimensions = array<i32: 1>} : vector<8x8xi32>
    %37 = arith.cmpi sle, %36, %35 : vector<8x8xi32>
    %38 = vector.extract_strided_slice %32 {offsets = [0, 0], sizes = [8, 32], strides = [1, 1]} : vector<8x128xf32> to vector<8x32xf32>
    %39 = arith.truncf %38 : vector<8x32xf32> to vector<8x32xbf16>
    %40 = vector.extract_strided_slice %33 {offsets = [0, 0], sizes = [8, 32], strides = [1, 1]} : vector<8x128xf32> to vector<8x32xf32>
    %41 = arith.truncf %40 : vector<8x32xf32> to vector<8x32xbf16>
    %42 = vector.extract_strided_slice %34 {offsets = [0, 0], sizes = [8, 32], strides = [1, 1]} : vector<8x128xf32> to vector<8x32xf32>
    %43 = arith.truncf %42 : vector<8x32xf32> to vector<8x32xbf16>
    %44 = tpu.transpose %41, [1, 0] : vector<8x32xbf16> -> vector<32x8xbf16>
    %cst_15 = arith.constant dense<0.000000e+00> : vector<8x8xf32>
    %45 = tpu.matmul %39, %44, %cst_15 {dimension_numbers = #tpu.dot_dimension_numbers<[1], [0], [0], [1], [0, 0, 1, 1], [], []>} : vector<8x32xbf16>, vector<32x8xbf16>, vector<8x8xf32> -> vector<8x8xf32>
    %cst_16 = arith.constant 0.176776692 : f32
    %46 = vector.broadcast %cst_16 : f32 to vector<8x8xf32>
    %47 = arith.mulf %45, %46 : vector<8x8xf32>
    %cst_17 = arith.constant -1.000000e+30 : f32
    %48 = vector.broadcast %cst_17 : f32 to vector<8x8xf32>
    %49 = arith.select %37, %47, %48 : vector<8x8xi1>, vector<8x8xf32>
    %cst_18 = arith.constant dense<0xFF800000> : vector<8xf32>
    %50 = vector.multi_reduction <maximumf>, %49, %cst_18 [1] : vector<8x8xf32> to vector<8xf32>
    %51 = vector.shape_cast %50 : vector<8xf32> to vector<8x1xf32>
    %52 = vector.broadcast %51 : vector<8x1xf32> to vector<8x8xf32>
    %53 = arith.subf %49, %52 : vector<8x8xf32>
    %54 = math.exp %53 : vector<8x8xf32>
    %cst_19 = arith.constant dense<0.000000e+00> : vector<8xf32>
    %55 = vector.multi_reduction <add>, %54, %cst_19 [1] : vector<8x8xf32> to vector<8xf32>
    %56 = vector.shape_cast %55 : vector<8xf32> to vector<8x1xf32>
    %57 = tpu.reciprocal %56 {approx = true} : vector<8x1xf32> -> vector<8x1xf32>
    %58 = vector.broadcast %57 : vector<8x1xf32> to vector<8x8xf32>
    %59 = arith.mulf %54, %58 : vector<8x8xf32>
    %60 = arith.truncf %59 : vector<8x8xf32> to vector<8x8xbf16>
    %cst_20 = arith.constant dense<0.000000e+00> : vector<8x32xf32>
    %61 = tpu.matmul %60, %43, %cst_20 {dimension_numbers = #tpu.dot_dimension_numbers<[1], [0], [0], [1], [0, 0, 1, 1], [], []>} : vector<8x8xbf16>, vector<8x32xbf16>, vector<8x32xf32> -> vector<8x32xf32>
    %62 = vector.extract_strided_slice %32 {offsets = [0, 32], sizes = [8, 32], strides = [1, 1]} : vector<8x128xf32> to vector<8x32xf32>
    %63 = arith.truncf %62 : vector<8x32xf32> to vector<8x32xbf16>
    %64 = vector.extract_strided_slice %33 {offsets = [0, 32], sizes = [8, 32], strides = [1, 1]} : vector<8x128xf32> to vector<8x32xf32>
    %65 = arith.truncf %64 : vector<8x32xf32> to vector<8x32xbf16>
    %66 = vector.extract_strided_slice %34 {offsets = [0, 32], sizes = [8, 32], strides = [1, 1]} : vector<8x128xf32> to vector<8x32xf32>
    %67 = arith.truncf %66 : vector<8x32xf32> to vector<8x32xbf16>
    %68 = tpu.transpose %65, [1, 0] : vector<8x32xbf16> -> vector<32x8xbf16>
    %cst_21 = arith.constant dense<0.000000e+00> : vector<8x8xf32>
    %69 = tpu.matmul %63, %68, %cst_21 {dimension_numbers = #tpu.dot_dimension_numbers<[1], [0], [0], [1], [0, 0, 1, 1], [], []>} : vector<8x32xbf16>, vector<32x8xbf16>, vector<8x8xf32> -> vector<8x8xf32>
    %cst_22 = arith.constant 0.176776692 : f32
    %70 = vector.broadcast %cst_22 : f32 to vector<8x8xf32>
    %71 = arith.mulf %69, %70 : vector<8x8xf32>
    %cst_23 = arith.constant -1.000000e+30 : f32
    %72 = vector.broadcast %cst_23 : f32 to vector<8x8xf32>
    %73 = arith.select %37, %71, %72 : vector<8x8xi1>, vector<8x8xf32>
    %cst_24 = arith.constant dense<0xFF800000> : vector<8xf32>
    %74 = vector.multi_reduction <maximumf>, %73, %cst_24 [1] : vector<8x8xf32> to vector<8xf32>
    %75 = vector.shape_cast %74 : vector<8xf32> to vector<8x1xf32>
    %76 = vector.broadcast %75 : vector<8x1xf32> to vector<8x8xf32>
    %77 = arith.subf %73, %76 : vector<8x8xf32>
    %78 = math.exp %77 : vector<8x8xf32>
    %cst_25 = arith.constant dense<0.000000e+00> : vector<8xf32>
    %79 = vector.multi_reduction <add>, %78, %cst_25 [1] : vector<8x8xf32> to vector<8xf32>
    %80 = vector.shape_cast %79 : vector<8xf32> to vector<8x1xf32>
    %81 = tpu.reciprocal %80 {approx = true} : vector<8x1xf32> -> vector<8x1xf32>
    %82 = vector.broadcast %81 : vector<8x1xf32> to vector<8x8xf32>
    %83 = arith.mulf %78, %82 : vector<8x8xf32>
    %84 = arith.truncf %83 : vector<8x8xf32> to vector<8x8xbf16>
    %cst_26 = arith.constant dense<0.000000e+00> : vector<8x32xf32>
    %85 = tpu.matmul %84, %67, %cst_26 {dimension_numbers = #tpu.dot_dimension_numbers<[1], [0], [0], [1], [0, 0, 1, 1], [], []>} : vector<8x8xbf16>, vector<8x32xbf16>, vector<8x32xf32> -> vector<8x32xf32>
    %86 = vector.extract_strided_slice %32 {offsets = [0, 64], sizes = [8, 32], strides = [1, 1]} : vector<8x128xf32> to vector<8x32xf32>
    %87 = arith.truncf %86 : vector<8x32xf32> to vector<8x32xbf16>
    %88 = vector.extract_strided_slice %33 {offsets = [0, 64], sizes = [8, 32], strides = [1, 1]} : vector<8x128xf32> to vector<8x32xf32>
    %89 = arith.truncf %88 : vector<8x32xf32> to vector<8x32xbf16>
    %90 = vector.extract_strided_slice %34 {offsets = [0, 64], sizes = [8, 32], strides = [1, 1]} : vector<8x128xf32> to vector<8x32xf32>
    %91 = arith.truncf %90 : vector<8x32xf32> to vector<8x32xbf16>
    %92 = tpu.transpose %89, [1, 0] : vector<8x32xbf16> -> vector<32x8xbf16>
    %cst_27 = arith.constant dense<0.000000e+00> : vector<8x8xf32>
    %93 = tpu.matmul %87, %92, %cst_27 {dimension_numbers = #tpu.dot_dimension_numbers<[1], [0], [0], [1], [0, 0, 1, 1], [], []>} : vector<8x32xbf16>, vector<32x8xbf16>, vector<8x8xf32> -> vector<8x8xf32>
    %cst_28 = arith.constant 0.176776692 : f32
    %94 = vector.broadcast %cst_28 : f32 to vector<8x8xf32>
    %95 = arith.mulf %93, %94 : vector<8x8xf32>
    %cst_29 = arith.constant -1.000000e+30 : f32
    %96 = vector.broadcast %cst_29 : f32 to vector<8x8xf32>
    %97 = arith.select %37, %95, %96 : vector<8x8xi1>, vector<8x8xf32>
    %cst_30 = arith.constant dense<0xFF800000> : vector<8xf32>
    %98 = vector.multi_reduction <maximumf>, %97, %cst_30 [1] : vector<8x8xf32> to vector<8xf32>
    %99 = vector.shape_cast %98 : vector<8xf32> to vector<8x1xf32>
    %100 = vector.broadcast %99 : vector<8x1xf32> to vector<8x8xf32>
    %101 = arith.subf %97, %100 : vector<8x8xf32>
    %102 = math.exp %101 : vector<8x8xf32>
    %cst_31 = arith.constant dense<0.000000e+00> : vector<8xf32>
    %103 = vector.multi_reduction <add>, %102, %cst_31 [1] : vector<8x8xf32> to vector<8xf32>
    %104 = vector.shape_cast %103 : vector<8xf32> to vector<8x1xf32>
    %105 = tpu.reciprocal %104 {approx = true} : vector<8x1xf32> -> vector<8x1xf32>
    %106 = vector.broadcast %105 : vector<8x1xf32> to vector<8x8xf32>
    %107 = arith.mulf %102, %106 : vector<8x8xf32>
    %108 = arith.truncf %107 : vector<8x8xf32> to vector<8x8xbf16>
    %cst_32 = arith.constant dense<0.000000e+00> : vector<8x32xf32>
    %109 = tpu.matmul %108, %91, %cst_32 {dimension_numbers = #tpu.dot_dimension_numbers<[1], [0], [0], [1], [0, 0, 1, 1], [], []>} : vector<8x8xbf16>, vector<8x32xbf16>, vector<8x32xf32> -> vector<8x32xf32>
    %110 = vector.extract_strided_slice %32 {offsets = [0, 96], sizes = [8, 32], strides = [1, 1]} : vector<8x128xf32> to vector<8x32xf32>
    %111 = arith.truncf %110 : vector<8x32xf32> to vector<8x32xbf16>
    %112 = vector.extract_strided_slice %33 {offsets = [0, 96], sizes = [8, 32], strides = [1, 1]} : vector<8x128xf32> to vector<8x32xf32>
    %113 = arith.truncf %112 : vector<8x32xf32> to vector<8x32xbf16>
    %114 = vector.extract_strided_slice %34 {offsets = [0, 96], sizes = [8, 32], strides = [1, 1]} : vector<8x128xf32> to vector<8x32xf32>
    %115 = arith.truncf %114 : vector<8x32xf32> to vector<8x32xbf16>
    %116 = tpu.transpose %113, [1, 0] : vector<8x32xbf16> -> vector<32x8xbf16>
    %cst_33 = arith.constant dense<0.000000e+00> : vector<8x8xf32>
    %117 = tpu.matmul %111, %116, %cst_33 {dimension_numbers = #tpu.dot_dimension_numbers<[1], [0], [0], [1], [0, 0, 1, 1], [], []>} : vector<8x32xbf16>, vector<32x8xbf16>, vector<8x8xf32> -> vector<8x8xf32>
    %cst_34 = arith.constant 0.176776692 : f32
    %118 = vector.broadcast %cst_34 : f32 to vector<8x8xf32>
    %119 = arith.mulf %117, %118 : vector<8x8xf32>
    %cst_35 = arith.constant -1.000000e+30 : f32
    %120 = vector.broadcast %cst_35 : f32 to vector<8x8xf32>
    %121 = arith.select %37, %119, %120 : vector<8x8xi1>, vector<8x8xf32>
    %cst_36 = arith.constant dense<0xFF800000> : vector<8xf32>
    %122 = vector.multi_reduction <maximumf>, %121, %cst_36 [1] : vector<8x8xf32> to vector<8xf32>
    %123 = vector.shape_cast %122 : vector<8xf32> to vector<8x1xf32>
    %124 = vector.broadcast %123 : vector<8x1xf32> to vector<8x8xf32>
    %125 = arith.subf %121, %124 : vector<8x8xf32>
    %126 = math.exp %125 : vector<8x8xf32>
    %cst_37 = arith.constant dense<0.000000e+00> : vector<8xf32>
    %127 = vector.multi_reduction <add>, %126, %cst_37 [1] : vector<8x8xf32> to vector<8xf32>
    %128 = vector.shape_cast %127 : vector<8xf32> to vector<8x1xf32>
    %129 = tpu.reciprocal %128 {approx = true} : vector<8x1xf32> -> vector<8x1xf32>
    %130 = vector.broadcast %129 : vector<8x1xf32> to vector<8x8xf32>
    %131 = arith.mulf %126, %130 : vector<8x8xf32>
    %132 = arith.truncf %131 : vector<8x8xf32> to vector<8x8xbf16>
    %cst_38 = arith.constant dense<0.000000e+00> : vector<8x32xf32>
    %133 = tpu.matmul %132, %115, %cst_38 {dimension_numbers = #tpu.dot_dimension_numbers<[1], [0], [0], [1], [0, 0, 1, 1], [], []>} : vector<8x8xbf16>, vector<8x32xbf16>, vector<8x32xf32> -> vector<8x32xf32>
    %134 = tpu.concatenate %61, %85, %109, %133 in 1 : vector<8x32xf32>, vector<8x32xf32>, vector<8x32xf32>, vector<8x32xf32> -> vector<8x128xf32>
    %135 = arith.truncf %134 : vector<8x128xf32> to vector<8x128xbf16>
    %c0_39 = arith.constant 0 : index
    %c0_40 = arith.constant 0 : index
    %136 = vector.load %arg6[%c0_39, %c0_40] : memref<128x128xbf16, #tpu.memory_space<vmem>>, vector<128x128xbf16>
    %cst_41 = arith.constant dense<0.000000e+00> : vector<8x128xf32>
    %137 = tpu.matmul %135, %136, %cst_41 {dimension_numbers = #tpu.dot_dimension_numbers<[1], [0], [0], [1], [0, 0, 1, 1], [], []>} : vector<8x128xbf16>, vector<128x128xbf16>, vector<8x128xf32> -> vector<8x128xf32>
    %c0_42 = arith.constant 0 : index
    %c0_43 = arith.constant 0 : index
    %138 = vector.load %arg7[%c0_42, %c0_43] : memref<1x128xf32, #tpu.memory_space<vmem>>, vector<1x128xf32>
    %139 = vector.broadcast %138 : vector<1x128xf32> to vector<8x128xf32>
    %140 = arith.addf %137, %139 : vector<8x128xf32>
    %141 = arith.addf %1, %140 : vector<8x128xf32>
    %c0_44 = arith.constant 0 : index
    %c0_45 = arith.constant 0 : index
    %142 = vector.load %arg8[%c0_44, %c0_45] : memref<1x128xf32, #tpu.memory_space<vmem>>, vector<1x128xf32>
    %c0_46 = arith.constant 0 : index
    %c0_47 = arith.constant 0 : index
    %143 = vector.load %arg9[%c0_46, %c0_47] : memref<1x128xf32, #tpu.memory_space<vmem>>, vector<1x128xf32>
    %cst_48 = arith.constant dense<0.000000e+00> : vector<8xf32>
    %144 = vector.multi_reduction <add>, %141, %cst_48 [1] : vector<8x128xf32> to vector<8xf32>
    %145 = vector.shape_cast %144 : vector<8xf32> to vector<8x1xf32>
    %cst_49 = arith.constant 1.280000e+02 : f32
    %146 = vector.broadcast %cst_49 : f32 to vector<8x1xf32>
    %147 = arith.divf %145, %146 : vector<8x1xf32>
    %148 = vector.broadcast %147 : vector<8x1xf32> to vector<8x128xf32>
    %149 = arith.subf %141, %148 : vector<8x128xf32>
    %150 = arith.mulf %149, %149 : vector<8x128xf32>
    %cst_50 = arith.constant dense<0.000000e+00> : vector<8xf32>
    %151 = vector.multi_reduction <add>, %150, %cst_50 [1] : vector<8x128xf32> to vector<8xf32>
    %152 = vector.shape_cast %151 : vector<8xf32> to vector<8x1xf32>
    %cst_51 = arith.constant 1.280000e+02 : f32
    %153 = vector.broadcast %cst_51 : f32 to vector<8x1xf32>
    %154 = arith.divf %152, %153 : vector<8x1xf32>
    %155 = vector.broadcast %147 : vector<8x1xf32> to vector<8x128xf32>
    %156 = arith.subf %141, %155 : vector<8x128xf32>
    %cst_52 = arith.constant 9.99999974E-6 : f32
    %157 = vector.broadcast %cst_52 : f32 to vector<8x1xf32>
    %158 = arith.addf %154, %157 : vector<8x1xf32>
    %159 = math.rsqrt %158 : vector<8x1xf32>
    %160 = vector.broadcast %159 : vector<8x1xf32> to vector<8x128xf32>
    %161 = arith.mulf %156, %160 : vector<8x128xf32>
    %162 = vector.broadcast %142 : vector<1x128xf32> to vector<8x128xf32>
    %163 = arith.mulf %161, %162 : vector<8x128xf32>
    %164 = vector.broadcast %143 : vector<1x128xf32> to vector<8x128xf32>
    %165 = arith.addf %163, %164 : vector<8x128xf32>
    %166 = arith.truncf %165 : vector<8x128xf32> to vector<8x128xbf16>
    %c0_53 = arith.constant 0 : index
    %c0_54 = arith.constant 0 : index
    %167 = vector.load %arg10[%c0_53, %c0_54] : memref<128x512xbf16, #tpu.memory_space<vmem>>, vector<128x512xbf16>
    %cst_55 = arith.constant dense<0.000000e+00> : vector<8x512xf32>
    %168 = tpu.matmul %166, %167, %cst_55 {dimension_numbers = #tpu.dot_dimension_numbers<[1], [0], [0], [1], [0, 0, 1, 1], [], []>} : vector<8x128xbf16>, vector<128x512xbf16>, vector<8x512xf32> -> vector<8x512xf32>
    %c0_56 = arith.constant 0 : index
    %c0_57 = arith.constant 0 : index
    %169 = vector.load %arg11[%c0_56, %c0_57] : memref<1x512xf32, #tpu.memory_space<vmem>>, vector<1x512xf32>
    %170 = vector.broadcast %169 : vector<1x512xf32> to vector<8x512xf32>
    %171 = arith.addf %168, %170 : vector<8x512xf32>
    %172 = arith.mulf %171, %171 : vector<8x512xf32>
    %173 = arith.mulf %171, %172 : vector<8x512xf32>
    %cst_58 = arith.constant 4.471500e-02 : f32
    %174 = vector.broadcast %cst_58 : f32 to vector<8x512xf32>
    %175 = arith.mulf %174, %173 : vector<8x512xf32>
    %176 = arith.addf %171, %175 : vector<8x512xf32>
    %cst_59 = arith.constant 0.797884583 : f32
    %177 = vector.broadcast %cst_59 : f32 to vector<8x512xf32>
    %178 = arith.mulf %177, %176 : vector<8x512xf32>
    %179 = math.tanh %178 : vector<8x512xf32>
    %cst_60 = arith.constant 1.000000e+00 : f32
    %180 = vector.broadcast %cst_60 : f32 to vector<8x512xf32>
    %181 = arith.addf %180, %179 : vector<8x512xf32>
    %cst_61 = arith.constant 5.000000e-01 : f32
    %182 = vector.broadcast %cst_61 : f32 to vector<8x512xf32>
    %183 = arith.mulf %182, %181 : vector<8x512xf32>
    %184 = arith.mulf %171, %183 : vector<8x512xf32>
    %185 = arith.truncf %184 : vector<8x512xf32> to vector<8x512xbf16>
    %c0_62 = arith.constant 0 : index
    %c0_63 = arith.constant 0 : index
    %186 = vector.load %arg12[%c0_62, %c0_63] : memref<512x128xbf16, #tpu.memory_space<vmem>>, vector<512x128xbf16>
    %cst_64 = arith.constant dense<0.000000e+00> : vector<8x128xf32>
    %187 = tpu.matmul %185, %186, %cst_64 {dimension_numbers = #tpu.dot_dimension_numbers<[1], [0], [0], [1], [0, 0, 1, 1], [], []>} : vector<8x512xbf16>, vector<512x128xbf16>, vector<8x128xf32> -> vector<8x128xf32>
    %c0_65 = arith.constant 0 : index
    %c0_66 = arith.constant 0 : index
    %188 = vector.load %arg13[%c0_65, %c0_66] : memref<1x128xf32, #tpu.memory_space<vmem>>, vector<1x128xf32>
    %189 = vector.broadcast %188 : vector<1x128xf32> to vector<8x128xf32>
    %190 = arith.addf %187, %189 : vector<8x128xf32>
    %191 = arith.addf %141, %190 : vector<8x128xf32>
    %c0_67 = arith.constant 0 : index
    %c0_68 = arith.constant 0 : index
    %c0_69 = arith.constant 0 : index
    %192 = vector.load %arg14[%c0_67, %c0_68, %c0_69] : memref<1x8x128xf32, #tpu.memory_space<vmem>>, vector<1x8x128xf32>
    %193 = vector.shape_cast %192 : vector<1x8x128xf32> to vector<8x128xf32>
    %194 = vector.shape_cast %191 : vector<8x128xf32> to vector<1x8x128xf32>
    tpu.vector_store %arg14[%c0_67, %c0_68, %c0_69], %194 {strides = array<i32>} : memref<1x8x128xf32, #tpu.memory_space<vmem>>, vector<1x8x128xf32>,
    return
  }
  func.func @transform_0(%arg0: i32) -> (i32, i32, i32) {
    %c0_i32 = arith.constant 0 : i32
    %c0_i32_0 = arith.constant 0 : i32
    %c0_i32_1 = arith.constant 0 : i32
    return %arg0, %c0_i32, %c0_i32_0 : i32, i32, i32
  }
  func.func @transform_1(%arg0: i32) -> (i32, i32) {
    %c0_i32 = arith.constant 0 : i32
    %c0_i32_0 = arith.constant 0 : i32
    %c0_i32_1 = arith.constant 0 : i32
    return %c0_i32, %c0_i32_0 : i32, i32
  }
  func.func @transform_2(%arg0: i32) -> (i32, i32) {
    %c0_i32 = arith.constant 0 : i32
    %c0_i32_0 = arith.constant 0 : i32
    %c0_i32_1 = arith.constant 0 : i32
    return %c0_i32, %c0_i32_0 : i32, i32
  }
  func.func @transform_3(%arg0: i32) -> (i32, i32) {
    %c0_i32 = arith.constant 0 : i32
    %c0_i32_0 = arith.constant 0 : i32
    %c0_i32_1 = arith.constant 0 : i32
    return %c0_i32, %c0_i32_0 : i32, i32
  }
  func.func @transform_4(%arg0: i32) -> (i32, i32) {
    %c0_i32 = arith.constant 0 : i32
    %c0_i32_0 = arith.constant 0 : i32
    %c0_i32_1 = arith.constant 0 : i32
    return %c0_i32, %c0_i32_0 : i32, i32
  }
  func.func @transform_5(%arg0: i32) -> (i32, i32) {
    %c0_i32 = arith.constant 0 : i32
    %c0_i32_0 = arith.constant 0 : i32
    %c0_i32_1 = arith.constant 0 : i32
    return %c0_i32, %c0_i32_0 : i32, i32
  }
  func.func @transform_6(%arg0: i32) -> (i32, i32) {
    %c0_i32 = arith.constant 0 : i32
    %c0_i32_0 = arith.constant 0 : i32
    %c0_i32_1 = arith.constant 0 : i32
    return %c0_i32, %c0_i32_0 : i32, i32
  }
  func.func @transform_7(%arg0: i32) -> (i32, i32) {
    %c0_i32 = arith.constant 0 : i32
    %c0_i32_0 = arith.constant 0 : i32
    %c0_i32_1 = arith.constant 0 : i32
    return %c0_i32, %c0_i32_0 : i32, i32
  }
  func.func @transform_8(%arg0: i32) -> (i32, i32) {
    %c0_i32 = arith.constant 0 : i32
    %c0_i32_0 = arith.constant 0 : i32
    %c0_i32_1 = arith.constant 0 : i32
    return %c0_i32, %c0_i32_0 : i32, i32
  }
  func.func @transform_9(%arg0: i32) -> (i32, i32) {
    %c0_i32 = arith.constant 0 : i32
    %c0_i32_0 = arith.constant 0 : i32
    %c0_i32_1 = arith.constant 0 : i32
    return %c0_i32, %c0_i32_0 : i32, i32
  }
  func.func @transform_10(%arg0: i32) -> (i32, i32) {
    %c0_i32 = arith.constant 0 : i32
    %c0_i32_0 = arith.constant 0 : i32
    %c0_i32_1 = arith.constant 0 : i32
    return %c0_i32, %c0_i32_0 : i32, i32
  }
  func.func @transform_11(%arg0: i32) -> (i32, i32) {
    %c0_i32 = arith.constant 0 : i32
    %c0_i32_0 = arith.constant 0 : i32
    %c0_i32_1 = arith.constant 0 : i32
    return %c0_i32, %c0_i32_0 : i32, i32
  }
  func.func @transform_12(%arg0: i32) -> (i32, i32) {
    %c0_i32 = arith.constant 0 : i32
    %c0_i32_0 = arith.constant 0 : i32
    %c0_i32_1 = arith.constant 0 : i32
    return %c0_i32, %c0_i32_0 : i32, i32
  }
  func.func @transform_13(%arg0: i32) -> (i32, i32, i32) {
    %c0_i32 = arith.constant 0 : i32
    %c0_i32_0 = arith.constant 0 : i32
    %c0_i32_1 = arith.constant 0 : i32
    return %arg0, %c0_i32, %c0_i32_0 : i32, i32, i32
  }
}

</mosaic_0001>

<bundles_post_ra>
// kernel: forward.5
= control target key start
LH: loop header
LB: loop body
LE: loop exit
PB: predicated region body
PF: predicated region fallthrough
CT: control target
= control target key end

     0   :  { %s420_s0 = inlined_call_operand.vmem [shape: f32[16,128], index: 0, kind: input, shape index: {}]   ;;  %s421_s1 = inlined_call_operand.vmem [shape: f32[1,128], index: 1, kind: input, shape index: {}]   ;;  %s422_s2 = inlined_call_operand.vmem [shape: f32[1,128], index: 2, kind: input, shape index: {}]   ;;  %s423_s3 = inlined_call_operand.vmem [shape: bf16[128,256], index: 3, kind: input, shape index: {}]   ;;  %s424_s4 = inlined_call_operand.vmem [shape: f32[1,256], index: 4, kind: input, shape index: {}]   ;;  %s425_s5 = inlined_call_operand.hbm [shape: f32[16,256], index: 5, kind: output, shape index: {}]  }
   0x1   :  { %v22_v0 = vld [vmem:[%s420_s0] sm:$0xff]  ;;  %v23_v1 = vld [vmem:[%s420_s0 + $0x8] sm:$0xff] }
   0x2   :  { %26 = vadd.xlane.f32.xlu0 %v22_v0 }
   0x6   :  { %28 = vadd.xlane.f32.xlu0 %v23_v1 }
   0x7   :  { %10 = vsyncpa [#allocation3], 0  ;;  %v259_v2 = vld [vmem:[%s423_s3 + $0x4] ss:$8 sps:$4 sm:$0xff]   ;;  %v261_v3 = vld [vmem:[%s423_s3] ss:$8 sps:$4 sm:$0xff]   ;;  %v84_v44 = vlaneseq }
   0x8   :  { %v262_v4 = vld [vmem:[%s423_s3 + $0x14] ss:$8 sps:$4 sm:$0xff]   ;;  %174 = vmatprep.subr.bf16.mxu0 %v259_v2  ;;  %v264_v13 = vld [vmem:[%s423_s3 + $0x10] ss:$8 sps:$4 sm:$0xff]   ;;  %v265_v14 = vld [vmem:[%s423_s3 + $0x24] ss:$8 sps:$4 sm:$0xff]  }
   0x9   :  { %175 = vmatpush1.bf16.msra.mxu0 %v261_v3  ;;  %v267_v15 = vld [vmem:[%s423_s3 + $0x20] ss:$8 sps:$4 sm:$0xff]   ;;  %v268_v16 = vld [vmem:[%s423_s3 + $0x34] ss:$8 sps:$4 sm:$0xff]   ;;  %v270_v17 = vld [vmem:[%s423_s3 + $0x30] ss:$8 sps:$4 sm:$0xff]  }
   0xa   :  { %176 = vmatprep.subr.bf16.mxu0 %v262_v4  ;;  %v271_v18 = vld [vmem:[%s423_s3 + $0x44] ss:$8 sps:$4 sm:$0xff]   ;;  %v273_v19 = vld [vmem:[%s423_s3 + $0x40] ss:$8 sps:$4 sm:$0xff]   ;;  %v274_v20 = vld [vmem:[%s423_s3 + $0x54] ss:$8 sps:$4 sm:$0xff]  }
   0xb   :  { %v311_v21 = vmov 0   ;;  %v276_v22 = vld [vmem:[%s423_s3 + $0x50] ss:$8 sps:$4 sm:$0xff]   ;;  %v277_v23 = vld [vmem:[%s423_s3 + $0x64] ss:$8 sps:$4 sm:$0xff]   ;;  %v85_v45 = vshrl.u32 %v84_v44, 7 }
   0xc   :  { %206 = vmatprep.mubr.bf16.mxu0 %v311_v21  ;;  %v279_v24 = vld [vmem:[%s423_s3 + $0x60] ss:$8 sps:$4 sm:$0xff]   ;;  %v280_v25 = vld [vmem:[%s423_s3 + $0x74] ss:$8 sps:$4 sm:$0xff]   ;;  %v282_v26 = vld [vmem:[%s423_s3 + $0x70] ss:$8 sps:$4 sm:$0xff]  }
   0xd   :  { %177 = vmatpush1.bf16.msra.mxu0 %v264_v13  ;;  %v237_v35 = vld [vmem:[%s421_s1] ss:$0 sm:$0xff]  ;;  %v86_v46 = vsub.s32 0, %v85_v45  ;;  %v90_v48 = vsub.s32 1, %v85_v45  ;;  %s312_s1 = smov [#allocation2]  }
   0xe   :  { %178 = vmatprep.subr.bf16.mxu0 %v265_v14  ;;  %v238_v39 = vld [vmem:[%s422_s2] ss:$0 sm:$0xff]  ;;  %s226_s7 = sshll.u32 %s312_s1, 4  ;;  %s227_s7 = int_to_ptr.vmem [resolvable:$true] %s226_s7 }
   0xf   :  { %v82_v47 = vld [vmem:[%s424_s4] sm:$0x3]  ;;  %s287_s2 = scalar_lea.vmem %s227_s7, 512  ;;  %p292_p1 = scmp.lt.s32.totalorder %s227_s7, %s227_s7 }
  0x10   :  { %v87_v49 = vrot.slane %v82_v47, %v86_v46  ;;  %v91_v50 = vrot.slane %v82_v47, %v90_v48  ;;  %p288_p0 = scmp.ne.s32.totalorder %s227_s7, %s287_s2  ;;  %p293_p2 = scmp.lt.s32.totalorder %s287_s2, %s287_s2 }
  0x11   :  { %179 = vmatpush1.bf16.msra.mxu0 %v267_v15 }
  0x12   :  { %180 = vmatprep.subr.bf16.mxu0 %v268_v16  ;;  %p294_p3 = por %p293_p2, %p292_p1 }
  0x14   :  { %p295_p4 = pnand %p294_p3, %p288_p0 }
  0x15   :  { %181 = vmatpush1.bf16.msra.mxu0 %v270_v17 }
  0x16   :  { %182 = vmatprep.subr.bf16.mxu0 %v271_v18 }
  0x19   :  { %183 = vmatpush1.bf16.msra.mxu0 %v273_v19 }
  0x1a   :  { %184 = vmatprep.subr.bf16.mxu0 %v274_v20 }
  0x1d   :  { %185 = vmatpush1.bf16.msra.mxu0 %v276_v22 }
  0x1e   :  { %186 = vmatprep.subr.bf16.mxu0 %v277_v23 }
  0x21   :  { %187 = vmatpush1.bf16.msra.mxu0 %v279_v24 }
  0x22   :  { %188 = vmatprep.subr.bf16.mxu0 %v280_v25 }
  0x25   :  { %189 = vmatpush1.bf16.msra.mxu0 %v282_v26 }
  0x8f   :  { %v27_v5 = vpop.xlane.xlu0 %26 }
  0x90   :  { %v31_v6 = vmul.f32 0.0078125, %v27_v5 }
  0x92   :  { %v33_v7 = vsub.f32 %v22_v0, %v31_v6 }
  0x93   :  { %v29_v8 = vpop.xlane.xlu0 %28 }
  0x94   :  { %v32_v9 = vmul.f32 0.0078125, %v29_v8  ;;  %v35_v10 = vmul.f32 %v33_v7, %v33_v7 }
  0x96   :  { %v34_v11 = vsub.f32 %v23_v1, %v32_v9  ;;  %37 = vadd.xlane.f32.xlu1 %v35_v10 }
  0x98   :  { %v36_v12 = vmul.f32 %v34_v11, %v34_v11 }
  0x9a   :  { %39 = vadd.xlane.f32.xlu1 %v36_v12 }
 0x123   :  { %v38_v27 = vpop.xlane.xlu1 %37 }
 0x124   :  { %v41_v28 = vmul.f32 0.0078125, %v38_v27 }
 0x126   :  { %v43_v29 = vadd.f32 1e-05, %v41_v28 }
 0x127   :  { %v40_v30 = vpop.xlane.xlu1 %39 }
 0x128   :  { %283 = vrsqrt.f32 %v43_v29  ;;  %v42_v31 = vmul.f32 0.0078125, %v40_v30 }
 0x12a   :  { %v44_v32 = vadd.f32 1e-05, %v42_v31 }
 0x12c   :  { %285 = vrsqrt.f32 %v44_v32 }
 0x132   :  { %v284_v33 = vpop.eup %283 }
 0x133   :  { %v47_v34 = vmul.f32 %v284_v33, %v33_v7 }
 0x135   :  { %v55_v38 = vmul.f32 %v237_v35, %v47_v34 }
 0x136   :  { %v286_v36 = vpop.eup %285 }
 0x137   :  { %v48_v37 = vmul.f32 %v286_v36, %v34_v11  ;;  %v63_v41 = vadd.f32 %v238_v39, %v55_v38 }
 0x139   :  { %v56_v40 = vmul.f32 %v237_v35, %v48_v37 }
 0x13b   :  { %v64_v42 = vadd.f32 %v238_v39, %v56_v40 }
 0x13d   :  { %v65_v43 = vpack.c.bf16 %v64_v42, %v63_v41 }
 0x13f   :  { %207 = vmatmul.mubr.bf16.vlgmr.msra.gmra.mrb[0].mxu0 %v65_v43 }
 0x212   :  { %v208_v51 = vpop.f32.mrb[0].mxu0 }
 0x213   :  { %v209_v52 = vadd.f32 %v208_v51, %v87_v49  ;;  %v210_v53 = vpop.f32.mrb[1].mxu0 }
 0x214   :  { %v211_v54 = vadd.f32 %v210_v53, %v91_v50  ;;  %v212_v55 = vpop.f32.mrb[2].mxu0 }
 0x215   :  { %217 = vst [vmem:[#allocation2] sm:$0xff] %v209_v52  ;;  %v213_v56 = vadd.f32 %v212_v55, %v87_v49  ;;  %v214_v57 = vpop.f32.mrb[3].mxu0 }
 0x216   :  { %218 = vst [vmem:[#allocation2 + $0x8] sm:$0xff] %v211_v54  ;;  %v215_v58 = vadd.f32 %v214_v57, %v91_v50 }
 0x217   :  { %219 = vst [vmem:[#allocation2 + $0x10] sm:$0xff] %v213_v56 }
 0x218   :  { %220 = vst [vmem:[#allocation2 + $0x18] sm:$0xff] %v215_v58 }
 0x219   :  { %298 = shalt.err (!%p295_p4)
}
 0x21a   :  { %s299_s9 = scalar_lea.hbm %s425_s5, 512 }
 0x21b   :  { %p300_p5 = scmp.ne.s32.totalorder %s425_s5, %s299_s9  ;;  %p303_p6 = scmp.lt.u32.totalorder %s299_s9, %s425_s5 }
 0x21d   :  { %p305_p7 = pnand %p303_p6, %p300_p5 }
 0x21f   :  { %308 = shalt.err (!%p305_p7)
}
 0x220   :  { %s313_s14 = smov 256   ;;  %s314_s15 = smov 16  }
 0x221   :  { %232 = dma.vmem_to_hbm [thread:$0]  %s227_s7, 512, %s425_s5, [#allocation3], %s313_s14, %s313_s14, %s314_s15  }
 0x222   :  { %309 = dma.done.wait [#allocation3], 512  }
 0x223   :  { %310 = vsyncadd [#allocation3], 4294966784 }
 0x224   :  { %236 = vsyncpa [#allocation3], 1 }

// kernel: forward.4
= control target key start
LH: loop header
LB: loop body
LE: loop exit
PB: predicated region body
PF: predicated region fallthrough
CT: control target
= control target key end

     0   :  { %s2604_s25 = smov 0   ;;  %s3077_s0 = inlined_call_operand.vmem [shape: f32[2,8,128], index: 0, kind: input, shape index: {}]   ;;  %s3078_s1 = inlined_call_operand.vmem [shape: f32[1,128], index: 1, kind: input, shape index: {}]   ;;  %s3079_s2 = inlined_call_operand.vmem [shape: f32[1,128], index: 2, kind: input, shape index: {}]   ;;  %s3080_s3 = inlined_call_operand.vmem [shape: bf16[128,384], index: 3, kind: input, shape index: {}]   ;;  %s3081_s4 = inlined_call_operand.vmem [shape: f32[1,384], index: 4, kind: input, shape index: {}]   ;;  %s3082_s5 = inlined_call_operand.vmem [shape: bf16[128,128], index: 5, kind: input, shape index: {}]   ;;  %s3083_s6 = inlined_call_operand.vmem [shape: f32[1,128], index: 6, kind: input, shape index: {}]   ;;  %s3084_s7 = inlined_call_operand.vmem [shape: f32[1,128], index: 7, kind: input, shape index: {}]   ;;  %s3085_s8 = inlined_call_operand.vmem [shape: f32[1,128], index: 8, kind: input, shape index: {}]   ;;  %s3086_s9 = inlined_call_operand.vmem [shape: bf16[128,512], index: 9, kind: input, shape index: {}]   ;;  %s3087_s10 = inlined_call_operand.vmem [shape: f32[1,512], index: 10, kind: input, shape index: {}]   ;;  %s3088_s11 = inlined_call_operand.vmem [shape: bf16[512,128], index: 11, kind: input, shape index: {}]   ;;  %s3089_s12 = inlined_call_operand.vmem [shape: f32[1,128], index: 12, kind: input, shape index: {}]   ;;  %s3090_s13 = inlined_call_operand.vmem [shape: f32[2,8,128], index: 13, kind: output, shape index: {}]  }
   0x1 LB: > { %s2073_s26 = sadd.s32 4294967295, %s2526_s25   ;;  %p2077_p0 = scmp.ge.s32.totalorder %s2526_s25, 1  ;;  %s2526_s25 = sphi %s2604_s25, %s23_s25  }
   0x2   : > { %p386_p1 = scmp.lt.s32.totalorder %s2526_s25, 3 }
   0x4   : > { %p387_p2 = pnand %p2077_p0, %p386_p1 }
   0x5   : > { %p428_p3 = scmp.lt.s32.totalorder (!%p387_p2), %s2073_s26, 1  ;;  %v2372_v1 = vld [vmem:[%s3080_s3 + $0x4] ss:$12 sps:$4 sm:$0xff] (!%p387_p2)   ;;  %v2374_v2 = vld [vmem:[%s3080_s3] ss:$12 sps:$4 sm:$0xff] (!%p387_p2)   ;;  %v2528_v3 = vmov (!%p387_p2), 0.0   ;;  %v501_v41 = vlaneseq (!%p387_p2) }
   0x6   : > { %390 = sbr.rel (%p387_p2) target bundleno = 2968 (0xb98), region = 72  ;;  %2270 = vmatprep.subr.bf16.mxu1 (!%p387_p2), %v2528_v3  ;;  %v2375_v4 = vld [vmem:[%s3080_s3 + $0x8] ss:$12 sps:$4 sm:$0xff] (!%p387_p2)   ;;  %v2378_v6 = vld [vmem:[%s3080_s3 + $0x18] ss:$12 sps:$4 sm:$0xff] (!%p387_p2)   ;;  %644 = vmatprep.subr.bf16.mxu0 (!%p387_p2), %v2372_v1  ;;  %v2529_v25 = vmov (!%p387_p2), 0  }
   0x7   : > { %v2376_v5 = vld [vmem:[%s3080_s3 + $0x1c] ss:$12 sps:$4 sm:$0xff] (!%p387_p2)   ;;  %v2379_v7 = vld [vmem:[%s3080_s3 + $0x20] ss:$12 sps:$4 sm:$0xff] (!%p387_p2)   ;;  %645 = vmatpush1.bf16.msra.mxu0 (!%p387_p2), %v2374_v2  ;;  %2271 = vmatpush3.bf16.msra.mxu1 (!%p387_p2), %v2375_v4  ;;  %v2383_v14 = vld [vmem:[%s3080_s3 + $0x38] ss:$12 sps:$4 sm:$0xff] (!%p387_p2)  }
   0x8   : > { %v2380_v8 = vld [vmem:[%s3080_s3 + $0x34] ss:$12 sps:$4 sm:$0xff] (!%p387_p2)   ;;  %646 = vmatprep.subr.bf16.mxu0 (!%p387_p2), %v2376_v5  ;;  %2272 = vmatprep.subr.bf16.mxu1 (!%p387_p2), %v2528_v3  ;;  %v2382_v13 = vld [vmem:[%s3080_s3 + $0x30] ss:$12 sps:$4 sm:$0xff] (!%p387_p2)   ;;  %v2384_v15 = vld [vmem:[%s3080_s3 + $0x4c] ss:$12 sps:$4 sm:$0xff] (!%p387_p2)  }
   0x9   : > { %v2386_v16 = vld [vmem:[%s3080_s3 + $0x48] ss:$12 sps:$4 sm:$0xff] (!%p387_p2)   ;;  %v2387_v17 = vld [vmem:[%s3080_s3 + $0x50] ss:$12 sps:$4 sm:$0xff] (!%p387_p2)   ;;  %v2390_v19 = vld [vmem:[%s3080_s3 + $0x60] ss:$12 sps:$4 sm:$0xff] (!%p387_p2)   ;;  %676 = vmatprep.mubr.bf16.mxu0 (!%p387_p2), %v2529_v25 }
   0xa   : > { %v2388_v18 = vld [vmem:[%s3080_s3 + $0x64] ss:$12 sps:$4 sm:$0xff] (!%p387_p2)   ;;  %v2391_v20 = vld [vmem:[%s3080_s3 + $0x68] ss:$12 sps:$4 sm:$0xff] (!%p387_p2)   ;;  %v2395_v23 = vld [vmem:[%s3080_s3 + $0x80] ss:$12 sps:$4 sm:$0xff] (!%p387_p2)  }
   0xb   : > { %647 = vmatpush1.bf16.msra.mxu0 (!%p387_p2), %v2378_v6  ;;  %2273 = vmatpush3.bf16.msra.mxu1 (!%p387_p2), %v2379_v7  ;;  %v2392_v21 = vld [vmem:[%s3080_s3 + $0x7c] ss:$12 sps:$4 sm:$0xff] (!%p387_p2)   ;;  %v2394_v22 = vld [vmem:[%s3080_s3 + $0x78] ss:$12 sps:$4 sm:$0xff] (!%p387_p2)   ;;  %v2396_v24 = vld [vmem:[%s3080_s3 + $0x94] ss:$12 sps:$4 sm:$0xff] (!%p387_p2)  }
   0xc   : > { %648 = vmatprep.subr.bf16.mxu0 (!%p387_p2), %v2380_v8  ;;  %2274 = vmatprep.subr.bf16.mxu1 (!%p387_p2), %v2528_v3  ;;  %vm2530_vm0 = vmmov (!%p387_p2), 0   ;;  %v2398_v26 = vld [vmem:[%s3080_s3 + $0x90] ss:$12 sps:$4 sm:$0xff] (!%p387_p2)   ;;  %v2399_v27 = vld [vmem:[%s3080_s3 + $0x98] ss:$12 sps:$4 sm:$0xff] (!%p387_p2)   ;;  %v2719_v42 = vshrl.u32 (!%p387_p2), %v501_v41, 7 }
   0xd   : > { %s3092_s26 = smov (!%p428_p3, %s2073_s26), 1  ;;  %2286 = vmatprep.mubr.msk.bf16.mxu1 %vm2530_vm0, %v2528_v3  ;;  %v2400_v28 = vld [vmem:[%s3080_s3 + $0xac] ss:$12 sps:$4 sm:$0xff]   ;;  %v2402_v29 = vld [vmem:[%s3080_s3 + $0xa8] ss:$12 sps:$4 sm:$0xff]   ;;  %vm733_vm1 = vcmask 261120  }
   0xe   : > { %s2078_s27 = sshll.u32 %s3092_s26, 3  ;;  %v2403_v30 = vld [vmem:[%s3080_s3 + $0xb0] ss:$12 sps:$4 sm:$0xff]   ;;  %v2080_v35 = vld [vmem:[%s3078_s1] ss:$0 sm:$0xff]  ;;  %v507_v43 = vsub.s32 1, %v2719_v42 }
   0xf   : > { %s431_s30 = scalar_lea.vmem %s3077_s0, %s2078_s27  ;;  %649 = vmatpush1.bf16.msra.mxu0 %v2382_v13  ;;  %2275 = vmatpush3.bf16.msra.mxu1 %v2383_v14  ;;  %v2081_v37 = vld [vmem:[%s3079_s2] ss:$0 sm:$0xff]  ;;  %v511_v45 = vsub.s32 2, %v2719_v42  ;;  %v503_v47 = vsub.s32 0, %v2719_v42  ;;  %s2531_s29 = smov 96   ;;  %vm798_vm2 = vcmask 1043456  }
  0x10   : > { %v2620_v0 = vld [vmem:[%s431_s30] sm:$0xff]  ;;  %2276 = vmatprep.subr.bf16.mxu1 %v2528_v3  ;;  %650 = vmatprep.subr.bf16.mxu0 %v2384_v15  ;;  %s2532_s30 = smov 32   ;;  %v2745_v4 = vand.u32 127, %v501_v41  ;;  %vm782_vm4 = vcmask 64512   ;;  %s2533_s14 = smov 64   ;;  %vm1194_vm5 = vcmask 523264  }
  0x11   : > { %440 = vadd.xlane.f32.xlu0 %v2620_v0  ;;  %v499_v44 = vld [vmem:[%s3081_s4] sm:$0x7]  ;;  %vm1196_vm6 = vcmask 785408  }
  0x12   : > { %v508_v46 = vrot.slane %v499_v44, %v507_v43  ;;  %v512_v52 = vrot.slane %v499_v44, %v511_v45  ;;  %v504_v58 = vrot.slane %v499_v44, %v503_v47  ;;  %vm729_vm3 = vcmp.le.s32.totalorder %v2745_v4, %v2719_v42 }
  0x13   : > { %651 = vmatpush1.bf16.msra.mxu0 %v2386_v16  ;;  %2277 = vmatpush3.bf16.msra.mxu1 %v2387_v17 }
  0x14   : > { %2278 = vmatprep.subr.bf16.mxu1 %v2528_v3  ;;  %652 = vmatprep.subr.bf16.mxu0 %v2388_v18 }
  0x17   : > { %653 = vmatpush1.bf16.msra.mxu0 %v2390_v19  ;;  %2279 = vmatpush3.bf16.msra.mxu1 %v2391_v20 }
  0x18   : > { %654 = vmatprep.subr.bf16.mxu0 %v2392_v21  ;;  %2280 = vmatprep.subr.bf16.mxu1 %v2528_v3 }
  0x1b   : > { %655 = vmatpush1.bf16.msra.mxu0 %v2394_v22  ;;  %2281 = vmatpush3.bf16.msra.mxu1 %v2395_v23 }
  0x1c   : > { %656 = vmatprep.subr.bf16.mxu0 %v2396_v24  ;;  %2282 = vmatprep.subr.bf16.mxu1 %v2528_v3 }
  0x1f   : > { %657 = vmatpush1.bf16.msra.mxu0 %v2398_v26  ;;  %2283 = vmatpush3.bf16.msra.mxu1 %v2399_v27 }
  0x20   : > { %658 = vmatprep.subr.bf16.mxu0 %v2400_v28  ;;  %2284 = vmatprep.subr.bf16.mxu1 %v2528_v3 }
  0x23   : > { %659 = vmatpush1.bf16.msra.mxu0 %v2402_v29  ;;  %2285 = vmatpush3.bf16.msra.mxu1 %v2403_v30 }
  0x24   : > { %2290 = vmatprep.subr.bf16.mxu1 %v2528_v3  ;;  %2314 = vmatprep.subr.bf16.mxu0 %v2528_v3 }
  0x9e   : > { %v441_v9 = vpop.xlane.xlu0 %440 }
  0x9f   : > { %v443_v10 = vmul.f32 0.0078125, %v441_v9 }
  0xa1   : > { %v444_v11 = vsub.f32 %v2620_v0, %v443_v10 }
  0xa3   : > { %v445_v12 = vmul.f32 %v444_v11, %v444_v11 }
  0xa5   : > { %446 = vadd.xlane.f32.xlu0 %v445_v12 }
 0x132   : > { %v447_v31 = vpop.xlane.xlu0 %446 }
 0x133   : > { %v448_v32 = vmul.f32 0.0078125, %v447_v31 }
 0x135   : > { %v449_v33 = vadd.f32 1e-05, %v448_v32 }
 0x137   : > { %2492 = vrsqrt.f32 %v449_v33 }
 0x141   : > { %v2493_v34 = vpop.eup %2492 }
 0x142   : > { %v451_v36 = vmul.f32 %v2493_v34, %v444_v11 }
 0x144   : > { %v458_v38 = vmul.f32 %v2080_v35, %v451_v36 }
 0x146   : > { %v465_v39 = vadd.f32 %v2081_v37, %v458_v38 }
 0x148   : > { %v466_v40 = vpack.c.bf16 %v465_v39, %v465_v39 }
 0x14a   : > { %677 = vmatmul.mubr.bf16.vlgmr.msra.gmra.mrb[0].mxu0 %v466_v40  ;;  %2287 = vmatmul.mubr.bf16.vlgmr.msra.gmra.mrb[0].mxu1 %v466_v40 }
 0x14b   : > { %2292 = vmatprep.mubr.msk.bf16.mxu1 %vm2530_vm0, %v2528_v3  ;;  %2316 = vmatprep.mubr.msk.bf16.mxu0 %vm2530_vm0, %v2528_v3 }
 0x21d   : > { %v678_v48 = vpop.f32.mrb[0].mxu0  ;;  %v719_v49 = vpop.f32.mrb[0].mxu1 }
 0x21e   : > { %v680_v50 = vpop.f32.mrb[1].mxu0  ;;  %v2288_v51 = vpop.f32.mrb[1].mxu1  ;;  %v720_v60 = vadd.f32 %v719_v49, %v512_v52  ;;  %v679_v62 = vadd.f32 %v678_v48, %v504_v58 }
 0x21f   : > { %v681_v53 = vadd.f32 %v680_v50, %v508_v46  ;;  %v682_v54 = vpop.f32.mrb[2].mxu0  ;;  %v722_v55 = vpop.f32.mrb[2].mxu1 }
 0x220   : > { %v683_v56 = vpop.f32.mrb[3].mxu0  ;;  %v2289_v57 = vpop.f32.mrb[3].mxu1  ;;  %v2736_v63 = vpack.c.bf16 %v720_v60, %v720_v60  ;;  %v730_v1 = vpack.c.bf16 %v679_v62, %v679_v62 }
 0x221   : > { %v731_v59 = vpack.c.bf16 %v681_v53, %v681_v53 }
 0x222   : > { %v800_v2 = vsel %vm798_vm2, %v2736_v63, 0 }
 0x223   : > { %846 = vrot.lane.b32.xlu0 %v731_v59, %s2531_s29  ;;  %v738_v61 = vsel %vm733_vm1, %v731_v59, 0 }
 0x224   : > { %2291 = vmatpush3.bf16.xpose.msra.mxu1 %v738_v61 }
 0x225   : > { %2296 = vmatprep.subr.bf16.mxu1 %v2528_v3 }
 0x227   : > { %1071 = vrot.lane.b32.xlu0 %v731_v59, %s2532_s30 }
 0x22b   : > { %2293 = vmatmul.mubr.msk.bf16.vlgmr.msra.gmra.mrb[4].mxu1 %vm733_vm1, %v730_v1 }
 0x22c   : > { %2297 = vmatpush3.bf16.msra.mxu1 %v800_v2  ;;  %2298 = vmatprep.mubr.msk.bf16.mxu1 %vm2530_vm0, %v2528_v3 }
 0x22d   : > { %2302 = vmatprep.subr.bf16.mxu1 %v2528_v3 }
 0x295   : > { %v847_v19 = vpop.permute.xlu0 %846 }
 0x296   : > { %v852_v27 = vsel %vm733_vm1, %v847_v19, 0 }
 0x299   : > { %v1072_v24 = vpop.permute.xlu0 %1071 }
 0x29a   : > { %v1077_v29 = vsel %vm733_vm1, %v1072_v24, 0 }
 0x2fe   : > { %v774_v5 = vpop.f32.mrb[4].mxu1 }
 0x2ff   : > { %v780_v6 = vmul.f32 0.17677669, %v774_v5  ;;  %v2294_v7 = vpop.f32.mrb[5].mxu1 }
 0x300   : > { %v777_v8 = vpop.f32.mrb[6].mxu1 }
 0x301   : > { %v2295_v9 = vpop.f32.mrb[7].mxu1  ;;  %v781_v10 = vsel %vm729_vm3, %v780_v6, -1e+30 }
 0x302   : > { %v783_v11 = vsel %vm782_vm4, %v781_v10, -inf }
 0x303   : > { %784 = vmax.xlane.f32.xlu1 %v783_v11 }
 0x390   : > { %v785_v12 = vpop.xlane.xlu1 %784 }
 0x391   : > { %v786_v13 = vsub.f32 %v781_v10, %v785_v12 }
 0x393   : > { %v787_v14 = vmul.f32 1.442695, %v786_v13 }
 0x395   : > { %2494 = vpow2.f32 %v787_v14 }
 0x39f   : > { %v2495_v15 = vpop.eup %2494 }
 0x3a0   : > { %v789_v16 = vsel %vm782_vm4, %v2495_v15, 0.0 }
 0x3a1   : > { %790 = vadd.xlane.f32.xlu1 %v789_v16 }
 0x3b2   : > { %843 = vrot.lane.b32.xlu1 %v730_v1, %s2531_s29 }
 0x3b6   : > { %959 = vrot.lane.b32.xlu1 %v731_v59, %s2533_s14 }
 0x3ba   : > { %957 = vrot.lane.b32.xlu1 %v730_v1, %s2533_s14 }
 0x3be   : > { %1069 = vrot.lane.b32.xlu1 %v730_v1, %s2532_s30 }
 0x42e   : > { %v791_v17 = vpop.xlane.xlu1 %790 }
 0x42f   : > { %2496 = vrcp.f32 %v791_v17 }
 0x432   : > { %v844_v18 = vpop.permute.xlu1 %843 }
 0x436   : > { %v960_v20 = vpop.permute.xlu1 %959 }
 0x437   : > { %v965_v21 = vsel %vm733_vm1, %v960_v20, 0 }
 0x438   : > { %2315 = vmatpush3.bf16.xpose.msra.mxu0 %v965_v21 }
 0x439   : > { %v2497_v22 = vpop.eup %2496  ;;  %2326 = vmatprep.subr.bf16.mxu0 %v2528_v3 }
 0x43a   : > { %v793_v23 = vmul.f32 %v2497_v22, %v2495_v15  ;;  %v958_v28 = vpop.permute.xlu1 %957 }
 0x43c   : > { %v794_v26 = vpack.c.bf16 %v793_v23, %v793_v23 }
 0x43e   : > { %2299 = vmatmul.mubr.msk.bf16.vlgmr.msra.gmra.mrb[8].mxu1 %vm782_vm4, %v794_v26  ;;  %v1070_v30 = vpop.permute.xlu1 %1069 }
 0x43f   : > { %2303 = vmatpush3.bf16.xpose.msra.mxu1 %v852_v27  ;;  %2317 = vmatmul.mubr.msk.bf16.vlgmr.msra.gmra.mrb[4].mxu0 %vm733_vm1, %v958_v28 }
 0x440   : > { %2327 = vmatpush3.bf16.xpose.msra.mxu0 %v1077_v29  ;;  %2304 = vmatprep.mubr.msk.bf16.mxu1 %vm2530_vm0, %v2528_v3 }
 0x441   : > { %2328 = vmatprep.mubr.msk.bf16.mxu0 %vm2530_vm0, %v2528_v3  ;;  %2308 = vmatprep.subr.bf16.mxu1 %v2528_v3 }
 0x442   : > { %2338 = vmatprep.subr.bf16.mxu0 %v2528_v3 }
 0x446   : > { %2305 = vmatmul.mubr.msk.bf16.vlgmr.msra.gmra.mrb[12].mxu1 %vm733_vm1, %v844_v18 }
 0x447   : > { %2329 = vmatmul.mubr.msk.bf16.vlgmr.msra.gmra.mrb[8].mxu0 %vm733_vm1, %v1070_v30  ;;  %2310 = vmatprep.mubr.msk.bf16.mxu1 %vm2530_vm0, %v2528_v3 }
 0x448   : > { %2354 = vmatprep.mubr.msk.bf16.mxu0 %vm2530_vm0, %v2528_v3 }
 0x511   : > { %v2776_v31 = vpop.f32.mrb[8].mxu1 }
 0x512   : > { %v2300_v32 = vpop.f32.mrb[9].mxu1  ;;  %v1001_v33 = vpop.f32.mrb[4].mxu0 }
 0x513   : > { %v1007_v34 = vmul.f32 0.17677669, %v1001_v33  ;;  %v839_v35 = vpop.f32.mrb[10].mxu1  ;;  %v2318_v36 = vpop.f32.mrb[5].mxu0  ;;  %v2404_v33 = vld [vmem:[%s3082_s5] sm:$0xff]  }
 0x514   : > { %v2301_v37 = vpop.f32.mrb[11].mxu1  ;;  %v1004_v38 = vpop.f32.mrb[6].mxu0  ;;  %2339 = vmatpush3.bf16.msra.mxu0 %v2404_v33  ;;  %v2406_v35 = vld [vmem:[%s3082_s5 + $0x10] sm:$0xff]   ;;  %v2407_v36 = vld [vmem:[%s3082_s5 + $0x18] sm:$0xff]  }
 0x515   : > { %v2319_v39 = vpop.f32.mrb[7].mxu0  ;;  %v1008_v40 = vsel %vm729_vm3, %v1007_v34, -1e+30  ;;  %v2405_v34 = vld [vmem:[%s3082_s5 + $0x8] sm:$0xff]   ;;  %2340 = vmatprep.subr.bf16.mxu0 %v2528_v3  ;;  %v2408_v37 = vld [vmem:[%s3082_s5 + $0x20] sm:$0xff]  }
 0x516   : > { %v1009_v41 = vsel %vm782_vm4, %v1008_v40, -inf  ;;  %v2409_v38 = vld [vmem:[%s3082_s5 + $0x28] sm:$0xff]   ;;  %v2410_v39 = vld [vmem:[%s3082_s5 + $0x30] sm:$0xff]  }
 0x517   : > { %1010 = vmax.xlane.f32.xlu1 %v1009_v41  ;;  %v2442_v33 = vld [vmem:[%s3086_s9 + $0xa0] ss:$16 sps:$4 sm:$0xff]  }
 0x518   : > { %2341 = vmatpush3.bf16.msra.mxu0 %v2405_v34  ;;  %v2445_v34 = vld [vmem:[%s3086_s9 + $0xa8] ss:$16 sps:$4 sm:$0xff]  }
 0x519   : > { %v888_v44 = vpop.f32.mrb[12].mxu1  ;;  %2342 = vmatprep.subr.bf16.mxu0 %v2528_v3 }
 0x51a   : > { %v894_v46 = vmul.f32 0.17677669, %v888_v44  ;;  %v2306_v48 = vpop.f32.mrb[13].mxu1  ;;  %v1113_v49 = vpop.f32.mrb[8].mxu0 }
 0x51b   : > { %v1119_v50 = vmul.f32 0.17677669, %v1113_v49  ;;  %v891_v51 = vpop.f32.mrb[14].mxu1  ;;  %v2330_v52 = vpop.f32.mrb[9].mxu0  ;;  %v2411_v48 = vld [vmem:[%s3082_s5 + $0x38] sm:$0xff]  }
 0x51c   : > { %v2307_v53 = vpop.f32.mrb[15].mxu1  ;;  %v1116_v54 = vpop.f32.mrb[10].mxu0  ;;  %v895_v55 = vsel %vm729_vm3, %v894_v46, -1e+30  ;;  %2343 = vmatpush3.bf16.msra.mxu0 %v2406_v35  ;;  %v2450_v35 = vld [vmem:[%s3086_s9 + $0xc4] ss:$16 sps:$4 sm:$0xff]  }
 0x51d   : > { %v2331_v56 = vpop.f32.mrb[11].mxu0  ;;  %v896_v57 = vsel %vm782_vm4, %v895_v55, -inf  ;;  %v1120_v58 = vsel %vm729_vm3, %v1119_v50, -1e+30  ;;  %2344 = vmatprep.subr.bf16.mxu0 %v2528_v3 }
 0x51e   : > { %897 = vmax.xlane.f32.xlu0 %v896_v57  ;;  %v1121_v59 = vsel %vm782_vm4, %v1120_v58, -inf }
 0x520   : > { %2345 = vmatpush3.bf16.msra.mxu0 %v2407_v36  ;;  %v2453_v36 = vld [vmem:[%s3086_s9 + $0xcc] ss:$16 sps:$4 sm:$0xff]  }
 0x521   : > { %2346 = vmatprep.subr.bf16.mxu0 %v2528_v3 }
 0x522   : > { %1122 = vmax.xlane.f32.xlu0 %v1121_v59 }
 0x524   : > { %2347 = vmatpush3.bf16.msra.mxu0 %v2408_v37  ;;  %v2448_v37 = vld [vmem:[%s3086_s9 + $0xc0] ss:$16 sps:$4 sm:$0xff]  }
 0x525   : > { %2348 = vmatprep.subr.bf16.mxu0 %v2528_v3 }
 0x528   : > { %2349 = vmatpush3.bf16.msra.mxu0 %v2409_v38  ;;  %v2451_v38 = vld [vmem:[%s3086_s9 + $0xc8] ss:$16 sps:$4 sm:$0xff]  }
 0x529   : > { %2350 = vmatprep.subr.bf16.mxu0 %v2528_v3 }
 0x52c   : > { %2351 = vmatpush3.bf16.msra.mxu0 %v2410_v39  ;;  %v2456_v39 = vld [vmem:[%s3086_s9 + $0xe4] ss:$16 sps:$4 sm:$0xff]  }
 0x52d   : > { %2352 = vmatprep.subr.bf16.mxu0 %v2528_v3 }
 0x530   : > { %2353 = vmatpush3.bf16.msra.mxu0 %v2411_v48 }
 0x5a4   : > { %v1011_v60 = vpop.xlane.xlu1 %1010 }
 0x5a5   : > { %v1012_v61 = vsub.f32 %v1008_v40, %v1011_v60 }
 0x5a7   : > { %v1013_v62 = vmul.f32 1.442695, %v1012_v61 }
 0x5a9   : > { %2498 = vpow2.f32 %v1013_v62 }
 0x5ab   : > { %v898_v1 = vpop.xlane.xlu0 %897 }
 0x5ac   : > { %v899_v2 = vsub.f32 %v895_v55, %v898_v1  ;;  %v2114_v1 = vld [vmem:[%s3083_s6] ss:$0 sm:$0xff] }
 0x5ae   : > { %v900_v5 = vmul.f32 1.442695, %v899_v2 }
 0x5af   : > { %v1123_v6 = vpop.xlane.xlu0 %1122 }
 0x5b0   : > { %2500 = vpow2.f32 %v900_v5  ;;  %v1124_v7 = vsub.f32 %v1120_v58, %v1123_v6 }
 0x5b2   : > { %v1125_v8 = vmul.f32 1.442695, %v1124_v7 }
 0x5b3   : > { %v2499_v9 = vpop.eup %2498 }
 0x5b4   : > { %2502 = vpow2.f32 %v1125_v8  ;;  %v1015_v10 = vsel %vm782_vm4, %v2499_v9, 0.0 }
 0x5b5   : > { %1016 = vadd.xlane.f32.xlu0 %v1015_v10  ;;  %v2415_v10 = vld [vmem:[%s3086_s9 + $0x8] ss:$16 sps:$4 sm:$0xff]  }
 0x5ba   : > { %v2501_v4 = vpop.eup %2500 }
 0x5bb   : > { %v902_v11 = vsel %vm782_vm4, %v2501_v4, 0.0 }
 0x5bc   : > { %903 = vadd.xlane.f32.xlu0 %v902_v11  ;;  %v2423_v11 = vld [vmem:[%s3086_s9 + $0x2c] ss:$16 sps:$4 sm:$0xff]  }
 0x5be   : > { %v2503_v12 = vpop.eup %2502 }
 0x5bf   : > { %v1127_v13 = vsel %vm782_vm4, %v2503_v12, 0.0 }
 0x5c0   : > { %1128 = vadd.xlane.f32.xlu1 %v1127_v13  ;;  %v2421_v13 = vld [vmem:[%s3086_s9 + $0x28] ss:$16 sps:$4 sm:$0xff]  }
 0x5d1   : > { %1021 = vrot.lane.b32.xlu1 %v2736_v63, %s2533_s14 }
 0x5d2   : > { %909 = vrot.lane.b32.xlu0 %v2736_v63, %s2531_s29 }
 0x5d5   : > { %1133 = vrot.lane.b32.xlu1 %v2736_v63, %s2532_s30 }
 0x642   : > { %v1017_v14 = vpop.xlane.xlu0 %1016 }
 0x649   : > { %v904_v15 = vpop.xlane.xlu0 %903 }
 0x64a   : > { %2504 = vrcp.f32 %v904_v15  ;;  %v2429_v15 = vld [vmem:[%s3086_s9 + $0x4c] ss:$16 sps:$4 sm:$0xff]  }
 0x64b   : > { %2506 = vrcp.f32 %v1017_v14  ;;  %v2426_v14 = vld [vmem:[%s3086_s9 + $0x44] ss:$16 sps:$4 sm:$0xff]  }
 0x64d   : > { %v910_v16 = vpop.permute.xlu0 %909  ;;  %v1129_v18 = vpop.xlane.xlu1 %1128 }
 0x64e   : > { %v915_v17 = vsel %vm798_vm2, %v910_v16, 0  ;;  %2508 = vrcp.f32 %v1129_v18  ;;  %v2424_v16 = vld [vmem:[%s3086_s9 + $0x40] ss:$16 sps:$4 sm:$0xff]  }
 0x64f   : > { %2309 = vmatpush3.bf16.msra.mxu1 %v915_v17  ;;  %v2427_v17 = vld [vmem:[%s3086_s9 + $0x48] ss:$16 sps:$4 sm:$0xff]  }
 0x650   : > { %2320 = vmatprep.subr.bf16.mxu1 %v2528_v3 }
 0x651   : > { %v1022_v21 = vpop.permute.xlu1 %1021 }
 0x652   : > { %v1027_v24 = vsel %vm798_vm2, %v1022_v21, 0 }
 0x654   : > { %v2505_v19 = vpop.eup %2504 }
 0x655   : > { %v906_v20 = vmul.f32 %v2505_v19, %v2501_v4  ;;  %v2507_v23 = vpop.eup %2506  ;;  %v1134_v26 = vpop.permute.xlu1 %1133  ;;  %v2420_v4 = vld [vmem:[%s3086_s9 + $0x24] ss:$16 sps:$4 sm:$0xff]  }
 0x656   : > { %v1019_v63 = vmul.f32 %v2507_v23, %v2499_v9  ;;  %v1139_v29 = vsel %vm798_vm2, %v1134_v26, 0  ;;  %v2435_v23 = vld [vmem:[%s3086_s9 + $0x6c] ss:$16 sps:$4 sm:$0xff]   ;;  %v2438_v26 = vld [vmem:[%s3086_s9 + $0x84] ss:$16 sps:$4 sm:$0xff]  }
 0x657   : > { %v907_v22 = vpack.c.bf16 %v906_v20, %v906_v20 }
 0x658   : > { %v1020_v27 = vpack.c.bf16 %v1019_v63, %v1019_v63  ;;  %v2509_v28 = vpop.eup %2508  ;;  %v2433_v63 = vld [vmem:[%s3086_s9 + $0x68] ss:$16 sps:$4 sm:$0xff]  }
 0x659   : > { %2311 = vmatmul.mubr.msk.bf16.vlgmr.msra.gmra.mrb[16].mxu1 %vm782_vm4, %v907_v22  ;;  %v1131_v30 = vmul.f32 %v2509_v28, %v2503_v12  ;;  %v2418_v12 = vld [vmem:[%s3086_s9 + $0x20] ss:$16 sps:$4 sm:$0xff]   ;;  %v2432_v22 = vld [vmem:[%s3086_s9 + $0x64] ss:$16 sps:$4 sm:$0xff]  }
 0x65a   : > { %2321 = vmatpush3.bf16.msra.mxu1 %v1027_v24  ;;  %2322 = vmatprep.mubr.msk.bf16.mxu1 %vm2530_vm0, %v2528_v3  ;;  %v2430_v24 = vld [vmem:[%s3086_s9 + $0x60] ss:$16 sps:$4 sm:$0xff]  }
 0x65b   : > { %2332 = vmatprep.subr.bf16.mxu1 %v2528_v3  ;;  %v1132_v32 = vpack.c.bf16 %v1131_v30, %v1131_v30  ;;  %v2436_v28 = vld [vmem:[%s3086_s9 + $0x80] ss:$16 sps:$4 sm:$0xff]   ;;  %v2444_v30 = vld [vmem:[%s3086_s9 + $0xa4] ss:$16 sps:$4 sm:$0xff]  }
 0x661   : > { %2323 = vmatmul.mubr.msk.bf16.vlgmr.msra.gmra.mrb[20].mxu1 %vm782_vm4, %v1020_v27  ;;  %v2441_v27 = vld [vmem:[%s3086_s9 + $0x8c] ss:$16 sps:$4 sm:$0xff]  }
 0x662   : > { %2333 = vmatpush3.bf16.msra.mxu1 %v1139_v29  ;;  %2334 = vmatprep.mubr.msk.bf16.mxu1 %vm2530_vm0, %v2528_v3  ;;  %v2439_v29 = vld [vmem:[%s3086_s9 + $0x88] ss:$16 sps:$4 sm:$0xff]  }
 0x669   : > { %2335 = vmatmul.mubr.msk.bf16.vlgmr.msra.gmra.mrb[24].mxu1 %vm782_vm4, %v1132_v32  ;;  %v2447_v32 = vld [vmem:[%s3086_s9 + $0xac] ss:$16 sps:$4 sm:$0xff]  }
 0x66a   : > { %1585 = vmatprep.mubr.bf16.mxu1 %v2529_v25 }
 0x72c   : > { %v951_v40 = vpop.f32.mrb[16].mxu1 }
 0x72d   : > { %1182 = vrot.lane.b32.xlu1 %v951_v40, %s2532_s30  ;;  %v2312_v41 = vpop.f32.mrb[17].mxu1  ;;  %v2459_v40 = vld [vmem:[%s3086_s9 + $0xec] ss:$16 sps:$4 sm:$0xff]   ;;  %s435_s30 = scalar_lea.vmem %s3090_s13, %s2078_s27 }
 0x72e   : > { %v954_v44 = vpop.f32.mrb[18].mxu1  ;;  %v2454_v41 = vld [vmem:[%s3086_s9 + $0xe0] ss:$16 sps:$4 sm:$0xff]  }
 0x72f   : > { %v2313_v46 = vpop.f32.mrb[19].mxu1  ;;  %v2457_v44 = vld [vmem:[%s3086_s9 + $0xe8] ss:$16 sps:$4 sm:$0xff]  }
 0x734   : > { %v1063_v49 = vpop.f32.mrb[20].mxu1 }
 0x735   : > { %1186 = vrot.lane.b32.xlu0 %v1063_v49, %s2533_s14  ;;  %v2324_v50 = vpop.f32.mrb[21].mxu1 }
 0x736   : > { %v1066_v51 = vpop.f32.mrb[22].mxu1 }
 0x737   : > { %v2325_v52 = vpop.f32.mrb[23].mxu1  ;;  %v2123_v51 = vld [vmem:[%s3084_s7] ss:$0 sm:$0xff] }
 0x73c   : > { %v1175_v53 = vpop.f32.mrb[24].mxu1 }
 0x73d   : > { %1190 = vrot.lane.b32.xlu1 %v1175_v53, %s2531_s29  ;;  %v2336_v54 = vpop.f32.mrb[25].mxu1  ;;  %v2124_v53 = vld [vmem:[%s3085_s8] ss:$0 sm:$0xff] }
 0x73e   : > { %v1178_v55 = vpop.f32.mrb[26].mxu1 }
 0x73f   : > { %v2337_v56 = vpop.f32.mrb[27].mxu1 }
 0x79f   : > { %v1183_v57 = vpop.permute.xlu1 %1182 }
 0x7a0   : > { %v1193_v58 = vsel %vm733_vm1, %v2776_v31, %v1183_v57  ;;  %v2412_v31 = vld [vmem:[%s3086_s9] ss:$16 sps:$4 sm:$0xff]  }
 0x7a1   : > { %v2460_v57 = vld [vmem:[%s3088_s11 + $0x40] sm:$0xff]  }
 0x7a7   : > { %v1187_v3 = vpop.permute.xlu0 %1186 }
 0x7a8   : > { %v1195_v59 = vsel %vm1194_vm5, %v1193_v58, %v1187_v3  ;;  %v2461_v3 = vld [vmem:[%s3088_s11 + $0xc0] sm:$0xff]  }
 0x7a9   : > { %v2462_v58 = vld [vmem:[%s3088_s11] sm:$0xff]  }
 0x7af   : > { %v1191_v60 = vpop.permute.xlu1 %1190 }
 0x7b0   : > { %v1197_v61 = vsel %vm1196_vm6, %v1195_v59, %v1191_v60  ;;  %v2463_v59 = vld [vmem:[%s3088_s11 + $0x80] sm:$0xff]   ;;  %v2464_v60 = vld [vmem:[%s3088_s11 + $0x48] sm:$0xff]  }
 0x7b1   : > { %v1198_v62 = vpack.c.bf16 %v1197_v61, %v1197_v61  ;;  %v2465_v61 = vld [vmem:[%s3088_s11 + $0xc8] sm:$0xff]  }
 0x7b3   : > { %2355 = vmatmul.mubr.bf16.vlgmr.msra.gmra.mrb[12].mxu0 %v1198_v62  ;;  %v2466_v62 = vld [vmem:[%s3088_s11 + $0x8] sm:$0xff]  }
 0x7b4   : > { %1626 = vmatprep.mubr.bf16.mxu0 %v2529_v25  ;;  %v2414_v25 = vld [vmem:[%s3086_s9 + $0x4] ss:$16 sps:$4 sm:$0xff]  }
 0x7b5   : > { %1553 = vmatprep.subr.bf16.mxu1 %v2414_v25  ;;  %v2474_v25 = vld [vmem:[%s3088_s11 + $0x18] sm:$0xff]  }
 0x7b6   : > { %1554 = vmatpush1.bf16.msra.mxu1 %v2412_v31  ;;  %v2473_v31 = vld [vmem:[%s3088_s11 + $0xd8] sm:$0xff]  }
 0x7b7   : > { %1555 = vmatprep.subr.bf16.mxu1 %v2420_v4  ;;  %v2477_v4 = vld [vmem:[%s3088_s11 + $0xe0] sm:$0xff]  }
 0x7ba   : > { %1556 = vmatpush1.bf16.msra.mxu1 %v2418_v12  ;;  %v2479_v12 = vld [vmem:[%s3088_s11 + $0xa0] sm:$0xff]  }
 0x7bb   : > { %1557 = vmatprep.subr.bf16.mxu1 %v2426_v14  ;;  %v2481_v14 = vld [vmem:[%s3088_s11 + $0xe8] sm:$0xff]  }
 0x7be   : > { %1558 = vmatpush1.bf16.msra.mxu1 %v2424_v16  ;;  %v2483_v16 = vld [vmem:[%s3088_s11 + $0xa8] sm:$0xff]  }
 0x7bf   : > { %1559 = vmatprep.subr.bf16.mxu1 %v2432_v22  ;;  %v2489_v22 = vld [vmem:[%s3088_s11 + $0xf8] sm:$0xff]  }
 0x7c2   : > { %1560 = vmatpush1.bf16.msra.mxu1 %v2430_v24  ;;  %v2491_v24 = vld [vmem:[%s3088_s11 + $0xb8] sm:$0xff]  }
 0x7c3   : > { %1561 = vmatprep.subr.bf16.mxu1 %v2438_v26  ;;  %v1387_v26 = vsub.s32 3, %v2719_v42 }
 0x7c6   : > { %1562 = vmatpush1.bf16.msra.mxu1 %v2436_v28 }
 0x7c7   : > { %1563 = vmatprep.subr.bf16.mxu1 %v2444_v30 }
 0x7ca   : > { %1564 = vmatpush1.bf16.msra.mxu1 %v2442_v33 }
 0x7cb   : > { %1565 = vmatprep.subr.bf16.mxu1 %v2450_v35 }
 0x7ce   : > { %1566 = vmatpush1.bf16.msra.mxu1 %v2448_v37 }
 0x7cf   : > { %1567 = vmatprep.subr.bf16.mxu1 %v2456_v39 }
 0x7d2   : > { %1568 = vmatpush1.bf16.msra.mxu1 %v2454_v41 }
 0x7d3   : > { %2226 = vmatprep.subr.bf16.mxu1 %v2460_v57 }
 0x886   : > { %v1304_v2 = vpop.f32.mrb[12].mxu0 }
 0x887   : > { %v1305_v5 = vadd.f32 %v2114_v1, %v1304_v2  ;;  %v2356_v6 = vpop.f32.mrb[13].mxu0  ;;  %v2467_v1 = vld [vmem:[%s3088_s11 + $0x88] sm:$0xff]   ;;  %v2468_v2 = vld [vmem:[%s3088_s11 + $0x50] sm:$0xff]  }
 0x888   : > { %v1307_v7 = vpop.f32.mrb[14].mxu0  ;;  %v2470_v6 = vld [vmem:[%s3088_s11 + $0x10] sm:$0xff]  }
 0x889   : > { %v2853_v8 = vadd.f32 %v1305_v5, %v2620_v0  ;;  %v2357_v9 = vpop.f32.mrb[15].mxu0  ;;  %v2417_v0 = vld [vmem:[%s3086_s9 + $0xc] ss:$16 sps:$4 sm:$0xff]   ;;  %v2469_v5 = vld [vmem:[%s3088_s11 + $0xd0] sm:$0xff]  }
 0x88a   : > { %1594 = vmatprep.subr.bf16.mxu0 %v2417_v0  ;;  %v2471_v7 = vld [vmem:[%s3088_s11 + $0x90] sm:$0xff]   ;;  %v2472_v9 = vld [vmem:[%s3088_s11 + $0x58] sm:$0xff]   ;;  %v2476_v0 = vld [vmem:[%s3088_s11 + $0x60] sm:$0xff]  }
 0x88b   : > { %1313 = vadd.xlane.f32.xlu0 %v2853_v8  ;;  %1595 = vmatpush1.bf16.msra.mxu0 %v2415_v10  ;;  %v2475_v10 = vld [vmem:[%s3088_s11 + $0x98] sm:$0xff]  }
 0x88c   : > { %1596 = vmatprep.subr.bf16.mxu0 %v2423_v11  ;;  %v2478_v11 = vld [vmem:[%s3088_s11 + $0x20] sm:$0xff]  }
 0x88f   : > { %1597 = vmatpush1.bf16.msra.mxu0 %v2421_v13  ;;  %v2480_v13 = vld [vmem:[%s3088_s11 + $0x68] sm:$0xff]  }
 0x890   : > { %1598 = vmatprep.subr.bf16.mxu0 %v2429_v15  ;;  %v2482_v15 = vld [vmem:[%s3088_s11 + $0x28] sm:$0xff]  }
 0x893   : > { %1599 = vmatpush1.bf16.msra.mxu0 %v2427_v17  ;;  %v2484_v17 = vld [vmem:[%s3088_s11 + $0x70] sm:$0xff]  }
 0x894   : > { %1600 = vmatprep.subr.bf16.mxu0 %v2435_v23  ;;  %v2490_v23 = vld [vmem:[%s3088_s11 + $0x38] sm:$0xff]  }
 0x897   : > { %1601 = vmatpush1.bf16.msra.mxu0 %v2433_v63  ;;  %v1371_v63 = vld [vmem:[%s3087_s10] sm:$0xf] }
 0x898   : > { %1602 = vmatprep.subr.bf16.mxu0 %v2441_v27  ;;  %v1376_v27 = vrot.slane %v1371_v63, %v503_v47  ;;  %v1384_v28 = vrot.slane %v1371_v63, %v511_v45  ;;  %v1388_v30 = vrot.slane %v1371_v63, %v1387_v26 }
 0x89b   : > { %1603 = vmatpush1.bf16.msra.mxu0 %v2439_v29  ;;  %v1380_v29 = vrot.slane %v1371_v63, %v507_v43 }
 0x89c   : > { %1604 = vmatprep.subr.bf16.mxu0 %v2447_v32 }
 0x89f   : > { %1605 = vmatpush1.bf16.msra.mxu0 %v2445_v34 }
 0x8a0   : > { %1606 = vmatprep.subr.bf16.mxu0 %v2453_v36 }
 0x8a3   : > { %1607 = vmatpush1.bf16.msra.mxu0 %v2451_v38 }
 0x8a4   : > { %1608 = vmatprep.subr.bf16.mxu0 %v2459_v40 }
 0x8a7   : > { %1609 = vmatpush1.bf16.msra.mxu0 %v2457_v44 }
 0x8a8   : > { %2248 = vmatprep.subr.bf16.mxu0 %v2461_v3 }
 0x918   : > { %v1314_v18 = vpop.xlane.xlu0 %1313 }
 0x919   : > { %v1315_v19 = vmul.f32 0.0078125, %v1314_v18  ;;  %v2485_v18 = vld [vmem:[%s3088_s11 + $0xf0] sm:$0xff]  }
 0x91b   : > { %v1316_v20 = vsub.f32 %v2853_v8, %v1315_v19  ;;  %v2486_v19 = vld [vmem:[%s3088_s11 + $0x30] sm:$0xff]  }
 0x91d   : > { %v1317_v21 = vmul.f32 %v1316_v20, %v1316_v20 }
 0x91f   : > { %1318 = vadd.xlane.f32.xlu1 %v1317_v21  ;;  %v2488_v21 = vld [vmem:[%s3088_s11 + $0x78] sm:$0xff]  }
 0x9ac   : > { %v1319_v46 = vpop.xlane.xlu1 %1318 }
 0x9ad   : > { %v1320_v48 = vmul.f32 0.0078125, %v1319_v46 }
 0x9af   : > { %v1321_v49 = vadd.f32 1e-05, %v1320_v48 }
 0x9b1   : > { %2510 = vrsqrt.f32 %v1321_v49 }
 0x9bb   : > { %v2511_v50 = vpop.eup %2510 }
 0x9bc   : > { %v1323_v52 = vmul.f32 %v2511_v50, %v1316_v20  ;;  %v2487_v20 = vld [vmem:[%s3088_s11 + $0xb0] sm:$0xff]  }
 0x9be   : > { %v1330_v54 = vmul.f32 %v2123_v51, %v1323_v52 }
 0x9c0   : > { %v1337_v55 = vadd.f32 %v2124_v53, %v1330_v54 }
 0x9c2   : > { %v1338_v56 = vpack.c.bf16 %v1337_v55, %v1337_v55 }
 0x9c4   : > { %1586 = vmatmul.mubr.bf16.vlgmr.msra.gmra.mrb[28].mxu1 %v1338_v56  ;;  %1627 = vmatmul.mubr.bf16.vlgmr.msra.gmra.mrb[16].mxu0 %v1338_v56 }
 0x9c5   : > { %2227 = vmatpush3.bf16.msra.mxu1 %v2462_v58  ;;  %2249 = vmatpush3.bf16.msra.mxu0 %v2463_v59 }
 0x9c6   : > { %2228 = vmatprep.subr.bf16.mxu1 %v2464_v60  ;;  %2250 = vmatprep.subr.bf16.mxu0 %v2465_v61 }
 0x9c9   : > { %2229 = vmatpush3.bf16.msra.mxu1 %v2466_v62  ;;  %2251 = vmatpush3.bf16.msra.mxu0 %v2467_v1 }
 0x9ca   : > { %2230 = vmatprep.subr.bf16.mxu1 %v2468_v2  ;;  %2252 = vmatprep.subr.bf16.mxu0 %v2469_v5 }
 0x9cd   : > { %2231 = vmatpush3.bf16.msra.mxu1 %v2470_v6  ;;  %2253 = vmatpush3.bf16.msra.mxu0 %v2471_v7 }
 0x9ce   : > { %2232 = vmatprep.subr.bf16.mxu1 %v2472_v9  ;;  %2254 = vmatprep.subr.bf16.mxu0 %v2473_v31 }
 0x9d1   : > { %2233 = vmatpush3.bf16.msra.mxu1 %v2474_v25  ;;  %2255 = vmatpush3.bf16.msra.mxu0 %v2475_v10 }
 0x9d2   : > { %2234 = vmatprep.subr.bf16.mxu1 %v2476_v0  ;;  %2256 = vmatprep.subr.bf16.mxu0 %v2477_v4 }
 0x9d5   : > { %2235 = vmatpush3.bf16.msra.mxu1 %v2478_v11  ;;  %2257 = vmatpush3.bf16.msra.mxu0 %v2479_v12 }
 0x9d6   : > { %2236 = vmatprep.subr.bf16.mxu1 %v2480_v13  ;;  %2258 = vmatprep.subr.bf16.mxu0 %v2481_v14 }
 0x9d9   : > { %2237 = vmatpush3.bf16.msra.mxu1 %v2482_v15  ;;  %2259 = vmatpush3.bf16.msra.mxu0 %v2483_v16 }
 0x9da   : > { %2238 = vmatprep.subr.bf16.mxu1 %v2484_v17  ;;  %2260 = vmatprep.subr.bf16.mxu0 %v2485_v18 }
 0x9dd   : > { %2239 = vmatpush3.bf16.msra.mxu1 %v2486_v19  ;;  %2261 = vmatpush3.bf16.msra.mxu0 %v2487_v20 }
 0x9de   : > { %2240 = vmatprep.subr.bf16.mxu1 %v2488_v21  ;;  %2262 = vmatprep.subr.bf16.mxu0 %v2489_v22  ;;  %v2157_v22 = vld [vmem:[%s3089_s12] ss:$0 sm:$0xff] }
 0x9e1   : > { %2241 = vmatpush3.bf16.msra.mxu1 %v2490_v23  ;;  %2263 = vmatpush3.bf16.msra.mxu0 %v2491_v24 }
 0xa97   : > { %v1587_v32 = vpop.f32.mrb[28].mxu1  ;;  %v1628_v33 = vpop.f32.mrb[16].mxu0 }
 0xa98   : > { %v1588_v34 = vadd.f32 %v1587_v32, %v1376_v27  ;;  %v1629_v35 = vadd.f32 %v1628_v33, %v1384_v28  ;;  %v1589_v36 = vpop.f32.mrb[29].mxu1  ;;  %v1630_v37 = vpop.f32.mrb[17].mxu0 }
 0xa99   : > { %v1590_v38 = vadd.f32 %v1589_v36, %v1380_v29  ;;  %v1631_v39 = vadd.f32 %v1630_v37, %v1388_v30  ;;  %v1591_v40 = vpop.f32.mrb[30].mxu1  ;;  %v1632_v41 = vpop.f32.mrb[18].mxu0 }
 0xa9a   : > { %v1635_v44 = vmul.f32 %v1588_v34, %v1588_v34  ;;  %v1637_v46 = vmul.f32 %v1629_v35, %v1629_v35  ;;  %v1592_v47 = vpop.f32.mrb[31].mxu1  ;;  %v1633_v48 = vpop.f32.mrb[19].mxu0 }
 0xa9b   : > { %v1636_v49 = vmul.f32 %v1590_v38, %v1590_v38  ;;  %v1638_v45 = vmul.f32 %v1631_v39, %v1631_v39 }
 0xa9c   : > { %v1639_v50 = vmul.f32 %v1635_v44, %v1588_v34  ;;  %v1641_v42 = vmul.f32 %v1637_v46, %v1629_v35 }
 0xa9d   : > { %v1640_v43 = vmul.f32 %v1636_v49, %v1590_v38  ;;  %v1642_v51 = vmul.f32 %v1638_v45, %v1631_v39 }
 0xa9e   : > { %v1643_v52 = vmul.f32 0.044715, %v1639_v50  ;;  %v1645_v53 = vmul.f32 0.044715, %v1641_v42 }
 0xa9f   : > { %v1644_v54 = vmul.f32 0.044715, %v1640_v43  ;;  %v1646_v55 = vmul.f32 0.044715, %v1642_v51 }
 0xaa0   : > { %v1647_v56 = vadd.f32 %v1643_v52, %v1588_v34  ;;  %v1649_v57 = vadd.f32 %v1645_v53, %v1629_v35 }
 0xaa1   : > { %v1648_v3 = vadd.f32 %v1644_v54, %v1590_v38  ;;  %v1650_v58 = vadd.f32 %v1646_v55, %v1631_v39 }
 0xaa2   : > { %v1651_v59 = vmul.f32 0.7978846, %v1647_v56  ;;  %v1653_v60 = vmul.f32 0.7978846, %v1649_v57 }
 0xaa3   : > { %v1652_v61 = vmul.f32 0.7978846, %v1648_v3  ;;  %v1654_v62 = vmul.f32 0.7978846, %v1650_v58 }
 0xaa4   : > { %2512 = vtanh.f32 %v1651_v59 }
 0xaa5   : > { %2514 = vtanh.f32 %v1653_v60 }
 0xaa6   : > { %2516 = vtanh.f32 %v1652_v61 }
 0xaa7   : > { %2518 = vtanh.f32 %v1654_v62 }
 0xaae   : > { %v2513_v1 = vpop.eup %2512 }
 0xaaf   : > { %v2515_v2 = vpop.eup %2514  ;;  %v1659_v5 = vadd.f32 1.0, %v2513_v1 }
 0xab0   : > { %v2517_v6 = vpop.eup %2516  ;;  %v1661_v7 = vadd.f32 1.0, %v2515_v2 }
 0xab1   : > { %v2519_v9 = vpop.eup %2518  ;;  %v1660_v31 = vadd.f32 1.0, %v2517_v6  ;;  %v1663_v25 = vmul.f32 0.5, %v1659_v5 }
 0xab2   : > { %v1662_v10 = vadd.f32 1.0, %v2519_v9  ;;  %v1665_v0 = vmul.f32 0.5, %v1661_v7 }
 0xab3   : > { %v1664_v4 = vmul.f32 0.5, %v1660_v31  ;;  %v1667_v12 = vmul.f32 %v1663_v25, %v1588_v34 }
 0xab4   : > { %v1666_v11 = vmul.f32 0.5, %v1662_v10  ;;  %v1669_v14 = vmul.f32 %v1665_v0, %v1629_v35 }
 0xab5   : > { %v1668_v13 = vmul.f32 %v1664_v4, %v1590_v38  ;;  %v1671_v18 = vpack.c.bf16 %v1667_v12, %v1667_v12 }
 0xab6   : > { %v1670_v15 = vmul.f32 %v1666_v11, %v1631_v39  ;;  %v1673_v19 = vpack.c.bf16 %v1669_v14, %v1669_v14 }
 0xab7   : > { %v1672_v16 = vpack.c.bf16 %v1668_v13, %v1668_v13 }
 0xab8   : > { %v1674_v17 = vpack.c.bf16 %v1670_v15, %v1670_v15 }
 0xab9   : > { %1970 = vmatprep.mubr.bf16.mxu1 %v1672_v16 }
 0xaba   : > { %2010 = vmatprep.mubr.bf16.mxu0 %v1674_v17  ;;  %1971 = vmatmul.mubr.bf16.vlgmr.msra.gmra.mrb[32].mxu1 %v1671_v18 }
 0xabb   : > { %2011 = vmatmul.mubr.bf16.vlgmr.msra.gmra.mrb[20].mxu0 %v1673_v19 }
 0xb8d   : > { %v2242_v20 = vpop.f32.mrb[32].mxu1 }
 0xb8e   : > { %v2264_v21 = vpop.f32.mrb[20].mxu0  ;;  %v2243_v23 = vpop.f32.mrb[33].mxu1 }
 0xb8f   : > { %v2244_v24 = vadd.f32 %v2243_v23, %v2242_v20  ;;  %v2265_v63 = vpop.f32.mrb[21].mxu0  ;;  %v2245_v26 = vpop.f32.mrb[34].mxu1 }
 0xb90   : > { %v2266_v27 = vadd.f32 %v2265_v63, %v2264_v21  ;;  %v2267_v28 = vpop.f32.mrb[22].mxu0  ;;  %v2246_v29 = vpop.f32.mrb[35].mxu1 }
 0xb91   : > { %v1973_v30 = vadd.f32 %v2244_v24, %v2157_v22  ;;  %v2268_v32 = vpop.f32.mrb[23].mxu0 }
 0xb93   : > { %v2013_v33 = vadd.f32 %v2266_v27, %v1973_v30 }
 0xb95   : > { %v2018_v34 = vadd.f32 %v2013_v33, %v2853_v8 }
 0xb97   : > { %2019 = vst [vmem:[%s435_s30] sm:$0xff] %v2018_v34 }
 0xb98 PF: > { %s23_s25 = sadd.s32 1, %s2526_s25  }
 0xb99   : > { %p20_p4 = scmp.ge.s32.totalorder %s23_s25, 4  }
 0xb9b   :  { %22 = sbr.rel (!%p20_p4) target bundleno = 1 (0x1), region = 102 }

// kernel: forward.3
= control target key start
LH: loop header
LB: loop body
LE: loop exit
PB: predicated region body
PF: predicated region fallthrough
CT: control target
= control target key end

     0   :  { %s3789_s0 = inlined_call_operand.vmem [shape: f32[2,8,128], index: 0, kind: input, shape index: {}]   ;;  %s3790_s1 = inlined_call_operand.vmem [shape: f32[1,128], index: 1, kind: input, shape index: {}]   ;;  %s3791_s2 = inlined_call_operand.hbm [shape: f32[1,128], index: 2, kind: input, shape index: {}]   ;;  %s3792_s3 = inlined_call_operand.hbm [shape: bf16[128,384], index: 3, kind: input, shape index: {}]   ;;  %s3793_s4 = inlined_call_operand.hbm [shape: f32[1,384], index: 4, kind: input, shape index: {}]   ;;  %s3794_s5 = inlined_call_operand.hbm [shape: bf16[128,128], index: 5, kind: input, shape index: {}]   ;;  %s3795_s6 = inlined_call_operand.hbm [shape: f32[1,128], index: 6, kind: input, shape index: {}]   ;;  %s3796_s7 = inlined_call_operand.hbm [shape: f32[1,128], index: 7, kind: input, shape index: {}]   ;;  %s3797_s8 = inlined_call_operand.hbm [shape: f32[1,128], index: 8, kind: input, shape index: {}]   ;;  %s3798_s9 = inlined_call_operand.vmem [shape: bf16[128,512], index: 9, kind: input, shape index: {}]   ;;  %s3799_s10 = inlined_call_operand.hbm [shape: f32[1,512], index: 10, kind: input, shape index: {}]   ;;  %s3800_s11 = inlined_call_operand.hbm [shape: bf16[512,128], index: 11, kind: input, shape index: {}]   ;;  %s3801_s12 = inlined_call_operand.hbm [shape: f32[1,128], index: 12, kind: input, shape index: {}]   ;;  %s3802_s13 = inlined_call_operand.vmem [shape: f32[2,8,128], index: 13, kind: output, shape index: {}]  }
   0x1   :  { %3806 = sst [smem:[#allocation25_spill]] %s3792_s3 }
   0x2   :  { %3807 = sst [smem:[#allocation26_spill]] %s3802_s13 }
   0x3   :  { %18 = vsyncpa [#allocation3], 0 }
   0x4   :  { %19 = vsyncpa [#allocation5], 0 }
   0x5   :  { %20 = vsyncpa [#allocation8], 0 }
   0x6   :  { %21 = vsyncpa [#allocation11], 0 }
   0x7   :  { %22 = vsyncpa [#allocation14], 0 }
   0x8   :  { %23 = vsyncpa [#allocation17], 0  ;;  %s3277_s25 = smov 0  }
   0x9 LB: > { %3808 = sst [smem:[#allocation24_spill]] %s3185_s25  ;;  %s3187_s26 = smov [#allocation4]   ;;  %s3185_s25 = sphi %s3277_s25, %s29_s25  }
   0xa   : > { %s364_s27 = sshll.u32 %s3187_s26, 4  ;;  %s3283_s28 = sadd.s32 4294967295, %s3185_s25   ;;  %s3288_s27 = int_to_ptr.vmem [resolvable:$true] %s364_s27 }
   0xb   : > { %p2305_p0 = scmp.ge.s32.totalorder %s3185_s25, 1  ;;  %p338_p1 = scmp.lt.s32.totalorder %s3185_s25, 3 }
   0xc   : > { %p3804_p2 = scmp.eq.s32.totalorder %s3283_s28, 0  ;;  %s3188_s30 = smov [#allocation7]  }
   0xd   : > { %p3290_p3 = pnand %p2305_p0, %p338_p1  ;;  %s388_s14 = sshll.u32 %s3188_s30, 4  ;;  %s3296_s14 = int_to_ptr.vmem [resolvable:$true] %s388_s14 }
   0xe   : > { %s3189_s16 = smov [#allocation10]   ;;  %s3811_s3 = sld [smem:[#allocation25_spill]] }
   0xf   : > { %s3809_s29 = scalar_select %p3290_p3, 1, 0 }
  0x10   : > { %p2648_p4 = pneg %p3290_p3  ;;  %s3304_s17 = sshll.u32 %s3189_s16, 4  ;;  %s414_s17 = int_to_ptr.vmem [resolvable:$true] %s3304_s17 }
  0x12   : > { %p3300_p5 = pnand %p3804_p2, %p2648_p4 }
  0x14   : > { %s2875_s20 = scalar_lea.hbm %s3811_s3, 3072  ;;  %p3314_p7 = pneg %p3300_p5 }
  0x15   : > { %p2876_p6 = scmp.ne.s32.totalorder %s3811_s3, %s2875_s20  ;;  %p2882_p10 = scmp.lt.u32.totalorder %s2875_s20, %s3811_s3 }
  0x17   : > { %p2878_p8 = pnand %p3314_p7, %p2876_p6 }
  0x19   : > { %p2879_p9 = pneg %p2878_p8 }
  0x1b   : > { %p2884_p11 = pnand %p2882_p10, %p2879_p9 }
  0x1d   : > { %2887 = shalt.err (!%p2884_p11)
}
  0x1e   : > { %s2888_s30 = scalar_lea.vmem %s3288_s27, 3072  ;;  %p2896_p1 = scmp.lt.s32.totalorder %s3288_s27, %s3288_s27 }
  0x1f   : > { %p2889_p12 = scmp.ne.s32.totalorder %s3288_s27, %s2888_s30  ;;  %p2897_p4 = scmp.lt.s32.totalorder %s2888_s30, %s2888_s30 }
  0x21   : > { %p2891_p13 = pnand %p2889_p12, %p3314_p7  ;;  %p2898_p6 = por %p2897_p4, %p2896_p1 }
  0x23   : > { %p2892_p0 = pneg %p2891_p13 }
  0x25   : > { %p2899_p8 = pnand %p2898_p6, %p2892_p0 }
  0x27   : > { %2902 = shalt.err (!%p2899_p8)
}
  0x28   : > { %s3190_s16 = smov 192   ;;  %s3191_s18 = smov 12  }
  0x29   : > { %2654 = dma.hbm_to_vmem [thread:$0]  (!%p3300_p5), %s3811_s3, 3072, %s3288_s27, [#allocation5], %s3190_s16, %s3190_s16, %s3191_s18  }
  0x2a   : > { %s2903_s24 = scalar_lea.hbm %s3794_s5, 1024 }
  0x2b   : > { %p2904_p9 = scmp.ne.s32.totalorder %s3794_s5, %s2903_s24  ;;  %p2910_p12 = scmp.lt.u32.totalorder %s2903_s24, %s3794_s5 }
  0x2d   : > { %p2906_p10 = pnand %p2904_p9, %p3314_p7 }
  0x2f   : > { %p2907_p11 = pneg %p2906_p10 }
  0x31   : > { %p2912_p13 = pnand %p2910_p12, %p2907_p11 }
  0x33   : > { %2915 = shalt.err (!%p2912_p13)
}
  0x34   : > { %s2916_s27 = scalar_lea.vmem %s3296_s14, 1024  ;;  %p2924_p6 = scmp.lt.s32.totalorder %s3296_s14, %s3296_s14 }
  0x35   : > { %p2917_p0 = scmp.ne.s32.totalorder %s3296_s14, %s2916_s27  ;;  %p2925_p8 = scmp.lt.s32.totalorder %s2916_s27, %s2916_s27 }
  0x37   : > { %p2919_p1 = pnand %p2917_p0, %p3314_p7  ;;  %p2926_p9 = por %p2925_p8, %p2924_p6 }
  0x39   : > { %p2920_p4 = pneg %p2919_p1 }
  0x3b   : > { %p2927_p10 = pnand %p2926_p9, %p2920_p4 }
  0x3d   : > { %2930 = shalt.err (!%p2927_p10)
}
  0x3e   : > { %s3192_s25 = smov 64   ;;  %s3193_s13 = smov 4  }
  0x3f   : > { %2660 = dma.hbm_to_vmem [thread:$0]  (!%p3300_p5), %s3794_s5, 1024, %s3296_s14, [#allocation8], %s3192_s25, %s3192_s25, %s3193_s13  }
  0x40   : > { %s3194_s19 = smov [#allocation13]   ;;  %s2931_s24 = scalar_lea.hbm %s3796_s7, 16 }
  0x41   : > { %s438_s20 = sshll.u32 %s3194_s19, 4  ;;  %p2932_p11 = scmp.ne.s32.totalorder %s3796_s7, %s2931_s24  ;;  %s439_s20 = int_to_ptr.vmem [resolvable:$true] %s438_s20 }
  0x42   : > { %p2938_p0 = scmp.lt.u32.totalorder %s2931_s24, %s3796_s7 }
  0x43   : > { %p2934_p12 = pnand %p2932_p11, %p3314_p7 }
  0x45   : > { %p2935_p13 = pneg %p2934_p12 }
  0x47   : > { %p2940_p1 = pnand %p2938_p0, %p2935_p13 }
  0x49   : > { %2943 = shalt.err (!%p2940_p1)
}
  0x4a   : > { %s2944_s14 = scalar_lea.vmem %s414_s17, 16  ;;  %s2951_s16 = scalar_lea.vmem %s414_s17, 32 }
  0x4b   : > { %p2945_p4 = scmp.ne.s32.totalorder %s414_s17, %s2944_s14  ;;  %p2952_p9 = scmp.lt.s32.totalorder %s414_s17, %s414_s17 }
  0x4c   : > { %p2953_p10 = scmp.lt.s32.totalorder %s2951_s16, %s2944_s14 }
  0x4d   : > { %p2947_p6 = pnand %p2945_p4, %p3314_p7 }
  0x4e   : > { %p2954_p2 = por %p2953_p10, %p2952_p9 }
  0x4f   : > { %p2948_p8 = pneg %p2947_p6 }
  0x51   : > { %p2955_p3 = pnand %p2954_p2, %p2948_p8 }
  0x53   : > { %2958 = shalt.err (!%p2955_p3)
}
  0x54   : > { %2666 = dma.hbm_to_vmem [thread:$0]  (!%p3300_p5), %s3796_s7, 16, %s414_s17, [#allocation11]  }
  0x55   : > { %s2959_s22 = scalar_lea.hbm %s3799_s10, 64 }
  0x56   : > { %p2960_p11 = scmp.ne.s32.totalorder %s3799_s10, %s2959_s22  ;;  %p2966_p3 = scmp.lt.u32.totalorder %s2959_s22, %s3799_s10 }
  0x58   : > { %p2962_p12 = pnand %p2960_p11, %p3314_p7 }
  0x5a   : > { %p2963_p2 = pneg %p2962_p12 }
  0x5c   : > { %p2968_p13 = pnand %p2966_p3, %p2963_p2 }
  0x5e   : > { %2971 = shalt.err (!%p2968_p13)
}
  0x5f   : > { %s2972_s14 = scalar_lea.vmem %s439_s20, 64  ;;  %p2980_p6 = scmp.lt.s32.totalorder %s439_s20, %s439_s20 }
  0x60   : > { %p2973_p0 = scmp.ne.s32.totalorder %s439_s20, %s2972_s14  ;;  %p2981_p8 = scmp.lt.s32.totalorder %s2972_s14, %s2972_s14 }
  0x62   : > { %p2975_p1 = pnand %p2973_p0, %p3314_p7  ;;  %p2982_p9 = por %p2981_p8, %p2980_p6 }
  0x64   : > { %p2976_p4 = pneg %p2975_p1 }
  0x66   : > { %p2983_p10 = pnand %p2982_p9, %p2976_p4 }
  0x68   : > { %2986 = shalt.err (!%p2983_p10)
}
  0x69   : > { %2672 = dma.hbm_to_vmem [thread:$0]  (!%p3300_p5), %s3799_s10, 64, %s439_s20, [#allocation14]  }
  0x6a   : > { %s3195_s18 = smov [#allocation2]   ;;  %s3196_s3 = smov [#allocation6]  }
  0x6b   : > { %s354_s19 = sshll.u32 %s3195_s18, 4  ;;  %s378_s21 = sshll.u32 %s3196_s3, 4  ;;  %s355_s19 = int_to_ptr.vmem [resolvable:$true] %s354_s19  ;;  %s379_s21 = int_to_ptr.vmem [resolvable:$true] %s378_s21 }
  0x6c   : > { %s2987_s26 = scalar_lea.hbm %s3791_s2, 16 }
  0x6d   : > { %p2988_p11 = scmp.ne.s32.totalorder %s3791_s2, %s2987_s26  ;;  %p2994_p3 = scmp.lt.u32.totalorder %s2987_s26, %s3791_s2 }
  0x6f   : > { %p2990_p12 = pnand %p2988_p11, %p3314_p7 }
  0x71   : > { %p2991_p2 = pneg %p2990_p12 }
  0x73   : > { %p2996_p13 = pnand %p2994_p3, %p2991_p2 }
  0x75   : > { %2999 = shalt.err (!%p2996_p13)
}
  0x76   : > { %s3000_s20 = scalar_lea.vmem %s355_s19, 16  ;;  %s3007_s16 = scalar_lea.vmem %s355_s19, 32 }
  0x77   : > { %p3001_p0 = scmp.ne.s32.totalorder %s355_s19, %s3000_s20  ;;  %p3008_p6 = scmp.lt.s32.totalorder %s355_s19, %s355_s19 }
  0x78   : > { %p3009_p8 = scmp.lt.s32.totalorder %s3007_s16, %s3000_s20 }
  0x79   : > { %p3003_p1 = pnand %p3001_p0, %p3314_p7 }
  0x7a   : > { %p3010_p9 = por %p3009_p8, %p3008_p6 }
  0x7b   : > { %p3004_p4 = pneg %p3003_p1 }
  0x7d   : > { %p3011_p10 = pnand %p3010_p9, %p3004_p4 }
  0x7f   : > { %3014 = shalt.err (!%p3011_p10)
}
  0x80   : > { %2651 = dma.hbm_to_vmem [thread:$0]  (!%p3300_p5), %s3791_s2, 16, %s355_s19, [#allocation3]  }
  0x81   : > { %s3015_s26 = scalar_lea.hbm %s3793_s4, 48 }
  0x82   : > { %p3016_p11 = scmp.ne.s32.totalorder %s3793_s4, %s3015_s26  ;;  %p3022_p3 = scmp.lt.u32.totalorder %s3015_s26, %s3793_s4 }
  0x84   : > { %p3018_p12 = pnand %p3016_p11, %p3314_p7 }
  0x86   : > { %p3019_p2 = pneg %p3018_p12 }
  0x88   : > { %p3024_p13 = pnand %p3022_p3, %p3019_p2 }
  0x8a   : > { %3027 = shalt.err (!%p3024_p13)
}
  0x8b   : > { %s3028_s20 = scalar_lea.vmem %s379_s21, 48  ;;  %s3035_s19 = scalar_lea.vmem %s379_s21, 64 }
  0x8c   : > { %p3029_p0 = scmp.ne.s32.totalorder %s379_s21, %s3028_s20  ;;  %p3036_p6 = scmp.lt.s32.totalorder %s379_s21, %s379_s21 }
  0x8d   : > { %p3037_p8 = scmp.lt.s32.totalorder %s3035_s19, %s3028_s20 }
  0x8e   : > { %p3031_p1 = pnand %p3029_p0, %p3314_p7 }
  0x8f   : > { %p3038_p9 = por %p3037_p8, %p3036_p6 }
  0x90   : > { %p3032_p4 = pneg %p3031_p1 }
  0x92   : > { %p3039_p10 = pnand %p3038_p9, %p3032_p4 }
  0x94   : > { %3042 = shalt.err (!%p3039_p10)
}
  0x95   : > { %2657 = dma.hbm_to_vmem [thread:$0]  (!%p3300_p5), %s3793_s4, 48, %s379_s21, [#allocation5]  }
  0x96   : > { %s3197_s3 = smov [#allocation9]   ;;  %s3198_s24 = smov [#allocation12]  }
  0x97   : > { %s402_s22 = sshll.u32 %s3197_s3, 4  ;;  %s424_s26 = sshll.u32 %s3198_s24, 4  ;;  %s403_s22 = int_to_ptr.vmem [resolvable:$true] %s402_s22  ;;  %s425_s26 = int_to_ptr.vmem [resolvable:$true] %s424_s26 }
  0x98   : > { %s3043_s14 = scalar_lea.hbm %s3795_s6, 16 }
  0x99   : > { %p3044_p11 = scmp.ne.s32.totalorder %s3795_s6, %s3043_s14  ;;  %p3050_p3 = scmp.lt.u32.totalorder %s3043_s14, %s3795_s6 }
  0x9b   : > { %p3046_p12 = pnand %p3044_p11, %p3314_p7 }
  0x9d   : > { %p3047_p2 = pneg %p3046_p12 }
  0x9f   : > { %p3052_p13 = pnand %p3050_p3, %p3047_p2 }
  0xa1   : > { %3055 = shalt.err (!%p3052_p13)
}
  0xa2   : > { %s3056_s21 = scalar_lea.vmem %s403_s22, 16  ;;  %s3063_s18 = scalar_lea.vmem %s403_s22, 32 }
  0xa3   : > { %p3057_p0 = scmp.ne.s32.totalorder %s403_s22, %s3056_s21  ;;  %p3064_p6 = scmp.lt.s32.totalorder %s403_s22, %s403_s22 }
  0xa4   : > { %p3065_p8 = scmp.lt.s32.totalorder %s3063_s18, %s3056_s21 }
  0xa5   : > { %p3059_p1 = pnand %p3057_p0, %p3314_p7 }
  0xa6   : > { %p3066_p9 = por %p3065_p8, %p3064_p6 }
  0xa7   : > { %p3060_p4 = pneg %p3059_p1 }
  0xa9   : > { %p3067_p10 = pnand %p3066_p9, %p3060_p4 }
  0xab   : > { %3070 = shalt.err (!%p3067_p10)
}
  0xac   : > { %2663 = dma.hbm_to_vmem [thread:$0]  (!%p3300_p5), %s3795_s6, 16, %s403_s22, [#allocation8]  }
  0xad   : > { %s3071_s14 = scalar_lea.hbm %s3797_s8, 16 }
  0xae   : > { %p3072_p11 = scmp.ne.s32.totalorder %s3797_s8, %s3071_s14  ;;  %p3078_p3 = scmp.lt.u32.totalorder %s3071_s14, %s3797_s8 }
  0xb0   : > { %p3074_p12 = pnand %p3072_p11, %p3314_p7 }
  0xb2   : > { %p3075_p2 = pneg %p3074_p12 }
  0xb4   : > { %p3080_p13 = pnand %p3078_p3, %p3075_p2 }
  0xb6   : > { %3083 = shalt.err (!%p3080_p13)
}
  0xb7   : > { %s3084_s21 = scalar_lea.vmem %s425_s26, 16  ;;  %s3091_s22 = scalar_lea.vmem %s425_s26, 32 }
  0xb8   : > { %p3085_p0 = scmp.ne.s32.totalorder %s425_s26, %s3084_s21  ;;  %p3092_p6 = scmp.lt.s32.totalorder %s425_s26, %s425_s26 }
  0xb9   : > { %p3093_p8 = scmp.lt.s32.totalorder %s3091_s22, %s3084_s21 }
  0xba   : > { %p3087_p1 = pnand %p3085_p0, %p3314_p7 }
  0xbb   : > { %p3094_p9 = por %p3093_p8, %p3092_p6 }
  0xbc   : > { %p3088_p4 = pneg %p3087_p1 }
  0xbe   : > { %p3095_p10 = pnand %p3094_p9, %p3088_p4 }
  0xc0   : > { %3098 = shalt.err (!%p3095_p10)
}
  0xc1   : > { %2669 = dma.hbm_to_vmem [thread:$0]  (!%p3300_p5), %s3797_s8, 16, %s425_s26, [#allocation11]  }
  0xc2   : > { %s3199_s24 = smov [#allocation15]   ;;  %s3200_s27 = smov [#allocation16]  }
  0xc3   : > { %s448_s30 = sshll.u32 %s3199_s24, 4  ;;  %s462_s14 = sshll.u32 %s3200_s27, 4  ;;  %s449_s30 = int_to_ptr.vmem [resolvable:$true] %s448_s30  ;;  %s463_s14 = int_to_ptr.vmem [resolvable:$true] %s462_s14 }
  0xc4   : > { %s3099_s19 = scalar_lea.hbm %s3800_s11, 4096 }
  0xc5   : > { %p3100_p11 = scmp.ne.s32.totalorder %s3800_s11, %s3099_s19  ;;  %p3106_p3 = scmp.lt.u32.totalorder %s3099_s19, %s3800_s11 }
  0xc7   : > { %p3102_p12 = pnand %p3100_p11, %p3314_p7 }
  0xc9   : > { %p3103_p2 = pneg %p3102_p12 }
  0xcb   : > { %p3108_p13 = pnand %p3106_p3, %p3103_p2 }
  0xcd   : > { %3111 = shalt.err (!%p3108_p13)
}
  0xce   : > { %s3112_s26 = scalar_lea.vmem %s449_s30, 4096  ;;  %p3120_p6 = scmp.lt.s32.totalorder %s449_s30, %s449_s30 }
  0xcf   : > { %p3113_p0 = scmp.ne.s32.totalorder %s449_s30, %s3112_s26  ;;  %p3121_p8 = scmp.lt.s32.totalorder %s3112_s26, %s3112_s26 }
  0xd1   : > { %p3115_p1 = pnand %p3113_p0, %p3314_p7  ;;  %p3122_p9 = por %p3121_p8, %p3120_p6 }
  0xd3   : > { %p3116_p4 = pneg %p3115_p1 }
  0xd5   : > { %p3123_p10 = pnand %p3122_p9, %p3116_p4 }
  0xd7   : > { %3126 = shalt.err (!%p3123_p10)
}
  0xd8   : > { %2675 = dma.hbm_to_vmem [thread:$0]  (!%p3300_p5), %s3800_s11, 4096, %s449_s30, [#allocation14], %s3192_s25, %s3192_s25, %s3193_s13  }
  0xd9   : > { %s3127_s20 = scalar_lea.hbm %s3801_s12, 16 }
  0xda   : > { %p3128_p11 = scmp.ne.s32.totalorder %s3801_s12, %s3127_s20  ;;  %p3134_p3 = scmp.lt.u32.totalorder %s3127_s20, %s3801_s12 }
  0xdc   : > { %p3130_p12 = pnand %p3128_p11, %p3314_p7 }
  0xde   : > { %p3131_p2 = pneg %p3130_p12 }
  0xe0   : > { %p3136_p13 = pnand %p3134_p3, %p3131_p2 }
  0xe2   : > { %3139 = shalt.err (!%p3136_p13)
}
  0xe3   : > { %s3140_s18 = scalar_lea.vmem %s463_s14, 16  ;;  %s3147_s25 = scalar_lea.vmem %s463_s14, 32 }
  0xe4   : > { %p3141_p0 = scmp.ne.s32.totalorder %s463_s14, %s3140_s18  ;;  %p3148_p6 = scmp.lt.s32.totalorder %s463_s14, %s463_s14 }
  0xe5   : > { %p3149_p8 = scmp.lt.s32.totalorder %s3147_s25, %s3140_s18 }
  0xe6   : > { %p3143_p1 = pnand %p3141_p0, %p3314_p7 }
  0xe7   : > { %p3150_p9 = por %p3149_p8, %p3148_p6 }
  0xe8   : > { %p3144_p4 = pneg %p3143_p1 }
  0xea   : > { %p3151_p10 = pnand %p3150_p9, %p3144_p4 }
  0xec   : > { %3154 = shalt.err (!%p3151_p10)
}
  0xed   : > { %2678 = dma.hbm_to_vmem [thread:$0]  (!%p3300_p5), %s3801_s12, 16, %s463_s14, [#allocation17]  }
  0xee   : > { %p3813_p11 = scmp.ne.s32.totalorder %s3809_s29, 0 }
  0xef   : > { %p3814_p12 = scmp.eq.s32.totalorder (!%p3813_p11), %s3283_s28, 0 }
  0xf0   : > { %482 = sbr.rel (%p3813_p11) target bundleno = 3221 (0xc95), region = 72 }
  0xf7   : > { %3160 = dma.done.wait (%p3814_p12), [#allocation3], 16   ;;  %p3815_p7 = pmov %p3814_p12 }
  0xf9   : > { %3162 = vsyncadd (%p3815_p7), [#allocation3], 4294967280  ;;  %p3816_p2 = pmov %p3815_p7 }
  0xfb   : > { %3164 = dma.done.wait (%p3816_p2), [#allocation5], 3120   ;;  %p3817_p3 = pmov %p3816_p2 }
  0xfc   : > { %p3818_p13 = pmov %p3816_p2 }
  0xfd   : > { %3166 = vsyncadd (%p3817_p3), [#allocation5], 4294964176 }
  0xfe   : > { %3168 = dma.done.wait (%p3818_p13), [#allocation8], 1040   ;;  %p3819_p5 = pmov %p3816_p2 }
  0xff   : > { %p3820_p0 = pmov %p3816_p2 }
 0x100   : > { %3170 = vsyncadd (%p3819_p5), [#allocation8], 4294966256 }
 0x101   : > { %3172 = dma.done.wait (%p3820_p0), [#allocation11], 32   ;;  %p3821_p1 = pmov %p3820_p0 }
 0x102   : > { %p3822_p4 = pmov %p3820_p0 }
 0x103   : > { %3174 = vsyncadd (%p3821_p1), [#allocation11], 4294967264 }
 0x104   : > { %3176 = dma.done.wait (%p3822_p4), [#allocation14], 4160   ;;  %p3823_p6 = pmov %p3820_p0 }
 0x105   : > { %p3824_p8 = pmov %p3820_p0 }
 0x106   : > { %3178 = vsyncadd (%p3823_p6), [#allocation14], 4294963136 }
 0x107   : > { %3180 = dma.done.wait (%p3824_p8), [#allocation17], 16   ;;  %p3825_p9 = pmov %p3820_p0 }
 0x108   : > { %p560_p10 = scmp.lt.s32.totalorder %s3283_s28, 1  ;;  %v2727_v1 = vld [vmem:[#allocation4 + $0x4] ss:$12 sps:$4 sm:$0xff]   ;;  %v2729_v2 = vld [vmem:[#allocation4] ss:$12 sps:$4 sm:$0xff]   ;;  %v3201_v3 = vmov 0.0   ;;  %v633_v41 = vlaneseq }
 0x109   : > { %3182 = vsyncadd (%p3825_p9), [#allocation17], 4294967280  ;;  %2520 = vmatprep.subr.bf16.mxu1 %v3201_v3  ;;  %v2730_v4 = vld [vmem:[#allocation4 + $0x8] ss:$12 sps:$4 sm:$0xff]   ;;  %v2733_v6 = vld [vmem:[#allocation4 + $0x18] ss:$12 sps:$4 sm:$0xff]   ;;  %776 = vmatprep.subr.bf16.mxu0 %v2727_v1 }
 0x10a   : > { %s3829_s28 = smov (!%p560_p10, %s3283_s28), 1  ;;  %v2731_v5 = vld [vmem:[#allocation4 + $0x1c] ss:$12 sps:$4 sm:$0xff]   ;;  %v2734_v7 = vld [vmem:[#allocation4 + $0x20] ss:$12 sps:$4 sm:$0xff]   ;;  %777 = vmatpush1.bf16.msra.mxu0 %v2729_v2  ;;  %2521 = vmatpush3.bf16.msra.mxu1 %v2730_v4  ;;  %v3202_v25 = vmov 0  }
 0x10b   : > { %s2328_s29 = sshll.u32 %s3829_s28, 3  ;;  %v2735_v8 = vld [vmem:[#allocation4 + $0x34] ss:$12 sps:$4 sm:$0xff]   ;;  %778 = vmatprep.subr.bf16.mxu0 %v2731_v5  ;;  %2522 = vmatprep.subr.bf16.mxu1 %v3201_v3  ;;  %v2737_v13 = vld [vmem:[#allocation4 + $0x30] ss:$12 sps:$4 sm:$0xff]   ;;  %vm3203_vm0 = vmmov 0  }
 0x10c   : > { %s563_s14 = scalar_lea.vmem %s3789_s0, %s2328_s29  ;;  %v2738_v14 = vld [vmem:[#allocation4 + $0x38] ss:$12 sps:$4 sm:$0xff]   ;;  %v2741_v16 = vld [vmem:[#allocation4 + $0x48] ss:$12 sps:$4 sm:$0xff]   ;;  %v2742_v17 = vld [vmem:[#allocation4 + $0x50] ss:$12 sps:$4 sm:$0xff]   ;;  %808 = vmatprep.mubr.bf16.mxu0 %v3202_v25  ;;  %2536 = vmatprep.mubr.msk.bf16.mxu1 %vm3203_vm0, %v3201_v3 }
 0x10d   : > { %v3545_v0 = vld [vmem:[%s563_s14] sm:$0xff]  ;;  %v2739_v15 = vld [vmem:[#allocation4 + $0x4c] ss:$12 sps:$4 sm:$0xff]   ;;  %v2746_v20 = vld [vmem:[#allocation4 + $0x68] ss:$12 sps:$4 sm:$0xff]   ;;  %v3569_v42 = vshrl.u32 %v633_v41, 7 }
 0x10e   : > { %572 = vadd.xlane.f32.xlu0 %v3545_v0  ;;  %779 = vmatpush1.bf16.msra.mxu0 %v2733_v6  ;;  %v2743_v18 = vld [vmem:[#allocation4 + $0x64] ss:$12 sps:$4 sm:$0xff]   ;;  %v2745_v19 = vld [vmem:[#allocation4 + $0x60] ss:$12 sps:$4 sm:$0xff]   ;;  %v2747_v21 = vld [vmem:[#allocation4 + $0x7c] ss:$12 sps:$4 sm:$0xff]  }
 0x10f   : > { %2523 = vmatpush3.bf16.msra.mxu1 %v2734_v7  ;;  %780 = vmatprep.subr.bf16.mxu0 %v2735_v8  ;;  %v2749_v22 = vld [vmem:[#allocation4 + $0x78] ss:$12 sps:$4 sm:$0xff]   ;;  %v2750_v23 = vld [vmem:[#allocation4 + $0x80] ss:$12 sps:$4 sm:$0xff]   ;;  %v2753_v26 = vld [vmem:[#allocation4 + $0x90] ss:$12 sps:$4 sm:$0xff]  }
 0x110   : > { %2524 = vmatprep.subr.bf16.mxu1 %v3201_v3  ;;  %v2751_v24 = vld [vmem:[#allocation4 + $0x94] ss:$12 sps:$4 sm:$0xff]   ;;  %v2754_v27 = vld [vmem:[#allocation4 + $0x98] ss:$12 sps:$4 sm:$0xff]   ;;  %v2758_v30 = vld [vmem:[#allocation4 + $0xb0] ss:$12 sps:$4 sm:$0xff]  }
 0x111   : > { %v2755_v28 = vld [vmem:[#allocation4 + $0xac] ss:$12 sps:$4 sm:$0xff]   ;;  %v2757_v29 = vld [vmem:[#allocation4 + $0xa8] ss:$12 sps:$4 sm:$0xff]   ;;  %v2330_v35 = vld [vmem:[%s3790_s1] ss:$0 sm:$0xff] }
 0x112   : > { %781 = vmatpush1.bf16.msra.mxu0 %v2737_v13  ;;  %v2331_v37 = vld [vmem:[#allocation2] ss:$0 sm:$0xff]  ;;  %v639_v43 = vsub.s32 1, %v3569_v42  ;;  %v631_v44 = vld [vmem:[#allocation6] sm:$0x7]  ;;  %v643_v45 = vsub.s32 2, %v3569_v42 }
 0x113   : > { %2525 = vmatpush3.bf16.msra.mxu1 %v2738_v14  ;;  %782 = vmatprep.subr.bf16.mxu0 %v2739_v15  ;;  %v635_v47 = vsub.s32 0, %v3569_v42  ;;  %vm865_vm1 = vcmask 261120   ;;  %s3204_s24 = smov 96   ;;  %s3205_s27 = smov 32   ;;  %vm930_vm2 = vcmask 1043456   ;;  %v3592_v4 = vand.u32 127, %v633_v41 }
 0x114   : > { %2526 = vmatprep.subr.bf16.mxu1 %v3201_v3  ;;  %v640_v46 = vrot.slane %v631_v44, %v639_v43  ;;  %v644_v52 = vrot.slane %v631_v44, %v643_v45  ;;  %vm914_vm4 = vcmask 64512   ;;  %s3206_s17 = smov 64   ;;  %vm1326_vm5 = vcmask 523264  }
 0x115   : > { %v636_v58 = vrot.slane %v631_v44, %v635_v47  ;;  %vm861_vm3 = vcmp.le.s32.totalorder %v3592_v4, %v3569_v42  ;;  %vm1328_vm6 = vcmask 785408  }
 0x116   : > { %783 = vmatpush1.bf16.msra.mxu0 %v2741_v16 }
 0x117   : > { %2527 = vmatpush3.bf16.msra.mxu1 %v2742_v17  ;;  %784 = vmatprep.subr.bf16.mxu0 %v2743_v18 }
 0x118   : > { %2528 = vmatprep.subr.bf16.mxu1 %v3201_v3 }
 0x11a   : > { %785 = vmatpush1.bf16.msra.mxu0 %v2745_v19 }
 0x11b   : > { %2529 = vmatpush3.bf16.msra.mxu1 %v2746_v20  ;;  %786 = vmatprep.subr.bf16.mxu0 %v2747_v21 }
 0x11c   : > { %2530 = vmatprep.subr.bf16.mxu1 %v3201_v3 }
 0x11e   : > { %787 = vmatpush1.bf16.msra.mxu0 %v2749_v22 }
 0x11f   : > { %2531 = vmatpush3.bf16.msra.mxu1 %v2750_v23  ;;  %788 = vmatprep.subr.bf16.mxu0 %v2751_v24 }
 0x120   : > { %2532 = vmatprep.subr.bf16.mxu1 %v3201_v3 }
 0x122   : > { %789 = vmatpush1.bf16.msra.mxu0 %v2753_v26 }
 0x123   : > { %2533 = vmatpush3.bf16.msra.mxu1 %v2754_v27  ;;  %790 = vmatprep.subr.bf16.mxu0 %v2755_v28 }
 0x124   : > { %2534 = vmatprep.subr.bf16.mxu1 %v3201_v3 }
 0x126   : > { %791 = vmatpush1.bf16.msra.mxu0 %v2757_v29 }
 0x127   : > { %2535 = vmatpush3.bf16.msra.mxu1 %v2758_v30  ;;  %2564 = vmatprep.subr.bf16.mxu0 %v3201_v3 }
 0x128   : > { %2540 = vmatprep.subr.bf16.mxu1 %v3201_v3 }
 0x19b   : > { %v573_v9 = vpop.xlane.xlu0 %572 }
 0x19c   : > { %v575_v10 = vmul.f32 0.0078125, %v573_v9 }
 0x19e   : > { %v576_v11 = vsub.f32 %v3545_v0, %v575_v10 }
 0x1a0   : > { %v577_v12 = vmul.f32 %v576_v11, %v576_v11 }
 0x1a2   : > { %578 = vadd.xlane.f32.xlu0 %v577_v12 }
 0x22f   : > { %v579_v31 = vpop.xlane.xlu0 %578 }
 0x230   : > { %v580_v32 = vmul.f32 0.0078125, %v579_v31 }
 0x232   : > { %v581_v33 = vadd.f32 1e-05, %v580_v32 }
 0x234   : > { %2847 = vrsqrt.f32 %v581_v33 }
 0x23e   : > { %v2848_v34 = vpop.eup %2847 }
 0x23f   : > { %v583_v36 = vmul.f32 %v2848_v34, %v576_v11 }
 0x241   : > { %v590_v38 = vmul.f32 %v2330_v35, %v583_v36 }
 0x243   : > { %v597_v39 = vadd.f32 %v2331_v37, %v590_v38 }
 0x245   : > { %v598_v40 = vpack.c.bf16 %v597_v39, %v597_v39 }
 0x247   : > { %809 = vmatmul.mubr.bf16.vlgmr.msra.gmra.mrb[0].mxu0 %v598_v40  ;;  %2537 = vmatmul.mubr.bf16.vlgmr.msra.gmra.mrb[0].mxu1 %v598_v40 }
 0x248   : > { %2542 = vmatprep.mubr.msk.bf16.mxu1 %vm3203_vm0, %v3201_v3  ;;  %2566 = vmatprep.mubr.msk.bf16.mxu0 %vm3203_vm0, %v3201_v3 }
 0x31a   : > { %v810_v48 = vpop.f32.mrb[0].mxu0  ;;  %v851_v49 = vpop.f32.mrb[0].mxu1 }
 0x31b   : > { %v812_v50 = vpop.f32.mrb[1].mxu0  ;;  %v2538_v51 = vpop.f32.mrb[1].mxu1  ;;  %v852_v60 = vadd.f32 %v851_v49, %v644_v52  ;;  %v811_v62 = vadd.f32 %v810_v48, %v636_v58 }
 0x31c   : > { %v813_v53 = vadd.f32 %v812_v50, %v640_v46  ;;  %v814_v54 = vpop.f32.mrb[2].mxu0  ;;  %v854_v55 = vpop.f32.mrb[2].mxu1 }
 0x31d   : > { %v815_v56 = vpop.f32.mrb[3].mxu0  ;;  %v2539_v57 = vpop.f32.mrb[3].mxu1  ;;  %v3583_v63 = vpack.c.bf16 %v852_v60, %v852_v60  ;;  %v862_v1 = vpack.c.bf16 %v811_v62, %v811_v62 }
 0x31e   : > { %v863_v59 = vpack.c.bf16 %v813_v53, %v813_v53 }
 0x31f   : > { %v932_v2 = vsel %vm930_vm2, %v3583_v63, 0 }
 0x320   : > { %978 = vrot.lane.b32.xlu0 %v863_v59, %s3204_s24  ;;  %v870_v61 = vsel %vm865_vm1, %v863_v59, 0 }
 0x321   : > { %2541 = vmatpush3.bf16.xpose.msra.mxu1 %v870_v61 }
 0x322   : > { %2546 = vmatprep.subr.bf16.mxu1 %v3201_v3 }
 0x324   : > { %1203 = vrot.lane.b32.xlu0 %v863_v59, %s3205_s27 }
 0x328   : > { %2543 = vmatmul.mubr.msk.bf16.vlgmr.msra.gmra.mrb[4].mxu1 %vm865_vm1, %v862_v1 }
 0x329   : > { %2547 = vmatpush3.bf16.msra.mxu1 %v932_v2  ;;  %2548 = vmatprep.mubr.msk.bf16.mxu1 %vm3203_vm0, %v3201_v3 }
 0x32a   : > { %2552 = vmatprep.subr.bf16.mxu1 %v3201_v3 }
 0x392   : > { %v979_v19 = vpop.permute.xlu0 %978 }
 0x393   : > { %v984_v27 = vsel %vm865_vm1, %v979_v19, 0 }
 0x396   : > { %v1204_v24 = vpop.permute.xlu0 %1203 }
 0x397   : > { %v1209_v29 = vsel %vm865_vm1, %v1204_v24, 0 }
 0x3fb   : > { %v906_v5 = vpop.f32.mrb[4].mxu1 }
 0x3fc   : > { %v912_v6 = vmul.f32 0.17677669, %v906_v5  ;;  %v2544_v7 = vpop.f32.mrb[5].mxu1 }
 0x3fd   : > { %v909_v8 = vpop.f32.mrb[6].mxu1 }
 0x3fe   : > { %v2545_v9 = vpop.f32.mrb[7].mxu1  ;;  %v913_v10 = vsel %vm861_vm3, %v912_v6, -1e+30 }
 0x3ff   : > { %v915_v11 = vsel %vm914_vm4, %v913_v10, -inf }
 0x400   : > { %916 = vmax.xlane.f32.xlu1 %v915_v11 }
 0x48d   : > { %v917_v12 = vpop.xlane.xlu1 %916 }
 0x48e   : > { %v918_v13 = vsub.f32 %v913_v10, %v917_v12 }
 0x490   : > { %v919_v14 = vmul.f32 1.442695, %v918_v13 }
 0x492   : > { %2849 = vpow2.f32 %v919_v14 }
 0x49c   : > { %v2850_v15 = vpop.eup %2849 }
 0x49d   : > { %v921_v16 = vsel %vm914_vm4, %v2850_v15, 0.0 }
 0x49e   : > { %922 = vadd.xlane.f32.xlu1 %v921_v16 }
 0x4af   : > { %975 = vrot.lane.b32.xlu1 %v862_v1, %s3204_s24 }
 0x4b3   : > { %1091 = vrot.lane.b32.xlu1 %v863_v59, %s3206_s17 }
 0x4b7   : > { %1089 = vrot.lane.b32.xlu1 %v862_v1, %s3206_s17 }
 0x4bb   : > { %1201 = vrot.lane.b32.xlu1 %v862_v1, %s3205_s27 }
 0x52b   : > { %v923_v17 = vpop.xlane.xlu1 %922 }
 0x52c   : > { %2851 = vrcp.f32 %v923_v17 }
 0x52f   : > { %v976_v18 = vpop.permute.xlu1 %975 }
 0x533   : > { %v1092_v20 = vpop.permute.xlu1 %1091 }
 0x534   : > { %v1097_v21 = vsel %vm865_vm1, %v1092_v20, 0 }
 0x535   : > { %2565 = vmatpush3.bf16.xpose.msra.mxu0 %v1097_v21 }
 0x536   : > { %v2852_v22 = vpop.eup %2851  ;;  %2576 = vmatprep.subr.bf16.mxu0 %v3201_v3 }
 0x537   : > { %v925_v23 = vmul.f32 %v2852_v22, %v2850_v15  ;;  %v1090_v28 = vpop.permute.xlu1 %1089 }
 0x539   : > { %v926_v26 = vpack.c.bf16 %v925_v23, %v925_v23 }
 0x53b   : > { %2549 = vmatmul.mubr.msk.bf16.vlgmr.msra.gmra.mrb[8].mxu1 %vm914_vm4, %v926_v26  ;;  %v1202_v30 = vpop.permute.xlu1 %1201 }
 0x53c   : > { %2553 = vmatpush3.bf16.xpose.msra.mxu1 %v984_v27  ;;  %2567 = vmatmul.mubr.msk.bf16.vlgmr.msra.gmra.mrb[4].mxu0 %vm865_vm1, %v1090_v28 }
 0x53d   : > { %2577 = vmatpush3.bf16.xpose.msra.mxu0 %v1209_v29  ;;  %2554 = vmatprep.mubr.msk.bf16.mxu1 %vm3203_vm0, %v3201_v3 }
 0x53e   : > { %2578 = vmatprep.mubr.msk.bf16.mxu0 %vm3203_vm0, %v3201_v3  ;;  %2558 = vmatprep.subr.bf16.mxu1 %v3201_v3 }
 0x53f   : > { %2588 = vmatprep.subr.bf16.mxu0 %v3201_v3 }
 0x543   : > { %2555 = vmatmul.mubr.msk.bf16.vlgmr.msra.gmra.mrb[12].mxu1 %vm865_vm1, %v976_v18 }
 0x544   : > { %2579 = vmatmul.mubr.msk.bf16.vlgmr.msra.gmra.mrb[8].mxu0 %vm865_vm1, %v1202_v30  ;;  %2560 = vmatprep.mubr.msk.bf16.mxu1 %vm3203_vm0, %v3201_v3 }
 0x545   : > { %2604 = vmatprep.mubr.msk.bf16.mxu0 %vm3203_vm0, %v3201_v3 }
 0x60e   : > { %v3623_v31 = vpop.f32.mrb[8].mxu1 }
 0x60f   : > { %v2550_v32 = vpop.f32.mrb[9].mxu1  ;;  %v1133_v33 = vpop.f32.mrb[4].mxu0 }
 0x610   : > { %v1139_v34 = vmul.f32 0.17677669, %v1133_v33  ;;  %v971_v35 = vpop.f32.mrb[10].mxu1  ;;  %v2568_v36 = vpop.f32.mrb[5].mxu0  ;;  %v2759_v33 = vld [vmem:[#allocation7] sm:$0xff]  }
 0x611   : > { %v2551_v37 = vpop.f32.mrb[11].mxu1  ;;  %v1136_v38 = vpop.f32.mrb[6].mxu0  ;;  %2589 = vmatpush3.bf16.msra.mxu0 %v2759_v33  ;;  %v2761_v35 = vld [vmem:[#allocation7 + $0x10] sm:$0xff]   ;;  %v2762_v36 = vld [vmem:[#allocation7 + $0x18] sm:$0xff]  }
 0x612   : > { %v2569_v39 = vpop.f32.mrb[7].mxu0  ;;  %v1140_v40 = vsel %vm861_vm3, %v1139_v34, -1e+30  ;;  %v2760_v34 = vld [vmem:[#allocation7 + $0x8] sm:$0xff]   ;;  %2590 = vmatprep.subr.bf16.mxu0 %v3201_v3  ;;  %v2763_v37 = vld [vmem:[#allocation7 + $0x20] sm:$0xff]  }
 0x613   : > { %v1141_v41 = vsel %vm914_vm4, %v1140_v40, -inf  ;;  %v2764_v38 = vld [vmem:[#allocation7 + $0x28] sm:$0xff]   ;;  %v2765_v39 = vld [vmem:[#allocation7 + $0x30] sm:$0xff]  }
 0x614   : > { %1142 = vmax.xlane.f32.xlu1 %v1141_v41  ;;  %v2797_v33 = vld [vmem:[%s3798_s9 + $0xa0] ss:$16 sps:$4 sm:$0xff]  }
 0x615   : > { %2591 = vmatpush3.bf16.msra.mxu0 %v2760_v34  ;;  %v2800_v34 = vld [vmem:[%s3798_s9 + $0xa8] ss:$16 sps:$4 sm:$0xff]  }
 0x616   : > { %v1020_v44 = vpop.f32.mrb[12].mxu1  ;;  %2592 = vmatprep.subr.bf16.mxu0 %v3201_v3 }
 0x617   : > { %v1026_v46 = vmul.f32 0.17677669, %v1020_v44  ;;  %v2556_v48 = vpop.f32.mrb[13].mxu1  ;;  %v1245_v49 = vpop.f32.mrb[8].mxu0 }
 0x618   : > { %v1251_v50 = vmul.f32 0.17677669, %v1245_v49  ;;  %v1023_v51 = vpop.f32.mrb[14].mxu1  ;;  %v2580_v52 = vpop.f32.mrb[9].mxu0  ;;  %v2766_v48 = vld [vmem:[#allocation7 + $0x38] sm:$0xff]  }
 0x619   : > { %v2557_v53 = vpop.f32.mrb[15].mxu1  ;;  %v1248_v54 = vpop.f32.mrb[10].mxu0  ;;  %v1027_v55 = vsel %vm861_vm3, %v1026_v46, -1e+30  ;;  %2593 = vmatpush3.bf16.msra.mxu0 %v2761_v35  ;;  %v2805_v35 = vld [vmem:[%s3798_s9 + $0xc4] ss:$16 sps:$4 sm:$0xff]  }
 0x61a   : > { %v2581_v56 = vpop.f32.mrb[11].mxu0  ;;  %v1028_v57 = vsel %vm914_vm4, %v1027_v55, -inf  ;;  %v1252_v58 = vsel %vm861_vm3, %v1251_v50, -1e+30  ;;  %2594 = vmatprep.subr.bf16.mxu0 %v3201_v3 }
 0x61b   : > { %1029 = vmax.xlane.f32.xlu0 %v1028_v57  ;;  %v1253_v59 = vsel %vm914_vm4, %v1252_v58, -inf }
 0x61d   : > { %2595 = vmatpush3.bf16.msra.mxu0 %v2762_v36  ;;  %v2808_v36 = vld [vmem:[%s3798_s9 + $0xcc] ss:$16 sps:$4 sm:$0xff]  }
 0x61e   : > { %2596 = vmatprep.subr.bf16.mxu0 %v3201_v3 }
 0x61f   : > { %1254 = vmax.xlane.f32.xlu0 %v1253_v59 }
 0x621   : > { %2597 = vmatpush3.bf16.msra.mxu0 %v2763_v37  ;;  %v2803_v37 = vld [vmem:[%s3798_s9 + $0xc0] ss:$16 sps:$4 sm:$0xff]  }
 0x622   : > { %2598 = vmatprep.subr.bf16.mxu0 %v3201_v3 }
 0x625   : > { %2599 = vmatpush3.bf16.msra.mxu0 %v2764_v38  ;;  %v2806_v38 = vld [vmem:[%s3798_s9 + $0xc8] ss:$16 sps:$4 sm:$0xff]  }
 0x626   : > { %2600 = vmatprep.subr.bf16.mxu0 %v3201_v3 }
 0x629   : > { %2601 = vmatpush3.bf16.msra.mxu0 %v2765_v39  ;;  %v2811_v39 = vld [vmem:[%s3798_s9 + $0xe4] ss:$16 sps:$4 sm:$0xff]  }
 0x62a   : > { %2602 = vmatprep.subr.bf16.mxu0 %v3201_v3 }
 0x62d   : > { %2603 = vmatpush3.bf16.msra.mxu0 %v2766_v48 }
 0x6a1   : > { %v1143_v60 = vpop.xlane.xlu1 %1142 }
 0x6a2   : > { %v1144_v61 = vsub.f32 %v1140_v40, %v1143_v60 }
 0x6a4   : > { %v1145_v62 = vmul.f32 1.442695, %v1144_v61 }
 0x6a6   : > { %2853 = vpow2.f32 %v1145_v62 }
 0x6a8   : > { %v1030_v1 = vpop.xlane.xlu0 %1029 }
 0x6a9   : > { %v1031_v2 = vsub.f32 %v1027_v55, %v1030_v1  ;;  %v2364_v1 = vld [vmem:[#allocation9] ss:$0 sm:$0xff] }
 0x6ab   : > { %v1032_v5 = vmul.f32 1.442695, %v1031_v2 }
 0x6ac   : > { %v1255_v6 = vpop.xlane.xlu0 %1254 }
 0x6ad   : > { %2855 = vpow2.f32 %v1032_v5  ;;  %v1256_v7 = vsub.f32 %v1252_v58, %v1255_v6 }
 0x6af   : > { %v1257_v8 = vmul.f32 1.442695, %v1256_v7 }
 0x6b0   : > { %v2854_v9 = vpop.eup %2853 }
 0x6b1   : > { %2857 = vpow2.f32 %v1257_v8  ;;  %v1147_v10 = vsel %vm914_vm4, %v2854_v9, 0.0 }
 0x6b2   : > { %1148 = vadd.xlane.f32.xlu0 %v1147_v10  ;;  %v2769_v10 = vld [vmem:[%s3798_s9 + $0x4] ss:$16 sps:$4 sm:$0xff]  }
 0x6b7   : > { %v2856_v4 = vpop.eup %2855 }
 0x6b8   : > { %v1034_v11 = vsel %vm914_vm4, %v2856_v4, 0.0 }
 0x6b9   : > { %1035 = vadd.xlane.f32.xlu0 %v1034_v11  ;;  %v2778_v11 = vld [vmem:[%s3798_s9 + $0x2c] ss:$16 sps:$4 sm:$0xff]  }
 0x6bb   : > { %v2858_v12 = vpop.eup %2857 }
 0x6bc   : > { %v1259_v13 = vsel %vm914_vm4, %v2858_v12, 0.0 }
 0x6bd   : > { %1260 = vadd.xlane.f32.xlu1 %v1259_v13  ;;  %v2776_v13 = vld [vmem:[%s3798_s9 + $0x28] ss:$16 sps:$4 sm:$0xff]  }
 0x6ce   : > { %1153 = vrot.lane.b32.xlu1 %v3583_v63, %s3206_s17 }
 0x6cf   : > { %1041 = vrot.lane.b32.xlu0 %v3583_v63, %s3204_s24 }
 0x6d2   : > { %1265 = vrot.lane.b32.xlu1 %v3583_v63, %s3205_s27 }
 0x73f   : > { %v1149_v14 = vpop.xlane.xlu0 %1148 }
 0x746   : > { %v1036_v15 = vpop.xlane.xlu0 %1035 }
 0x747   : > { %2859 = vrcp.f32 %v1036_v15  ;;  %v2784_v15 = vld [vmem:[%s3798_s9 + $0x4c] ss:$16 sps:$4 sm:$0xff]  }
 0x748   : > { %2861 = vrcp.f32 %v1149_v14  ;;  %v2781_v14 = vld [vmem:[%s3798_s9 + $0x44] ss:$16 sps:$4 sm:$0xff]  }
 0x74a   : > { %v1042_v16 = vpop.permute.xlu0 %1041  ;;  %v1261_v18 = vpop.xlane.xlu1 %1260 }
 0x74b   : > { %v1047_v17 = vsel %vm930_vm2, %v1042_v16, 0  ;;  %2863 = vrcp.f32 %v1261_v18  ;;  %v2779_v16 = vld [vmem:[%s3798_s9 + $0x40] ss:$16 sps:$4 sm:$0xff]  }
 0x74c   : > { %2559 = vmatpush3.bf16.msra.mxu1 %v1047_v17  ;;  %v2782_v17 = vld [vmem:[%s3798_s9 + $0x48] ss:$16 sps:$4 sm:$0xff]  }
 0x74d   : > { %2570 = vmatprep.subr.bf16.mxu1 %v3201_v3 }
 0x74e   : > { %v1154_v21 = vpop.permute.xlu1 %1153 }
 0x74f   : > { %v1159_v24 = vsel %vm930_vm2, %v1154_v21, 0 }
 0x751   : > { %v2860_v19 = vpop.eup %2859 }
 0x752   : > { %v1038_v20 = vmul.f32 %v2860_v19, %v2856_v4  ;;  %v2862_v23 = vpop.eup %2861  ;;  %v1266_v26 = vpop.permute.xlu1 %1265  ;;  %v2775_v4 = vld [vmem:[%s3798_s9 + $0x24] ss:$16 sps:$4 sm:$0xff]  }
 0x753   : > { %v1151_v63 = vmul.f32 %v2862_v23, %v2854_v9  ;;  %v1271_v29 = vsel %vm930_vm2, %v1266_v26, 0  ;;  %v2790_v23 = vld [vmem:[%s3798_s9 + $0x6c] ss:$16 sps:$4 sm:$0xff]   ;;  %v2793_v26 = vld [vmem:[%s3798_s9 + $0x84] ss:$16 sps:$4 sm:$0xff]  }
 0x754   : > { %v1039_v22 = vpack.c.bf16 %v1038_v20, %v1038_v20 }
 0x755   : > { %v1152_v27 = vpack.c.bf16 %v1151_v63, %v1151_v63  ;;  %v2864_v28 = vpop.eup %2863  ;;  %v2788_v63 = vld [vmem:[%s3798_s9 + $0x68] ss:$16 sps:$4 sm:$0xff]  }
 0x756   : > { %2561 = vmatmul.mubr.msk.bf16.vlgmr.msra.gmra.mrb[16].mxu1 %vm914_vm4, %v1039_v22  ;;  %v1263_v30 = vmul.f32 %v2864_v28, %v2858_v12  ;;  %v2773_v12 = vld [vmem:[%s3798_s9 + $0x20] ss:$16 sps:$4 sm:$0xff]   ;;  %v2787_v22 = vld [vmem:[%s3798_s9 + $0x64] ss:$16 sps:$4 sm:$0xff]  }
 0x757   : > { %2571 = vmatpush3.bf16.msra.mxu1 %v1159_v24  ;;  %2572 = vmatprep.mubr.msk.bf16.mxu1 %vm3203_vm0, %v3201_v3  ;;  %v2785_v24 = vld [vmem:[%s3798_s9 + $0x60] ss:$16 sps:$4 sm:$0xff]  }
 0x758   : > { %2582 = vmatprep.subr.bf16.mxu1 %v3201_v3  ;;  %v1264_v32 = vpack.c.bf16 %v1263_v30, %v1263_v30  ;;  %v2791_v28 = vld [vmem:[%s3798_s9 + $0x80] ss:$16 sps:$4 sm:$0xff]   ;;  %v2799_v30 = vld [vmem:[%s3798_s9 + $0xa4] ss:$16 sps:$4 sm:$0xff]  }
 0x75e   : > { %2573 = vmatmul.mubr.msk.bf16.vlgmr.msra.gmra.mrb[20].mxu1 %vm914_vm4, %v1152_v27  ;;  %v2796_v27 = vld [vmem:[%s3798_s9 + $0x8c] ss:$16 sps:$4 sm:$0xff]  }
 0x75f   : > { %2583 = vmatpush3.bf16.msra.mxu1 %v1271_v29  ;;  %2584 = vmatprep.mubr.msk.bf16.mxu1 %vm3203_vm0, %v3201_v3  ;;  %v2794_v29 = vld [vmem:[%s3798_s9 + $0x88] ss:$16 sps:$4 sm:$0xff]  }
 0x760   : > { %1685 = vmatprep.subr.bf16.mxu1 %v2769_v10  ;;  %v2829_v10 = vld [vmem:[#allocation15 + $0x18] sm:$0xff]  }
 0x766   : > { %2585 = vmatmul.mubr.msk.bf16.vlgmr.msra.gmra.mrb[24].mxu1 %vm914_vm4, %v1264_v32  ;;  %v2802_v32 = vld [vmem:[%s3798_s9 + $0xac] ss:$16 sps:$4 sm:$0xff]  }
 0x767   : > { %1717 = vmatprep.mubr.bf16.mxu1 %v3202_v25 }
 0x829   : > { %v1083_v40 = vpop.f32.mrb[16].mxu1 }
 0x82a   : > { %1314 = vrot.lane.b32.xlu1 %v1083_v40, %s3205_s27  ;;  %v2562_v41 = vpop.f32.mrb[17].mxu1  ;;  %v2814_v40 = vld [vmem:[%s3798_s9 + $0xec] ss:$16 sps:$4 sm:$0xff]   ;;  %s3826_s27 = sld [smem:[#allocation26_spill]] }
 0x82b   : > { %v1086_v44 = vpop.f32.mrb[18].mxu1  ;;  %v2809_v41 = vld [vmem:[%s3798_s9 + $0xe0] ss:$16 sps:$4 sm:$0xff]  }
 0x82c   : > { %v2563_v46 = vpop.f32.mrb[19].mxu1  ;;  %v2812_v44 = vld [vmem:[%s3798_s9 + $0xe8] ss:$16 sps:$4 sm:$0xff]  }
 0x831   : > { %v1195_v49 = vpop.f32.mrb[20].mxu1 }
 0x832   : > { %1318 = vrot.lane.b32.xlu0 %v1195_v49, %s3206_s17  ;;  %v2574_v50 = vpop.f32.mrb[21].mxu1  ;;  %s567_s17 = scalar_lea.vmem %s3826_s27, %s2328_s29 }
 0x833   : > { %v1198_v51 = vpop.f32.mrb[22].mxu1 }
 0x834   : > { %v2575_v52 = vpop.f32.mrb[23].mxu1  ;;  %v2373_v51 = vld [vmem:[#allocation10] ss:$0 sm:$0xff] }
 0x839   : > { %v1307_v53 = vpop.f32.mrb[24].mxu1 }
 0x83a   : > { %1322 = vrot.lane.b32.xlu1 %v1307_v53, %s3204_s24  ;;  %v2586_v54 = vpop.f32.mrb[25].mxu1  ;;  %v2374_v53 = vld [vmem:[#allocation12] ss:$0 sm:$0xff] }
 0x83b   : > { %v1310_v55 = vpop.f32.mrb[26].mxu1 }
 0x83c   : > { %v2587_v56 = vpop.f32.mrb[27].mxu1 }
 0x89c   : > { %v1315_v57 = vpop.permute.xlu1 %1314 }
 0x89d   : > { %v1325_v3 = vsel %vm865_vm1, %v3623_v31, %v1315_v57  ;;  %v2767_v31 = vld [vmem:[%s3798_s9] ss:$16 sps:$4 sm:$0xff]  }
 0x89e   : > { %1686 = vmatpush1.bf16.msra.mxu1 %v2767_v31  ;;  %v2815_v57 = vld [vmem:[#allocation15 + $0x40] sm:$0xff]   ;;  %v2828_v31 = vld [vmem:[#allocation15 + $0xd8] sm:$0xff]  }
 0x89f   : > { %1687 = vmatprep.subr.bf16.mxu1 %v2775_v4  ;;  %v2832_v4 = vld [vmem:[#allocation15 + $0xe0] sm:$0xff]  }
 0x8a2   : > { %1688 = vmatpush1.bf16.msra.mxu1 %v2773_v12  ;;  %v2834_v12 = vld [vmem:[#allocation15 + $0xa0] sm:$0xff]  }
 0x8a3   : > { %1689 = vmatprep.subr.bf16.mxu1 %v2781_v14  ;;  %v2836_v14 = vld [vmem:[#allocation15 + $0xe8] sm:$0xff]  }
 0x8a4   : > { %v1319_v58 = vpop.permute.xlu0 %1318 }
 0x8a5   : > { %v1327_v59 = vsel %vm1326_vm5, %v1325_v3, %v1319_v58  ;;  %v2816_v58 = vld [vmem:[#allocation15 + $0xc0] sm:$0xff]  }
 0x8a6   : > { %1690 = vmatpush1.bf16.msra.mxu1 %v2779_v16  ;;  %v2817_v3 = vld [vmem:[#allocation15] sm:$0xff]   ;;  %v2838_v16 = vld [vmem:[#allocation15 + $0xa8] sm:$0xff]  }
 0x8a7   : > { %1691 = vmatprep.subr.bf16.mxu1 %v2787_v22  ;;  %v2844_v22 = vld [vmem:[#allocation15 + $0xf8] sm:$0xff]  }
 0x8aa   : > { %1692 = vmatpush1.bf16.msra.mxu1 %v2785_v24  ;;  %v2846_v24 = vld [vmem:[#allocation15 + $0xb8] sm:$0xff]  }
 0x8ab   : > { %1693 = vmatprep.subr.bf16.mxu1 %v2793_v26  ;;  %v1519_v26 = vsub.s32 3, %v3569_v42 }
 0x8ac   : > { %v1323_v60 = vpop.permute.xlu1 %1322 }
 0x8ad   : > { %v1329_v61 = vsel %vm1328_vm6, %v1327_v59, %v1323_v60  ;;  %v2818_v59 = vld [vmem:[#allocation15 + $0x80] sm:$0xff]   ;;  %v2819_v60 = vld [vmem:[#allocation15 + $0x48] sm:$0xff]  }
 0x8ae   : > { %v1330_v62 = vpack.c.bf16 %v1329_v61, %v1329_v61  ;;  %1694 = vmatpush1.bf16.msra.mxu1 %v2791_v28  ;;  %v2820_v61 = vld [vmem:[#allocation15 + $0xc8] sm:$0xff]  }
 0x8af   : > { %1695 = vmatprep.subr.bf16.mxu1 %v2799_v30 }
 0x8b0   : > { %2605 = vmatmul.mubr.bf16.vlgmr.msra.gmra.mrb[12].mxu0 %v1330_v62  ;;  %v2821_v62 = vld [vmem:[#allocation15 + $0x8] sm:$0xff]  }
 0x8b1   : > { %1758 = vmatprep.mubr.bf16.mxu0 %v3202_v25  ;;  %v2770_v25 = vld [vmem:[%s3798_s9 + $0x8] ss:$16 sps:$4 sm:$0xff]  }
 0x8b2   : > { %1696 = vmatpush1.bf16.msra.mxu1 %v2797_v33 }
 0x8b3   : > { %1697 = vmatprep.subr.bf16.mxu1 %v2805_v35 }
 0x8b6   : > { %1698 = vmatpush1.bf16.msra.mxu1 %v2803_v37 }
 0x8b7   : > { %1699 = vmatprep.subr.bf16.mxu1 %v2811_v39 }
 0x8ba   : > { %1700 = vmatpush1.bf16.msra.mxu1 %v2809_v41 }
 0x8bb   : > { %2476 = vmatprep.subr.bf16.mxu1 %v2815_v57 }
 0x983   : > { %v1436_v2 = vpop.f32.mrb[12].mxu0 }
 0x984   : > { %v1437_v5 = vadd.f32 %v2364_v1, %v1436_v2  ;;  %v2606_v6 = vpop.f32.mrb[13].mxu0  ;;  %v2822_v1 = vld [vmem:[#allocation15 + $0x88] sm:$0xff]   ;;  %v2823_v2 = vld [vmem:[#allocation15 + $0x50] sm:$0xff]  }
 0x985   : > { %v1439_v7 = vpop.f32.mrb[14].mxu0  ;;  %v2825_v6 = vld [vmem:[#allocation15 + $0x10] sm:$0xff]  }
 0x986   : > { %v3673_v8 = vadd.f32 %v1437_v5, %v3545_v0  ;;  %v2607_v9 = vpop.f32.mrb[15].mxu0  ;;  %v2772_v0 = vld [vmem:[%s3798_s9 + $0xc] ss:$16 sps:$4 sm:$0xff]   ;;  %v2824_v5 = vld [vmem:[#allocation15 + $0xd0] sm:$0xff]  }
 0x987   : > { %1726 = vmatprep.subr.bf16.mxu0 %v2772_v0  ;;  %v2826_v7 = vld [vmem:[#allocation15 + $0x90] sm:$0xff]   ;;  %v2827_v9 = vld [vmem:[#allocation15 + $0x58] sm:$0xff]   ;;  %v2831_v0 = vld [vmem:[#allocation15 + $0x60] sm:$0xff]  }
 0x988   : > { %1445 = vadd.xlane.f32.xlu0 %v3673_v8  ;;  %1727 = vmatpush1.bf16.msra.mxu0 %v2770_v25  ;;  %v2830_v25 = vld [vmem:[#allocation15 + $0x98] sm:$0xff]  }
 0x989   : > { %1728 = vmatprep.subr.bf16.mxu0 %v2778_v11  ;;  %v2833_v11 = vld [vmem:[#allocation15 + $0x20] sm:$0xff]  }
 0x98c   : > { %1729 = vmatpush1.bf16.msra.mxu0 %v2776_v13  ;;  %v2835_v13 = vld [vmem:[#allocation15 + $0x68] sm:$0xff]  }
 0x98d   : > { %1730 = vmatprep.subr.bf16.mxu0 %v2784_v15  ;;  %v2837_v15 = vld [vmem:[#allocation15 + $0x28] sm:$0xff]  }
 0x990   : > { %1731 = vmatpush1.bf16.msra.mxu0 %v2782_v17  ;;  %v2839_v17 = vld [vmem:[#allocation15 + $0x70] sm:$0xff]  }
 0x991   : > { %1732 = vmatprep.subr.bf16.mxu0 %v2790_v23  ;;  %v2845_v23 = vld [vmem:[#allocation15 + $0x38] sm:$0xff]  }
 0x994   : > { %1733 = vmatpush1.bf16.msra.mxu0 %v2788_v63  ;;  %v1503_v63 = vld [vmem:[#allocation13] sm:$0xf] }
 0x995   : > { %1734 = vmatprep.subr.bf16.mxu0 %v2796_v27  ;;  %v1508_v27 = vrot.slane %v1503_v63, %v635_v47  ;;  %v1516_v28 = vrot.slane %v1503_v63, %v643_v45  ;;  %v1520_v30 = vrot.slane %v1503_v63, %v1519_v26 }
 0x998   : > { %1735 = vmatpush1.bf16.msra.mxu0 %v2794_v29  ;;  %v1512_v29 = vrot.slane %v1503_v63, %v639_v43 }
 0x999   : > { %1736 = vmatprep.subr.bf16.mxu0 %v2802_v32 }
 0x99c   : > { %1737 = vmatpush1.bf16.msra.mxu0 %v2800_v34 }
 0x99d   : > { %1738 = vmatprep.subr.bf16.mxu0 %v2808_v36 }
 0x9a0   : > { %1739 = vmatpush1.bf16.msra.mxu0 %v2806_v38 }
 0x9a1   : > { %1740 = vmatprep.subr.bf16.mxu0 %v2814_v40 }
 0x9a4   : > { %1741 = vmatpush1.bf16.msra.mxu0 %v2812_v44 }
 0x9a5   : > { %2498 = vmatprep.subr.bf16.mxu0 %v2816_v58 }
 0xa15   : > { %v1446_v18 = vpop.xlane.xlu0 %1445 }
 0xa16   : > { %v1447_v19 = vmul.f32 0.0078125, %v1446_v18  ;;  %v2840_v18 = vld [vmem:[#allocation15 + $0xf0] sm:$0xff]  }
 0xa18   : > { %v1448_v20 = vsub.f32 %v3673_v8, %v1447_v19  ;;  %v2841_v19 = vld [vmem:[#allocation15 + $0x30] sm:$0xff]  }
 0xa1a   : > { %v1449_v21 = vmul.f32 %v1448_v20, %v1448_v20 }
 0xa1c   : > { %1450 = vadd.xlane.f32.xlu1 %v1449_v21  ;;  %v2843_v21 = vld [vmem:[#allocation15 + $0x78] sm:$0xff]  }
 0xaa9   : > { %v1451_v46 = vpop.xlane.xlu1 %1450 }
 0xaaa   : > { %v1452_v48 = vmul.f32 0.0078125, %v1451_v46 }
 0xaac   : > { %v1453_v49 = vadd.f32 1e-05, %v1452_v48 }
 0xaae   : > { %2865 = vrsqrt.f32 %v1453_v49 }
 0xab8   : > { %v2866_v50 = vpop.eup %2865 }
 0xab9   : > { %v1455_v52 = vmul.f32 %v2866_v50, %v1448_v20  ;;  %v2842_v20 = vld [vmem:[#allocation15 + $0xb0] sm:$0xff]  }
 0xabb   : > { %v1462_v54 = vmul.f32 %v2373_v51, %v1455_v52 }
 0xabd   : > { %v1469_v55 = vadd.f32 %v2374_v53, %v1462_v54 }
 0xabf   : > { %v1470_v56 = vpack.c.bf16 %v1469_v55, %v1469_v55 }
 0xac1   : > { %1718 = vmatmul.mubr.bf16.vlgmr.msra.gmra.mrb[28].mxu1 %v1470_v56  ;;  %1759 = vmatmul.mubr.bf16.vlgmr.msra.gmra.mrb[16].mxu0 %v1470_v56 }
 0xac2   : > { %2477 = vmatpush3.bf16.msra.mxu1 %v2817_v3  ;;  %2499 = vmatpush3.bf16.msra.mxu0 %v2818_v59 }
 0xac3   : > { %2478 = vmatprep.subr.bf16.mxu1 %v2819_v60  ;;  %2500 = vmatprep.subr.bf16.mxu0 %v2820_v61 }
 0xac6   : > { %2479 = vmatpush3.bf16.msra.mxu1 %v2821_v62  ;;  %2501 = vmatpush3.bf16.msra.mxu0 %v2822_v1 }
 0xac7   : > { %2480 = vmatprep.subr.bf16.mxu1 %v2823_v2  ;;  %2502 = vmatprep.subr.bf16.mxu0 %v2824_v5 }
 0xaca   : > { %2481 = vmatpush3.bf16.msra.mxu1 %v2825_v6  ;;  %2503 = vmatpush3.bf16.msra.mxu0 %v2826_v7 }
 0xacb   : > { %2482 = vmatprep.subr.bf16.mxu1 %v2827_v9  ;;  %2504 = vmatprep.subr.bf16.mxu0 %v2828_v31 }
 0xace   : > { %2483 = vmatpush3.bf16.msra.mxu1 %v2829_v10  ;;  %2505 = vmatpush3.bf16.msra.mxu0 %v2830_v25 }
 0xacf   : > { %2484 = vmatprep.subr.bf16.mxu1 %v2831_v0  ;;  %2506 = vmatprep.subr.bf16.mxu0 %v2832_v4 }
 0xad2   : > { %2485 = vmatpush3.bf16.msra.mxu1 %v2833_v11  ;;  %2507 = vmatpush3.bf16.msra.mxu0 %v2834_v12 }
 0xad3   : > { %2486 = vmatprep.subr.bf16.mxu1 %v2835_v13  ;;  %2508 = vmatprep.subr.bf16.mxu0 %v2836_v14 }
 0xad6   : > { %2487 = vmatpush3.bf16.msra.mxu1 %v2837_v15  ;;  %2509 = vmatpush3.bf16.msra.mxu0 %v2838_v16 }
 0xad7   : > { %2488 = vmatprep.subr.bf16.mxu1 %v2839_v17  ;;  %2510 = vmatprep.subr.bf16.mxu0 %v2840_v18 }
 0xada   : > { %2489 = vmatpush3.bf16.msra.mxu1 %v2841_v19  ;;  %2511 = vmatpush3.bf16.msra.mxu0 %v2842_v20 }
 0xadb   : > { %2490 = vmatprep.subr.bf16.mxu1 %v2843_v21  ;;  %2512 = vmatprep.subr.bf16.mxu0 %v2844_v22  ;;  %v2407_v22 = vld [vmem:[#allocation16] ss:$0 sm:$0xff] }
 0xade   : > { %2491 = vmatpush3.bf16.msra.mxu1 %v2845_v23  ;;  %2513 = vmatpush3.bf16.msra.mxu0 %v2846_v24 }
 0xb94   : > { %v1719_v32 = vpop.f32.mrb[28].mxu1  ;;  %v1760_v33 = vpop.f32.mrb[16].mxu0 }
 0xb95   : > { %v1720_v34 = vadd.f32 %v1719_v32, %v1508_v27  ;;  %v1761_v35 = vadd.f32 %v1760_v33, %v1516_v28  ;;  %v1721_v36 = vpop.f32.mrb[29].mxu1  ;;  %v1762_v37 = vpop.f32.mrb[17].mxu0 }
 0xb96   : > { %v1722_v38 = vadd.f32 %v1721_v36, %v1512_v29  ;;  %v1763_v39 = vadd.f32 %v1762_v37, %v1520_v30  ;;  %v1723_v40 = vpop.f32.mrb[30].mxu1  ;;  %v1764_v41 = vpop.f32.mrb[18].mxu0 }
 0xb97   : > { %v1767_v44 = vmul.f32 %v1720_v34, %v1720_v34  ;;  %v1769_v46 = vmul.f32 %v1761_v35, %v1761_v35  ;;  %v1724_v47 = vpop.f32.mrb[31].mxu1  ;;  %v1765_v48 = vpop.f32.mrb[19].mxu0 }
 0xb98   : > { %v1768_v49 = vmul.f32 %v1722_v38, %v1722_v38  ;;  %v1770_v45 = vmul.f32 %v1763_v39, %v1763_v39 }
 0xb99   : > { %v1771_v50 = vmul.f32 %v1767_v44, %v1720_v34  ;;  %v1773_v42 = vmul.f32 %v1769_v46, %v1761_v35 }
 0xb9a   : > { %v1772_v43 = vmul.f32 %v1768_v49, %v1722_v38  ;;  %v1774_v51 = vmul.f32 %v1770_v45, %v1763_v39 }
 0xb9b   : > { %v1775_v52 = vmul.f32 0.044715, %v1771_v50  ;;  %v1777_v53 = vmul.f32 0.044715, %v1773_v42 }
 0xb9c   : > { %v1776_v54 = vmul.f32 0.044715, %v1772_v43  ;;  %v1778_v55 = vmul.f32 0.044715, %v1774_v51 }
 0xb9d   : > { %v1779_v56 = vadd.f32 %v1775_v52, %v1720_v34  ;;  %v1781_v57 = vadd.f32 %v1777_v53, %v1761_v35 }
 0xb9e   : > { %v1780_v58 = vadd.f32 %v1776_v54, %v1722_v38  ;;  %v1782_v3 = vadd.f32 %v1778_v55, %v1763_v39 }
 0xb9f   : > { %v1783_v59 = vmul.f32 0.7978846, %v1779_v56  ;;  %v1785_v60 = vmul.f32 0.7978846, %v1781_v57 }
 0xba0   : > { %v1784_v61 = vmul.f32 0.7978846, %v1780_v58  ;;  %v1786_v62 = vmul.f32 0.7978846, %v1782_v3 }
 0xba1   : > { %2867 = vtanh.f32 %v1783_v59 }
 0xba2   : > { %2869 = vtanh.f32 %v1785_v60 }
 0xba3   : > { %2871 = vtanh.f32 %v1784_v61 }
 0xba4   : > { %2873 = vtanh.f32 %v1786_v62 }
 0xbab   : > { %v2868_v1 = vpop.eup %2867 }
 0xbac   : > { %v2870_v2 = vpop.eup %2869  ;;  %v1791_v5 = vadd.f32 1.0, %v2868_v1 }
 0xbad   : > { %v2872_v6 = vpop.eup %2871  ;;  %v1793_v7 = vadd.f32 1.0, %v2870_v2 }
 0xbae   : > { %v2874_v9 = vpop.eup %2873  ;;  %v1792_v31 = vadd.f32 1.0, %v2872_v6  ;;  %v1795_v10 = vmul.f32 0.5, %v1791_v5 }
 0xbaf   : > { %v1794_v25 = vadd.f32 1.0, %v2874_v9  ;;  %v1797_v0 = vmul.f32 0.5, %v1793_v7 }
 0xbb0   : > { %v1796_v4 = vmul.f32 0.5, %v1792_v31  ;;  %v1799_v12 = vmul.f32 %v1795_v10, %v1720_v34 }
 0xbb1   : > { %v1798_v11 = vmul.f32 0.5, %v1794_v25  ;;  %v1801_v14 = vmul.f32 %v1797_v0, %v1761_v35 }
 0xbb2   : > { %v1800_v13 = vmul.f32 %v1796_v4, %v1722_v38  ;;  %v1803_v18 = vpack.c.bf16 %v1799_v12, %v1799_v12 }
 0xbb3   : > { %v1802_v15 = vmul.f32 %v1798_v11, %v1763_v39  ;;  %v1805_v19 = vpack.c.bf16 %v1801_v14, %v1801_v14 }
 0xbb4   : > { %v1804_v16 = vpack.c.bf16 %v1800_v13, %v1800_v13 }
 0xbb5   : > { %v1806_v17 = vpack.c.bf16 %v1802_v15, %v1802_v15 }
 0xbb6   : > { %2102 = vmatprep.mubr.bf16.mxu1 %v1804_v16 }
 0xbb7   : > { %2142 = vmatprep.mubr.bf16.mxu0 %v1806_v17  ;;  %2103 = vmatmul.mubr.bf16.vlgmr.msra.gmra.mrb[32].mxu1 %v1803_v18 }
 0xbb8   : > { %2143 = vmatmul.mubr.bf16.vlgmr.msra.gmra.mrb[20].mxu0 %v1805_v19 }
 0xc8a   : > { %v2492_v20 = vpop.f32.mrb[32].mxu1 }
 0xc8b   : > { %v2514_v21 = vpop.f32.mrb[20].mxu0  ;;  %v2493_v23 = vpop.f32.mrb[33].mxu1 }
 0xc8c   : > { %v2494_v24 = vadd.f32 %v2493_v23, %v2492_v20  ;;  %v2515_v63 = vpop.f32.mrb[21].mxu0  ;;  %v2495_v26 = vpop.f32.mrb[34].mxu1 }
 0xc8d   : > { %v2516_v27 = vadd.f32 %v2515_v63, %v2514_v21  ;;  %v2517_v28 = vpop.f32.mrb[22].mxu0  ;;  %v2496_v29 = vpop.f32.mrb[35].mxu1 }
 0xc8e   : > { %v2105_v30 = vadd.f32 %v2494_v24, %v2407_v22  ;;  %v2518_v32 = vpop.f32.mrb[23].mxu0 }
 0xc90   : > { %v2145_v33 = vadd.f32 %v2516_v27, %v2105_v30 }
 0xc92   : > { %v2150_v34 = vadd.f32 %v2145_v33, %v3673_v8 }
 0xc94   : > { %2151 = vst [vmem:[%s567_s17] sm:$0xff] %v2150_v34 }
 0xc95 PF: > { %s3827_s20 = sld [smem:[#allocation24_spill]] }
 0xc9b   : > { %s29_s25 = sadd.s32 1, %s3827_s20  }
 0xc9c   : > { %p26_p11 = scmp.ge.s32.totalorder %s29_s25, 4  }
 0xc9e   :  { %28 = sbr.rel (!%p26_p11) target bundleno = 9 (0x9), region = 143 }
 0xca5   :  { %2171 = vsyncpa [#allocation3], 1 }
 0xca6   :  { %2173 = vsyncpa [#allocation3 + $0x1], 1 }
 0xca7   :  { %2174 = vsyncpa [#allocation5], 1 }
 0xca8   :  { %2175 = vsyncpa [#allocation8], 1 }
 0xca9   :  { %2176 = vsyncpa [#allocation11], 1 }
 0xcaa   :  { %2177 = vsyncpa [#allocation14], 1 }
 0xcab   :  { %2178 = vsyncpa [#allocation17], 1 }

</bundles_post_ra>
